<compile_context>
chip_gen: v7x
topology: tpu7x:2x2x1
jax: 0.10.0
libtpu: 0.0.40
codegen_flags: <defaults>
</compile_context>

<pallas_src>
import jax
import jax.numpy as jnp
from jax.experimental import pallas as pl
from jax.experimental.pallas import tpu as pltpu


def _round_up(v, m):
    return (v + m - 1) // m * m


def _pick_tile(dim, cands):
    """Largest candidate tile that minimizes padded size."""
    best_t, best_p = cands[0], _round_up(dim, cands[0])
    for t in cands[1:]:
        p = _round_up(dim, t)
        if p < best_p:
            best_t, best_p = t, p
    return best_t


# ----------------------------------------------------------------------------
# Tiled matmul + bias (+ residual) (+ ReLU) kernel  (bf16 MXU, f32 accumulate)
# ----------------------------------------------------------------------------
def _make_mm_kernel(apply_relu, with_residual):
    def kernel(*refs):
        if with_residual:
            x_ref, w_ref, b_ref, r_ref, o_ref, acc_ref = refs
        else:
            x_ref, w_ref, b_ref, o_ref, acc_ref = refs
        k = pl.program_id(2)

        @pl.when(k == 0)
        def _():
            acc_ref[...] = jnp.zeros_like(acc_ref)

        acc_ref[...] += jnp.dot(x_ref[...], w_ref[...],
                                preferred_element_type=jnp.float32)

        @pl.when(k == pl.num_programs(2) - 1)
        def _():
            out = acc_ref[...] + b_ref[...]
            if with_residual:
                out = out + r_ref[...]
            if apply_relu:
                out = jnp.maximum(out, 0.0)
            o_ref[...] = out.astype(o_ref.dtype)

    return kernel


def matmul_bias(x, w, bias, *, relu=False, residual=None):
    """out = [relu]( x @ w + bias [+ residual] ) with a tiled K-reduction grid."""
    M, K = x.shape
    N = w.shape[1]
    tm = min(256, _round_up(M, 16))               # bf16 sublane packing: mult of 16
    tn = _pick_tile(N, (256, 128))                # lane-dense (>=128) output tiles
    tk = _pick_tile(K, (512, 384, 256, 128))
    Mp, Kp, Np = _round_up(M, tm), _round_up(K, tk), _round_up(N, tn)

    xb = jnp.pad(x.astype(jnp.bfloat16), ((0, Mp - M), (0, Kp - K)))
    wb = jnp.pad(w.astype(jnp.bfloat16), ((0, Kp - K), (0, Np - N)))
    bb = jnp.pad(bias.astype(jnp.float32).reshape(1, N), ((0, 0), (0, Np - N)))

    args = [xb, wb, bb]
    in_specs = [
        pl.BlockSpec((tm, tk), lambda i, j, k: (i, k)),
        pl.BlockSpec((tk, tn), lambda i, j, k: (k, j)),
        pl.BlockSpec((1, tn), lambda i, j, k: (0, j)),
    ]
    if residual is not None:
        rb = jnp.pad(residual.astype(jnp.float32), ((0, Mp - M), (0, Np - N)))
        args.append(rb)
        # Same block index for all k -> fetched once per output tile.
        in_specs.append(pl.BlockSpec((tm, tn), lambda i, j, k: (i, j)))

    out = pl.pallas_call(
        _make_mm_kernel(relu, residual is not None),
        out_shape=jax.ShapeDtypeStruct((Mp, Np), jnp.float32),
        grid_spec=pltpu.PrefetchScalarGridSpec(
            num_scalar_prefetch=0,
            grid=(Mp // tm, Np // tn, Kp // tk),
            in_specs=in_specs,
            out_specs=pl.BlockSpec((tm, tn), lambda i, j, k: (i, j)),
            scratch_shapes=[pltpu.VMEM((tm, tn), jnp.float32)],
        ),
        compiler_params=pltpu.CompilerParams(
            dimension_semantics=("parallel", "parallel", "arbitrary")),
    )(*args)
    return out[:M, :N]


# ----------------------------------------------------------------------------
# Conv (im2col glue + fused matmul) with BN folded into weights
# ----------------------------------------------------------------------------
def _im2col(x, kh, kw, stride, pad, pad_value=0.0):
    # x: (N, H, W, C) -> (N*Ho*Wo, kh*kw*C), feature order (kh, kw, C)
    xp = jnp.pad(x, ((0, 0), (pad, pad), (pad, pad), (0, 0)),
                 constant_values=pad_value)
    N, Hp, Wp, C = xp.shape
    Ho = (Hp - kh) // stride + 1
    Wo = (Wp - kw) // stride + 1
    cols = []
    for i in range(kh):
        for j in range(kw):
            cols.append(xp[:, i:i + stride * Ho:stride,
                           j:j + stride * Wo:stride, :])
    patches = jnp.stack(cols, axis=3)              # (N, Ho, Wo, kh*kw, C)
    return patches.reshape(N * Ho * Wo, kh * kw * C), (N, Ho, Wo)


def conv_bn(x, w_oihw, scale, bias, *, stride, pad, relu, residual=None):
    cout, cin, kh, kw = w_oihw.shape
    cols, (N, Ho, Wo) = _im2col(x, kh, kw, stride, pad)
    w_mat = jnp.transpose(w_oihw, (2, 3, 1, 0)).reshape(kh * kw * cin, cout)
    w_mat = w_mat * scale[None, :]                 # fold BN scale into weights
    res = None if residual is None else residual.reshape(N * Ho * Wo, cout)
    out = matmul_bias(cols, w_mat, bias, relu=relu, residual=res)
    return out.reshape(N, Ho, Wo, cout)


# ----------------------------------------------------------------------------
# Direct windowed max-pool (k=3, stride=2, pad=1) — no patch tensor
# ----------------------------------------------------------------------------
def _maxpool_kernel(ee_ref, eo_ref, oe_ref, oo_ref, o_ref):
    _, Ho, Wo, _ = o_ref.shape
    m = ee_ref[0, 0:Ho, 0:Wo, :]                       # (dr, dc) = (0, 0)
    m = jnp.maximum(m, eo_ref[0, 0:Ho, 0:Wo, :])       # (0, 1)
    m = jnp.maximum(m, ee_ref[0, 0:Ho, 1:Wo + 1, :])   # (0, 2)
    m = jnp.maximum(m, oe_ref[0, 0:Ho, 0:Wo, :])       # (1, 0)
    m = jnp.maximum(m, oo_ref[0, 0:Ho, 0:Wo, :])       # (1, 1)
    m = jnp.maximum(m, oe_ref[0, 0:Ho, 1:Wo + 1, :])   # (1, 2)
    m = jnp.maximum(m, ee_ref[0, 1:Ho + 1, 0:Wo, :])   # (2, 0)
    m = jnp.maximum(m, eo_ref[0, 1:Ho + 1, 0:Wo, :])   # (2, 1)
    m = jnp.maximum(m, ee_ref[0, 1:Ho + 1, 1:Wo + 1, :])  # (2, 2)
    o_ref[0] = m


def maxpool(x):
    N, H, W, C = x.shape
    Ho = (H - 1) // 2 + 1
    Wo = (W - 1) // 2 + 1
    NEG = -3.0e38
    He, We = 2 * (Ho + 1), 2 * (Wo + 1)
    xp = jnp.pad(x, ((0, 0), (1, He - H - 1), (1, We - W - 1), (0, 0)),
                 constant_values=NEG)
    # Parity split (JAX glue): four (N, Ho+1, Wo+1, C) slabs, lane-dense layout.
    parts = [xp[:, r::2, c::2, :] for r in (0, 1) for c in (0, 1)]
    return pl.pallas_call(
        _maxpool_kernel,
        out_shape=jax.ShapeDtypeStruct((N, Ho, Wo, C), jnp.float32),
        grid=(N,),
        in_specs=[pl.BlockSpec((1, Ho + 1, Wo + 1, C),
                               lambda n: (n, 0, 0, 0))] * 4,
        out_specs=pl.BlockSpec((1, Ho, Wo, C), lambda n: (n, 0, 0, 0)),
        compiler_params=pltpu.CompilerParams(dimension_semantics=("parallel",)),
    )(*parts)


# ----------------------------------------------------------------------------
# Fused tail: attention (1x1 conv + sigmoid + scale) -> avg-pool -> fc
# ----------------------------------------------------------------------------
def _tail_kernel(x_ref, aw_ref, ab_ref, fw_ref, fb_ref, o_ref):
    x = x_ref[0]                                               # (HW, C)
    att = jax.nn.sigmoid(
        jnp.sum(x * aw_ref[...], axis=1, keepdims=True) + ab_ref[...])
    pooled = jnp.mean(x * att, axis=0, keepdims=True)          # (1, C)
    logits = jnp.dot(pooled, fw_ref[...],
                     preferred_element_type=jnp.float32) + fb_ref[...]
    o_ref[0] = logits


def attention_pool_fc(x, att_w, att_b, fc_w, fc_b):
    N, H, W, C = x.shape
    num_classes = fc_b.shape[0]
    NCp = _round_up(num_classes, 128)              # lane-dense logits store
    fw = jnp.pad(fc_w.T.astype(jnp.float32), ((0, 0), (0, NCp - num_classes)))
    fb = jnp.pad(fc_b.astype(jnp.float32), (0, NCp - num_classes)).reshape(1, NCp)
    aw = att_w.reshape(1, C).astype(jnp.float32)
    ab = att_b.reshape(1, 1).astype(jnp.float32)
    xf = x.reshape(N, H * W, C)
    out = pl.pallas_call(
        _tail_kernel,
        out_shape=jax.ShapeDtypeStruct((N, 1, NCp), jnp.float32),
        grid=(N,),
        in_specs=[
            pl.BlockSpec((1, H * W, C), lambda n: (n, 0, 0)),
            pl.BlockSpec((1, C), lambda n: (0, 0)),
            pl.BlockSpec((1, 1), lambda n: (0, 0)),
            pl.BlockSpec((C, NCp), lambda n: (0, 0)),
            pl.BlockSpec((1, NCp), lambda n: (0, 0)),
        ],
        out_specs=pl.BlockSpec((1, 1, NCp), lambda n: (n, 0, 0)),
        compiler_params=pltpu.CompilerParams(dimension_semantics=("parallel",)),
    )(xf, aw, ab, fw, fb)
    return out.reshape(N, NCp)[:, :num_classes]


# ----------------------------------------------------------------------------
# Parameter init (deterministic, mirrors the module's __init__ shapes)
# ----------------------------------------------------------------------------
def _kaiming_conv(key, cout, cin, kh, kw):
    fan_out = cout * kh * kw                       # kaiming_normal_, mode='fan_out'
    std = (2.0 / fan_out) ** 0.5
    return std * jax.random.normal(key, (cout, cin, kh, kw), jnp.float32)


def _bn(c):
    return dict(gamma=jnp.ones((c,), jnp.float32), beta=jnp.zeros((c,), jnp.float32),
                mean=jnp.zeros((c,), jnp.float32), var=jnp.ones((c,), jnp.float32))


def _fold_bn(bn, eps=1e-5):
    scale = bn["gamma"] / jnp.sqrt(bn["var"] + eps)
    bias = bn["beta"] - bn["mean"] * scale
    return scale, bias


def init_params(key, blocks_num=(1, 1, 1, 1), num_classes=10):
    keys = iter(jax.random.split(key, 64))
    params = {"conv1_w": _kaiming_conv(next(keys), 64, 4, 7, 7), "bn1": _bn(64)}
    in_c = 64
    layers = []
    for li, (c, n) in enumerate(zip((64, 128, 256, 512), blocks_num)):
        stride = 1 if li == 0 else 2
        blocks = []
        for bi in range(n):
            s = stride if bi == 0 else 1
            blk = {"conv1_w": _kaiming_conv(next(keys), c, in_c, 3, 3), "bn1": _bn(c),
                   "conv2_w": _kaiming_conv(next(keys), c, c, 3, 3), "bn2": _bn(c)}
            if s != 1 or in_c != c:
                blk["down_w"] = _kaiming_conv(next(keys), c, in_c, 1, 1)
                blk["down_bn"] = _bn(c)
            blocks.append(blk)
            in_c = c
        layers.append(blocks)
    params["layers"] = layers
    params["att_w"] = _kaiming_conv(next(keys), 1, 512, 1, 1)
    params["att_b"] = jnp.zeros((1,), jnp.float32)
    params["fc_w"] = 0.05 * jax.random.normal(next(keys), (num_classes, 512), jnp.float32)
    params["fc_b"] = jnp.zeros((num_classes,), jnp.float32)
    return params


# ----------------------------------------------------------------------------
# Forward pass
# ----------------------------------------------------------------------------
def _basic_block(x, blk, stride):
    s1, b1 = _fold_bn(blk["bn1"])
    s2, b2 = _fold_bn(blk["bn2"])
    if "down_w" in blk:
        sd, bd = _fold_bn(blk["down_bn"])
        identity = conv_bn(x, blk["down_w"], sd, bd, stride=stride, pad=0, relu=False)
    else:
        identity = x
    out = conv_bn(x, blk["conv1_w"], s1, b1, stride=stride, pad=1, relu=True)
    out = conv_bn(out, blk["conv2_w"], s2, b2, stride=1, pad=1, relu=True,
                  residual=identity)
    return out


def resnet_forward(params, x_nchw):
    x = jnp.transpose(x_nchw, (0, 2, 3, 1))                    # NCHW -> NHWC
    s, b = _fold_bn(params["bn1"])
    x = conv_bn(x, params["conv1_w"], s, b, stride=2, pad=3, relu=True)
    x = maxpool(x)
    for li, blocks in enumerate(params["layers"]):
        for bi, blk in enumerate(blocks):
            stride = 2 if (li > 0 and bi == 0) else 1
            x = _basic_block(x, blk, stride)
    # attention * sigmoid -> adaptive avg-pool (1,1) -> flatten -> fc, fused
    return attention_pool_fc(x, params["att_w"], params["att_b"],
                             params["fc_w"], params["fc_b"])


if __name__ == "__main__":
    key = jax.random.PRNGKey(0)
    pkey, xkey = jax.random.split(key)
    params = init_params(pkey, blocks_num=(1, 1, 1, 1), num_classes=10)
    x = jax.random.normal(xkey, (2, 4, 16, 16), jnp.float32)   # NCHW, 4 in-channels
    fwd = jax.jit(resnet_forward)
    out = fwd(params, x)
    jax.block_until_ready(out)
    assert out.shape == (2, 10) and out.dtype == jnp.float32
    print("KERNEL_OK")
</pallas_src>

<mosaic_0001>
module attributes {stable_mosaic.version = 11 : i64} {
  func.func @kernel(%arg0: i32, %arg1: i32, %arg2: i32, %arg3: memref<128x256xbf16, #tpu.memory_space<vmem>>, %arg4: memref<256x128xbf16, #tpu.memory_space<vmem>>, %arg5: memref<1x128xf32, #tpu.memory_space<vmem>>, %arg6: memref<128x128xf32, #tpu.memory_space<vmem>>, %arg7: memref<128x128xf32, #tpu.memory_space<vmem>>) attributes {dimension_semantics = [#tpu.dimension_semantics<parallel>, #tpu.dimension_semantics<parallel>, #tpu.dimension_semantics<arbitrary>], iteration_bounds = array<i64: 1, 1, 1>, scalar_prefetch = 0 : i64, scratch_operands = 1 : i64, tpu.core_type = #tpu.core_type<tc>, window_params = [{transform_indices = @transform_0, window_bounds = array<i64: 128, 256>}, {transform_indices = @transform_1, window_bounds = array<i64: 256, 128>}, {transform_indices = @transform_2, window_bounds = array<i64: 1, 128>}, {transform_indices = @transform_3, window_bounds = array<i64: 128, 128>}]} {
    %c0_i32 = arith.constant 0 : i32
    %0 = arith.cmpi eq, %arg2, %c0_i32 : i32
    %1 = arith.extui %0 : i1 to i32
    %c0_i32_0 = arith.constant 0 : i32
    %2 = arith.cmpi ne, %1, %c0_i32_0 : i32
    scf.if %2 {
      %cst_10 = arith.constant 0.000000e+00 : f32
      %12 = vector.broadcast %cst_10 : f32 to vector<128x128xf32>
      %c0_11 = arith.constant 0 : index
      %c0_12 = arith.constant 0 : index
      %13 = vector.load %arg7[%c0_11, %c0_12] : memref<128x128xf32, #tpu.memory_space<vmem>>, vector<128x128xf32>
      tpu.vector_store %arg7[%c0_11, %c0_12], %12 {strides = array<i32>} : memref<128x128xf32, #tpu.memory_space<vmem>>, vector<128x128xf32>,
    } else {
    }
    %c0 = arith.constant 0 : index
    %c0_1 = arith.constant 0 : index
    %3 = vector.load %arg7[%c0, %c0_1] : memref<128x128xf32, #tpu.memory_space<vmem>>, vector<128x128xf32>
    %c0_2 = arith.constant 0 : index
    %c0_3 = arith.constant 0 : index
    %4 = vector.load %arg3[%c0_2, %c0_3] : memref<128x256xbf16, #tpu.memory_space<vmem>>, vector<128x256xbf16>
    %c0_4 = arith.constant 0 : index
    %c0_5 = arith.constant 0 : index
    %5 = vector.load %arg4[%c0_4, %c0_5] : memref<256x128xbf16, #tpu.memory_space<vmem>>, vector<256x128xbf16>
    %cst = arith.constant dense<0.000000e+00> : vector<128x128xf32>
    %6 = tpu.matmul %4, %5, %cst {dimension_numbers = #tpu.dot_dimension_numbers<[1], [0], [0], [1], [0, 0, 1, 1], [], []>} : vector<128x256xbf16>, vector<256x128xbf16>, vector<128x128xf32> -> vector<128x128xf32>
    %7 = arith.addf %3, %6 : vector<128x128xf32>
    %c0_6 = arith.constant 0 : index
    %c0_7 = arith.constant 0 : index
    %8 = vector.load %arg7[%c0_6, %c0_7] : memref<128x128xf32, #tpu.memory_space<vmem>>, vector<128x128xf32>
    tpu.vector_store %arg7[%c0_6, %c0_7], %7 {strides = array<i32>} : memref<128x128xf32, #tpu.memory_space<vmem>>, vector<128x128xf32>,
    %c0_i32_8 = arith.constant 0 : i32
    %9 = arith.cmpi eq, %arg2, %c0_i32_8 : i32
    %10 = arith.extui %9 : i1 to i32
    %c0_i32_9 = arith.constant 0 : i32
    %11 = arith.cmpi ne, %10, %c0_i32_9 : i32
    scf.if %11 {
      %c0_10 = arith.constant 0 : index
      %c0_11 = arith.constant 0 : index
      %12 = vector.load %arg7[%c0_10, %c0_11] : memref<128x128xf32, #tpu.memory_space<vmem>>, vector<128x128xf32>
      %c0_12 = arith.constant 0 : index
      %c0_13 = arith.constant 0 : index
      %13 = vector.load %arg5[%c0_12, %c0_13] : memref<1x128xf32, #tpu.memory_space<vmem>>, vector<1x128xf32>
      %14 = vector.broadcast %13 : vector<1x128xf32> to vector<128x128xf32>
      %15 = arith.addf %12, %14 : vector<128x128xf32>
      %cst_14 = arith.constant 0.000000e+00 : f32
      %16 = vector.broadcast %cst_14 : f32 to vector<128x128xf32>
      %17 = arith.maximumf %15, %16 : vector<128x128xf32>
      %c0_15 = arith.constant 0 : index
      %c0_16 = arith.constant 0 : index
      %18 = vector.load %arg6[%c0_15, %c0_16] : memref<128x128xf32, #tpu.memory_space<vmem>>, vector<128x128xf32>
      tpu.vector_store %arg6[%c0_15, %c0_16], %17 {strides = array<i32>} : memref<128x128xf32, #tpu.memory_space<vmem>>, vector<128x128xf32>,
    } else {
    }
    return
  }
  func.func @transform_0(%arg0: i32, %arg1: i32, %arg2: i32) -> (i32, i32) {
    %c0_i32 = arith.constant 0 : i32
    return %arg0, %arg2 : i32, i32
  }
  func.func @transform_1(%arg0: i32, %arg1: i32, %arg2: i32) -> (i32, i32) {
    %c0_i32 = arith.constant 0 : i32
    return %arg2, %arg1 : i32, i32
  }
  func.func @transform_2(%arg0: i32, %arg1: i32, %arg2: i32) -> (i32, i32) {
    %c0_i32 = arith.constant 0 : i32
    %c0_i32_0 = arith.constant 0 : i32
    return %c0_i32, %arg1 : i32, i32
  }
  func.func @transform_3(%arg0: i32, %arg1: i32, %arg2: i32) -> (i32, i32) {
    %c0_i32 = arith.constant 0 : i32
    return %arg0, %arg1 : i32, i32
  }
}

module attributes {stable_mosaic.version = 11 : i64} {
  func.func @_maxpool_kernel(%arg0: i32, %arg1: memref<1x5x5x64xf32, #tpu.memory_space<vmem>>, %arg2: memref<1x5x5x64xf32, #tpu.memory_space<vmem>>, %arg3: memref<1x5x5x64xf32, #tpu.memory_space<vmem>>, %arg4: memref<1x5x5x64xf32, #tpu.memory_space<vmem>>, %arg5: memref<1x4x4x64xf32, #tpu.memory_space<vmem>>) attributes {dimension_semantics = [#tpu.dimension_semantics<parallel>], iteration_bounds = array<i64: 2>, scalar_prefetch = 0 : i64, scratch_operands = 0 : i64, tpu.core_type = #tpu.core_type<tc>, window_params = [{transform_indices = @transform_0, window_bounds = array<i64: 1, 5, 5, 64>}, {transform_indices = @transform_1, window_bounds = array<i64: 1, 5, 5, 64>}, {transform_indices = @transform_2, window_bounds = array<i64: 1, 5, 5, 64>}, {transform_indices = @transform_3, window_bounds = array<i64: 1, 5, 5, 64>}, {transform_indices = @transform_4, window_bounds = array<i64: 1, 4, 4, 64>}]} {
    %c0 = arith.constant 0 : index
    %c0_0 = arith.constant 0 : index
    %c0_1 = arith.constant 0 : index
    %c0_2 = arith.constant 0 : index
    %0 = vector.load %arg1[%c0, %c0_0, %c0_1, %c0_2] : memref<1x5x5x64xf32, #tpu.memory_space<vmem>>, vector<1x4x4x64xf32>
    %1 = vector.shape_cast %0 : vector<1x4x4x64xf32> to vector<4x4x64xf32>
    %c0_3 = arith.constant 0 : index
    %c0_4 = arith.constant 0 : index
    %c0_5 = arith.constant 0 : index
    %c0_6 = arith.constant 0 : index
    %2 = vector.load %arg2[%c0_3, %c0_4, %c0_5, %c0_6] : memref<1x5x5x64xf32, #tpu.memory_space<vmem>>, vector<1x4x4x64xf32>
    %3 = vector.shape_cast %2 : vector<1x4x4x64xf32> to vector<4x4x64xf32>
    %4 = arith.maximumf %1, %3 : vector<4x4x64xf32>
    %c0_7 = arith.constant 0 : index
    %c0_8 = arith.constant 0 : index
    %c1 = arith.constant 1 : index
    %c0_9 = arith.constant 0 : index
    %5 = vector.load %arg1[%c0_7, %c0_8, %c1, %c0_9] : memref<1x5x5x64xf32, #tpu.memory_space<vmem>>, vector<1x4x4x64xf32>
    %6 = vector.shape_cast %5 : vector<1x4x4x64xf32> to vector<4x4x64xf32>
    %7 = arith.maximumf %4, %6 : vector<4x4x64xf32>
    %c0_10 = arith.constant 0 : index
    %c0_11 = arith.constant 0 : index
    %c0_12 = arith.constant 0 : index
    %c0_13 = arith.constant 0 : index
    %8 = vector.load %arg3[%c0_10, %c0_11, %c0_12, %c0_13] : memref<1x5x5x64xf32, #tpu.memory_space<vmem>>, vector<1x4x4x64xf32>
    %9 = vector.shape_cast %8 : vector<1x4x4x64xf32> to vector<4x4x64xf32>
    %10 = arith.maximumf %7, %9 : vector<4x4x64xf32>
    %c0_14 = arith.constant 0 : index
    %c0_15 = arith.constant 0 : index
    %c0_16 = arith.constant 0 : index
    %c0_17 = arith.constant 0 : index
    %11 = vector.load %arg4[%c0_14, %c0_15, %c0_16, %c0_17] : memref<1x5x5x64xf32, #tpu.memory_space<vmem>>, vector<1x4x4x64xf32>
    %12 = vector.shape_cast %11 : vector<1x4x4x64xf32> to vector<4x4x64xf32>
    %13 = arith.maximumf %10, %12 : vector<4x4x64xf32>
    %c0_18 = arith.constant 0 : index
    %c0_19 = arith.constant 0 : index
    %c1_20 = arith.constant 1 : index
    %c0_21 = arith.constant 0 : index
    %14 = vector.load %arg3[%c0_18, %c0_19, %c1_20, %c0_21] : memref<1x5x5x64xf32, #tpu.memory_space<vmem>>, vector<1x4x4x64xf32>
    %15 = vector.shape_cast %14 : vector<1x4x4x64xf32> to vector<4x4x64xf32>
    %16 = arith.maximumf %13, %15 : vector<4x4x64xf32>
    %c0_22 = arith.constant 0 : index
    %c1_23 = arith.constant 1 : index
    %c0_24 = arith.constant 0 : index
    %c0_25 = arith.constant 0 : index
    %17 = vector.load %arg1[%c0_22, %c1_23, %c0_24, %c0_25] : memref<1x5x5x64xf32, #tpu.memory_space<vmem>>, vector<1x4x4x64xf32>
    %18 = vector.shape_cast %17 : vector<1x4x4x64xf32> to vector<4x4x64xf32>
    %19 = arith.maximumf %16, %18 : vector<4x4x64xf32>
    %c0_26 = arith.constant 0 : index
    %c1_27 = arith.constant 1 : index
    %c0_28 = arith.constant 0 : index
    %c0_29 = arith.constant 0 : index
    %20 = vector.load %arg2[%c0_26, %c1_27, %c0_28, %c0_29] : memref<1x5x5x64xf32, #tpu.memory_space<vmem>>, vector<1x4x4x64xf32>
    %21 = vector.shape_cast %20 : vector<1x4x4x64xf32> to vector<4x4x64xf32>
    %22 = arith.maximumf %19, %21 : vector<4x4x64xf32>
    %c0_30 = arith.constant 0 : index
    %c1_31 = arith.constant 1 : index
    %c1_32 = arith.constant 1 : index
    %c0_33 = arith.constant 0 : index
    %23 = vector.load %arg1[%c0_30, %c1_31, %c1_32, %c0_33] : memref<1x5x5x64xf32, #tpu.memory_space<vmem>>, vector<1x4x4x64xf32>
    %24 = vector.shape_cast %23 : vector<1x4x4x64xf32> to vector<4x4x64xf32>
    %25 = arith.maximumf %22, %24 : vector<4x4x64xf32>
    %c0_34 = arith.constant 0 : index
    %c0_35 = arith.constant 0 : index
    %c0_36 = arith.constant 0 : index
    %c0_37 = arith.constant 0 : index
    %26 = vector.load %arg5[%c0_34, %c0_35, %c0_36, %c0_37] : memref<1x4x4x64xf32, #tpu.memory_space<vmem>>, vector<1x4x4x64xf32>
    %27 = vector.shape_cast %26 : vector<1x4x4x64xf32> to vector<4x4x64xf32>
    %28 = vector.shape_cast %25 : vector<4x4x64xf32> to vector<1x4x4x64xf32>
    tpu.vector_store %arg5[%c0_34, %c0_35, %c0_36, %c0_37], %28 {strides = array<i32>} : memref<1x4x4x64xf32, #tpu.memory_space<vmem>>, vector<1x4x4x64xf32>,
    return
  }
  func.func @transform_0(%arg0: i32) -> (i32, i32, i32, i32) {
    %c0_i32 = arith.constant 0 : i32
    %c0_i32_0 = arith.constant 0 : i32
    %c0_i32_1 = arith.constant 0 : i32
    %c0_i32_2 = arith.constant 0 : i32
    return %arg0, %c0_i32, %c0_i32_0, %c0_i32_1 : i32, i32, i32, i32
  }
  func.func @transform_1(%arg0: i32) -> (i32, i32, i32, i32) {
    %c0_i32 = arith.constant 0 : i32
    %c0_i32_0 = arith.constant 0 : i32
    %c0_i32_1 = arith.constant 0 : i32
    %c0_i32_2 = arith.constant 0 : i32
    return %arg0, %c0_i32, %c0_i32_0, %c0_i32_1 : i32, i32, i32, i32
  }
  func.func @transform_2(%arg0: i32) -> (i32, i32, i32, i32) {
    %c0_i32 = arith.constant 0 : i32
    %c0_i32_0 = arith.constant 0 : i32
    %c0_i32_1 = arith.constant 0 : i32
    %c0_i32_2 = arith.constant 0 : i32
    return %arg0, %c0_i32, %c0_i32_0, %c0_i32_1 : i32, i32, i32, i32
  }
  func.func @transform_3(%arg0: i32) -> (i32, i32, i32, i32) {
    %c0_i32 = arith.constant 0 : i32
    %c0_i32_0 = arith.constant 0 : i32
    %c0_i32_1 = arith.constant 0 : i32
    %c0_i32_2 = arith.constant 0 : i32
    return %arg0, %c0_i32, %c0_i32_0, %c0_i32_1 : i32, i32, i32, i32
  }
  func.func @transform_4(%arg0: i32) -> (i32, i32, i32, i32) {
    %c0_i32 = arith.constant 0 : i32
    %c0_i32_0 = arith.constant 0 : i32
    %c0_i32_1 = arith.constant 0 : i32
    %c0_i32_2 = arith.constant 0 : i32
    return %arg0, %c0_i32, %c0_i32_0, %c0_i32_1 : i32, i32, i32, i32
  }
}

module attributes {stable_mosaic.version = 11 : i64} {
  func.func @kernel(%arg0: i32, %arg1: i32, %arg2: i32, %arg3: memref<32x128xbf16, #tpu.memory_space<vmem>>, %arg4: memref<128x128xbf16, #tpu.memory_space<vmem>>, %arg5: memref<1x128xf32, #tpu.memory_space<vmem>>, %arg6: memref<32x128xf32, #tpu.memory_space<vmem>>, %arg7: memref<32x128xf32, #tpu.memory_space<vmem>>) attributes {dimension_semantics = [#tpu.dimension_semantics<parallel>, #tpu.dimension_semantics<parallel>, #tpu.dimension_semantics<arbitrary>], iteration_bounds = array<i64: 1, 1, 5>, scalar_prefetch = 0 : i64, scratch_operands = 1 : i64, tpu.core_type = #tpu.core_type<tc>, window_params = [{transform_indices = @transform_0, window_bounds = array<i64: 32, 128>}, {transform_indices = @transform_1, window_bounds = array<i64: 128, 128>}, {transform_indices = @transform_2, window_bounds = array<i64: 1, 128>}, {transform_indices = @transform_3, window_bounds = array<i64: 32, 128>}]} {
    %c0_i32 = arith.constant 0 : i32
    %0 = arith.cmpi eq, %arg2, %c0_i32 : i32
    %1 = arith.extui %0 : i1 to i32
    %c0_i32_0 = arith.constant 0 : i32
    %2 = arith.cmpi ne, %1, %c0_i32_0 : i32
    scf.if %2 {
      %cst_9 = arith.constant 0.000000e+00 : f32
      %12 = vector.broadcast %cst_9 : f32 to vector<32x128xf32>
      %c0_10 = arith.constant 0 : index
      %c0_11 = arith.constant 0 : index
      %13 = vector.load %arg7[%c0_10, %c0_11] : memref<32x128xf32, #tpu.memory_space<vmem>>, vector<32x128xf32>
      tpu.vector_store %arg7[%c0_10, %c0_11], %12 {strides = array<i32>} : memref<32x128xf32, #tpu.memory_space<vmem>>, vector<32x128xf32>,
    } else {
    }
    %c0 = arith.constant 0 : index
    %c0_1 = arith.constant 0 : index
    %3 = vector.load %arg7[%c0, %c0_1] : memref<32x128xf32, #tpu.memory_space<vmem>>, vector<32x128xf32>
    %c0_2 = arith.constant 0 : index
    %c0_3 = arith.constant 0 : index
    %4 = vector.load %arg3[%c0_2, %c0_3] : memref<32x128xbf16, #tpu.memory_space<vmem>>, vector<32x128xbf16>
    %c0_4 = arith.constant 0 : index
    %c0_5 = arith.constant 0 : index
    %5 = vector.load %arg4[%c0_4, %c0_5] : memref<128x128xbf16, #tpu.memory_space<vmem>>, vector<128x128xbf16>
    %cst = arith.constant dense<0.000000e+00> : vector<32x128xf32>
    %6 = tpu.matmul %4, %5, %cst {dimension_numbers = #tpu.dot_dimension_numbers<[1], [0], [0], [1], [0, 0, 1, 1], [], []>} : vector<32x128xbf16>, vector<128x128xbf16>, vector<32x128xf32> -> vector<32x128xf32>
    %7 = arith.addf %3, %6 : vector<32x128xf32>
    %c0_6 = arith.constant 0 : index
    %c0_7 = arith.constant 0 : index
    %8 = vector.load %arg7[%c0_6, %c0_7] : memref<32x128xf32, #tpu.memory_space<vmem>>, vector<32x128xf32>
    tpu.vector_store %arg7[%c0_6, %c0_7], %7 {strides = array<i32>} : memref<32x128xf32, #tpu.memory_space<vmem>>, vector<32x128xf32>,
    %c4_i32 = arith.constant 4 : i32
    %9 = arith.cmpi eq, %arg2, %c4_i32 : i32
    %10 = arith.extui %9 : i1 to i32
    %c0_i32_8 = arith.constant 0 : i32
    %11 = arith.cmpi ne, %10, %c0_i32_8 : i32
    scf.if %11 {
      %c0_9 = arith.constant 0 : index
      %c0_10 = arith.constant 0 : index
      %12 = vector.load %arg7[%c0_9, %c0_10] : memref<32x128xf32, #tpu.memory_space<vmem>>, vector<32x128xf32>
      %c0_11 = arith.constant 0 : index
      %c0_12 = arith.constant 0 : index
      %13 = vector.load %arg5[%c0_11, %c0_12] : memref<1x128xf32, #tpu.memory_space<vmem>>, vector<1x128xf32>
      %14 = vector.broadcast %13 : vector<1x128xf32> to vector<32x128xf32>
      %15 = arith.addf %12, %14 : vector<32x128xf32>
      %cst_13 = arith.constant 0.000000e+00 : f32
      %16 = vector.broadcast %cst_13 : f32 to vector<32x128xf32>
      %17 = arith.maximumf %15, %16 : vector<32x128xf32>
      %c0_14 = arith.constant 0 : index
      %c0_15 = arith.constant 0 : index
      %18 = vector.load %arg6[%c0_14, %c0_15] : memref<32x128xf32, #tpu.memory_space<vmem>>, vector<32x128xf32>
      tpu.vector_store %arg6[%c0_14, %c0_15], %17 {strides = array<i32>} : memref<32x128xf32, #tpu.memory_space<vmem>>, vector<32x128xf32>,
    } else {
    }
    return
  }
  func.func @transform_0(%arg0: i32, %arg1: i32, %arg2: i32) -> (i32, i32) {
    %c0_i32 = arith.constant 0 : i32
    return %arg0, %arg2 : i32, i32
  }
  func.func @transform_1(%arg0: i32, %arg1: i32, %arg2: i32) -> (i32, i32) {
    %c0_i32 = arith.constant 0 : i32
    return %arg2, %arg1 : i32, i32
  }
  func.func @transform_2(%arg0: i32, %arg1: i32, %arg2: i32) -> (i32, i32) {
    %c0_i32 = arith.constant 0 : i32
    %c0_i32_0 = arith.constant 0 : i32
    return %c0_i32, %arg1 : i32, i32
  }
  func.func @transform_3(%arg0: i32, %arg1: i32, %arg2: i32) -> (i32, i32) {
    %c0_i32 = arith.constant 0 : i32
    return %arg0, %arg1 : i32, i32
  }
}

module attributes {stable_mosaic.version = 11 : i64} {
  func.func @kernel(%arg0: i32, %arg1: i32, %arg2: i32, %arg3: memref<32x128xbf16, #tpu.memory_space<vmem>>, %arg4: memref<128x128xbf16, #tpu.memory_space<vmem>>, %arg5: memref<1x128xf32, #tpu.memory_space<vmem>>, %arg6: memref<32x128xf32, #tpu.memory_space<vmem>>, %arg7: memref<32x128xf32, #tpu.memory_space<vmem>>, %arg8: memref<32x128xf32, #tpu.memory_space<vmem>>) attributes {dimension_semantics = [#tpu.dimension_semantics<parallel>, #tpu.dimension_semantics<parallel>, #tpu.dimension_semantics<arbitrary>], iteration_bounds = array<i64: 1, 1, 5>, scalar_prefetch = 0 : i64, scratch_operands = 1 : i64, tpu.core_type = #tpu.core_type<tc>, window_params = [{transform_indices = @transform_0, window_bounds = array<i64: 32, 128>}, {transform_indices = @transform_1, window_bounds = array<i64: 128, 128>}, {transform_indices = @transform_2, window_bounds = array<i64: 1, 128>}, {transform_indices = @transform_3, window_bounds = array<i64: 32, 128>}, {transform_indices = @transform_4, window_bounds = array<i64: 32, 128>}]} {
    %c0_i32 = arith.constant 0 : i32
    %0 = arith.cmpi eq, %arg2, %c0_i32 : i32
    %1 = arith.extui %0 : i1 to i32
    %c0_i32_0 = arith.constant 0 : i32
    %2 = arith.cmpi ne, %1, %c0_i32_0 : i32
    scf.if %2 {
      %cst_9 = arith.constant 0.000000e+00 : f32
      %12 = vector.broadcast %cst_9 : f32 to vector<32x128xf32>
      %c0_10 = arith.constant 0 : index
      %c0_11 = arith.constant 0 : index
      %13 = vector.load %arg8[%c0_10, %c0_11] : memref<32x128xf32, #tpu.memory_space<vmem>>, vector<32x128xf32>
      tpu.vector_store %arg8[%c0_10, %c0_11], %12 {strides = array<i32>} : memref<32x128xf32, #tpu.memory_space<vmem>>, vector<32x128xf32>,
    } else {
    }
    %c0 = arith.constant 0 : index
    %c0_1 = arith.constant 0 : index
    %3 = vector.load %arg8[%c0, %c0_1] : memref<32x128xf32, #tpu.memory_space<vmem>>, vector<32x128xf32>
    %c0_2 = arith.constant 0 : index
    %c0_3 = arith.constant 0 : index
    %4 = vector.load %arg3[%c0_2, %c0_3] : memref<32x128xbf16, #tpu.memory_space<vmem>>, vector<32x128xbf16>
    %c0_4 = arith.constant 0 : index
    %c0_5 = arith.constant 0 : index
    %5 = vector.load %arg4[%c0_4, %c0_5] : memref<128x128xbf16, #tpu.memory_space<vmem>>, vector<128x128xbf16>
    %cst = arith.constant dense<0.000000e+00> : vector<32x128xf32>
    %6 = tpu.matmul %4, %5, %cst {dimension_numbers = #tpu.dot_dimension_numbers<[1], [0], [0], [1], [0, 0, 1, 1], [], []>} : vector<32x128xbf16>, vector<128x128xbf16>, vector<32x128xf32> -> vector<32x128xf32>
    %7 = arith.addf %3, %6 : vector<32x128xf32>
    %c0_6 = arith.constant 0 : index
    %c0_7 = arith.constant 0 : index
    %8 = vector.load %arg8[%c0_6, %c0_7] : memref<32x128xf32, #tpu.memory_space<vmem>>, vector<32x128xf32>
    tpu.vector_store %arg8[%c0_6, %c0_7], %7 {strides = array<i32>} : memref<32x128xf32, #tpu.memory_space<vmem>>, vector<32x128xf32>,
    %c4_i32 = arith.constant 4 : i32
    %9 = arith.cmpi eq, %arg2, %c4_i32 : i32
    %10 = arith.extui %9 : i1 to i32
    %c0_i32_8 = arith.constant 0 : i32
    %11 = arith.cmpi ne, %10, %c0_i32_8 : i32
    scf.if %11 {
      %c0_9 = arith.constant 0 : index
      %c0_10 = arith.constant 0 : index
      %12 = vector.load %arg8[%c0_9, %c0_10] : memref<32x128xf32, #tpu.memory_space<vmem>>, vector<32x128xf32>
      %c0_11 = arith.constant 0 : index
      %c0_12 = arith.constant 0 : index
      %13 = vector.load %arg5[%c0_11, %c0_12] : memref<1x128xf32, #tpu.memory_space<vmem>>, vector<1x128xf32>
      %14 = vector.broadcast %13 : vector<1x128xf32> to vector<32x128xf32>
      %15 = arith.addf %12, %14 : vector<32x128xf32>
      %c0_13 = arith.constant 0 : index
      %c0_14 = arith.constant 0 : index
      %16 = vector.load %arg6[%c0_13, %c0_14] : memref<32x128xf32, #tpu.memory_space<vmem>>, vector<32x128xf32>
      %17 = arith.addf %15, %16 : vector<32x128xf32>
      %cst_15 = arith.constant 0.000000e+00 : f32
      %18 = vector.broadcast %cst_15 : f32 to vector<32x128xf32>
      %19 = arith.maximumf %17, %18 : vector<32x128xf32>
      %c0_16 = arith.constant 0 : index
      %c0_17 = arith.constant 0 : index
      %20 = vector.load %arg7[%c0_16, %c0_17] : memref<32x128xf32, #tpu.memory_space<vmem>>, vector<32x128xf32>
      tpu.vector_store %arg7[%c0_16, %c0_17], %19 {strides = array<i32>} : memref<32x128xf32, #tpu.memory_space<vmem>>, vector<32x128xf32>,
    } else {
    }
    return
  }
  func.func @transform_0(%arg0: i32, %arg1: i32, %arg2: i32) -> (i32, i32) {
    %c0_i32 = arith.constant 0 : i32
    return %arg0, %arg2 : i32, i32
  }
  func.func @transform_1(%arg0: i32, %arg1: i32, %arg2: i32) -> (i32, i32) {
    %c0_i32 = arith.constant 0 : i32
    return %arg2, %arg1 : i32, i32
  }
  func.func @transform_2(%arg0: i32, %arg1: i32, %arg2: i32) -> (i32, i32) {
    %c0_i32 = arith.constant 0 : i32
    %c0_i32_0 = arith.constant 0 : i32
    return %c0_i32, %arg1 : i32, i32
  }
  func.func @transform_3(%arg0: i32, %arg1: i32, %arg2: i32) -> (i32, i32) {
    %c0_i32 = arith.constant 0 : i32
    return %arg0, %arg1 : i32, i32
  }
  func.func @transform_4(%arg0: i32, %arg1: i32, %arg2: i32) -> (i32, i32) {
    %c0_i32 = arith.constant 0 : i32
    return %arg0, %arg1 : i32, i32
  }
}

module attributes {stable_mosaic.version = 11 : i64} {
  func.func @kernel(%arg0: i32, %arg1: i32, %arg2: i32, %arg3: memref<16x128xbf16, #tpu.memory_space<vmem>>, %arg4: memref<128x128xbf16, #tpu.memory_space<vmem>>, %arg5: memref<1x128xf32, #tpu.memory_space<vmem>>, %arg6: memref<16x128xf32, #tpu.memory_space<vmem>>, %arg7: memref<16x128xf32, #tpu.memory_space<vmem>>) attributes {dimension_semantics = [#tpu.dimension_semantics<parallel>, #tpu.dimension_semantics<parallel>, #tpu.dimension_semantics<arbitrary>], iteration_bounds = array<i64: 1, 1, 5>, scalar_prefetch = 0 : i64, scratch_operands = 1 : i64, tpu.core_type = #tpu.core_type<tc>, window_params = [{transform_indices = @transform_0, window_bounds = array<i64: 16, 128>}, {transform_indices = @transform_1, window_bounds = array<i64: 128, 128>}, {transform_indices = @transform_2, window_bounds = array<i64: 1, 128>}, {transform_indices = @transform_3, window_bounds = array<i64: 16, 128>}]} {
    %c0_i32 = arith.constant 0 : i32
    %0 = arith.cmpi eq, %arg2, %c0_i32 : i32
    %1 = arith.extui %0 : i1 to i32
    %c0_i32_0 = arith.constant 0 : i32
    %2 = arith.cmpi ne, %1, %c0_i32_0 : i32
    scf.if %2 {
      %cst_9 = arith.constant 0.000000e+00 : f32
      %12 = vector.broadcast %cst_9 : f32 to vector<16x128xf32>
      %c0_10 = arith.constant 0 : index
      %c0_11 = arith.constant 0 : index
      %13 = vector.load %arg7[%c0_10, %c0_11] : memref<16x128xf32, #tpu.memory_space<vmem>>, vector<16x128xf32>
      tpu.vector_store %arg7[%c0_10, %c0_11], %12 {strides = array<i32>} : memref<16x128xf32, #tpu.memory_space<vmem>>, vector<16x128xf32>,
    } else {
    }
    %c0 = arith.constant 0 : index
    %c0_1 = arith.constant 0 : index
    %3 = vector.load %arg7[%c0, %c0_1] : memref<16x128xf32, #tpu.memory_space<vmem>>, vector<16x128xf32>
    %c0_2 = arith.constant 0 : index
    %c0_3 = arith.constant 0 : index
    %4 = vector.load %arg3[%c0_2, %c0_3] : memref<16x128xbf16, #tpu.memory_space<vmem>>, vector<16x128xbf16>
    %c0_4 = arith.constant 0 : index
    %c0_5 = arith.constant 0 : index
    %5 = vector.load %arg4[%c0_4, %c0_5] : memref<128x128xbf16, #tpu.memory_space<vmem>>, vector<128x128xbf16>
    %cst = arith.constant dense<0.000000e+00> : vector<16x128xf32>
    %6 = tpu.matmul %4, %5, %cst {dimension_numbers = #tpu.dot_dimension_numbers<[1], [0], [0], [1], [0, 0, 1, 1], [], []>} : vector<16x128xbf16>, vector<128x128xbf16>, vector<16x128xf32> -> vector<16x128xf32>
    %7 = arith.addf %3, %6 : vector<16x128xf32>
    %c0_6 = arith.constant 0 : index
    %c0_7 = arith.constant 0 : index
    %8 = vector.load %arg7[%c0_6, %c0_7] : memref<16x128xf32, #tpu.memory_space<vmem>>, vector<16x128xf32>
    tpu.vector_store %arg7[%c0_6, %c0_7], %7 {strides = array<i32>} : memref<16x128xf32, #tpu.memory_space<vmem>>, vector<16x128xf32>,
    %c4_i32 = arith.constant 4 : i32
    %9 = arith.cmpi eq, %arg2, %c4_i32 : i32
    %10 = arith.extui %9 : i1 to i32
    %c0_i32_8 = arith.constant 0 : i32
    %11 = arith.cmpi ne, %10, %c0_i32_8 : i32
    scf.if %11 {
      %c0_9 = arith.constant 0 : index
      %c0_10 = arith.constant 0 : index
      %12 = vector.load %arg7[%c0_9, %c0_10] : memref<16x128xf32, #tpu.memory_space<vmem>>, vector<16x128xf32>
      %c0_11 = arith.constant 0 : index
      %c0_12 = arith.constant 0 : index
      %13 = vector.load %arg5[%c0_11, %c0_12] : memref<1x128xf32, #tpu.memory_space<vmem>>, vector<1x128xf32>
      %14 = vector.broadcast %13 : vector<1x128xf32> to vector<16x128xf32>
      %15 = arith.addf %12, %14 : vector<16x128xf32>
      %cst_13 = arith.constant 0.000000e+00 : f32
      %16 = vector.broadcast %cst_13 : f32 to vector<16x128xf32>
      %17 = arith.maximumf %15, %16 : vector<16x128xf32>
      %c0_14 = arith.constant 0 : index
      %c0_15 = arith.constant 0 : index
      %18 = vector.load %arg6[%c0_14, %c0_15] : memref<16x128xf32, #tpu.memory_space<vmem>>, vector<16x128xf32>
      tpu.vector_store %arg6[%c0_14, %c0_15], %17 {strides = array<i32>} : memref<16x128xf32, #tpu.memory_space<vmem>>, vector<16x128xf32>,
    } else {
    }
    return
  }
  func.func @transform_0(%arg0: i32, %arg1: i32, %arg2: i32) -> (i32, i32) {
    %c0_i32 = arith.constant 0 : i32
    return %arg0, %arg2 : i32, i32
  }
  func.func @transform_1(%arg0: i32, %arg1: i32, %arg2: i32) -> (i32, i32) {
    %c0_i32 = arith.constant 0 : i32
    return %arg2, %arg1 : i32, i32
  }
  func.func @transform_2(%arg0: i32, %arg1: i32, %arg2: i32) -> (i32, i32) {
    %c0_i32 = arith.constant 0 : i32
    %c0_i32_0 = arith.constant 0 : i32
    return %c0_i32, %arg1 : i32, i32
  }
  func.func @transform_3(%arg0: i32, %arg1: i32, %arg2: i32) -> (i32, i32) {
    %c0_i32 = arith.constant 0 : i32
    return %arg0, %arg1 : i32, i32
  }
}

module attributes {stable_mosaic.version = 11 : i64} {
  func.func @kernel(%arg0: i32, %arg1: i32, %arg2: i32, %arg3: memref<16x128xbf16, #tpu.memory_space<vmem>>, %arg4: memref<128x128xbf16, #tpu.memory_space<vmem>>, %arg5: memref<1x128xf32, #tpu.memory_space<vmem>>, %arg6: memref<16x128xf32, #tpu.memory_space<vmem>>, %arg7: memref<16x128xf32, #tpu.memory_space<vmem>>) attributes {dimension_semantics = [#tpu.dimension_semantics<parallel>, #tpu.dimension_semantics<parallel>, #tpu.dimension_semantics<arbitrary>], iteration_bounds = array<i64: 1, 1, 1>, scalar_prefetch = 0 : i64, scratch_operands = 1 : i64, tpu.core_type = #tpu.core_type<tc>, window_params = [{transform_indices = @transform_0, window_bounds = array<i64: 16, 128>}, {transform_indices = @transform_1, window_bounds = array<i64: 128, 128>}, {transform_indices = @transform_2, window_bounds = array<i64: 1, 128>}, {transform_indices = @transform_3, window_bounds = array<i64: 16, 128>}]} {
    %c0_i32 = arith.constant 0 : i32
    %0 = arith.cmpi eq, %arg2, %c0_i32 : i32
    %1 = arith.extui %0 : i1 to i32
    %c0_i32_0 = arith.constant 0 : i32
    %2 = arith.cmpi ne, %1, %c0_i32_0 : i32
    scf.if %2 {
      %cst_10 = arith.constant 0.000000e+00 : f32
      %12 = vector.broadcast %cst_10 : f32 to vector<16x128xf32>
      %c0_11 = arith.constant 0 : index
      %c0_12 = arith.constant 0 : index
      %13 = vector.load %arg7[%c0_11, %c0_12] : memref<16x128xf32, #tpu.memory_space<vmem>>, vector<16x128xf32>
      tpu.vector_store %arg7[%c0_11, %c0_12], %12 {strides = array<i32>} : memref<16x128xf32, #tpu.memory_space<vmem>>, vector<16x128xf32>,
    } else {
    }
    %c0 = arith.constant 0 : index
    %c0_1 = arith.constant 0 : index
    %3 = vector.load %arg7[%c0, %c0_1] : memref<16x128xf32, #tpu.memory_space<vmem>>, vector<16x128xf32>
    %c0_2 = arith.constant 0 : index
    %c0_3 = arith.constant 0 : index
    %4 = vector.load %arg3[%c0_2, %c0_3] : memref<16x128xbf16, #tpu.memory_space<vmem>>, vector<16x128xbf16>
    %c0_4 = arith.constant 0 : index
    %c0_5 = arith.constant 0 : index
    %5 = vector.load %arg4[%c0_4, %c0_5] : memref<128x128xbf16, #tpu.memory_space<vmem>>, vector<128x128xbf16>
    %cst = arith.constant dense<0.000000e+00> : vector<16x128xf32>
    %6 = tpu.matmul %4, %5, %cst {dimension_numbers = #tpu.dot_dimension_numbers<[1], [0], [0], [1], [0, 0, 1, 1], [], []>} : vector<16x128xbf16>, vector<128x128xbf16>, vector<16x128xf32> -> vector<16x128xf32>
    %7 = arith.addf %3, %6 : vector<16x128xf32>
    %c0_6 = arith.constant 0 : index
    %c0_7 = arith.constant 0 : index
    %8 = vector.load %arg7[%c0_6, %c0_7] : memref<16x128xf32, #tpu.memory_space<vmem>>, vector<16x128xf32>
    tpu.vector_store %arg7[%c0_6, %c0_7], %7 {strides = array<i32>} : memref<16x128xf32, #tpu.memory_space<vmem>>, vector<16x128xf32>,
    %c0_i32_8 = arith.constant 0 : i32
    %9 = arith.cmpi eq, %arg2, %c0_i32_8 : i32
    %10 = arith.extui %9 : i1 to i32
    %c0_i32_9 = arith.constant 0 : i32
    %11 = arith.cmpi ne, %10, %c0_i32_9 : i32
    scf.if %11 {
      %c0_10 = arith.constant 0 : index
      %c0_11 = arith.constant 0 : index
      %12 = vector.load %arg7[%c0_10, %c0_11] : memref<16x128xf32, #tpu.memory_space<vmem>>, vector<16x128xf32>
      %c0_12 = arith.constant 0 : index
      %c0_13 = arith.constant 0 : index
      %13 = vector.load %arg5[%c0_12, %c0_13] : memref<1x128xf32, #tpu.memory_space<vmem>>, vector<1x128xf32>
      %14 = vector.broadcast %13 : vector<1x128xf32> to vector<16x128xf32>
      %15 = arith.addf %12, %14 : vector<16x128xf32>
      %c0_14 = arith.constant 0 : index
      %c0_15 = arith.constant 0 : index
      %16 = vector.load %arg6[%c0_14, %c0_15] : memref<16x128xf32, #tpu.memory_space<vmem>>, vector<16x128xf32>
      tpu.vector_store %arg6[%c0_14, %c0_15], %15 {strides = array<i32>} : memref<16x128xf32, #tpu.memory_space<vmem>>, vector<16x128xf32>,
    } else {
    }
    return
  }
  func.func @transform_0(%arg0: i32, %arg1: i32, %arg2: i32) -> (i32, i32) {
    %c0_i32 = arith.constant 0 : i32
    return %arg0, %arg2 : i32, i32
  }
  func.func @transform_1(%arg0: i32, %arg1: i32, %arg2: i32) -> (i32, i32) {
    %c0_i32 = arith.constant 0 : i32
    return %arg2, %arg1 : i32, i32
  }
  func.func @transform_2(%arg0: i32, %arg1: i32, %arg2: i32) -> (i32, i32) {
    %c0_i32 = arith.constant 0 : i32
    %c0_i32_0 = arith.constant 0 : i32
    return %c0_i32, %arg1 : i32, i32
  }
  func.func @transform_3(%arg0: i32, %arg1: i32, %arg2: i32) -> (i32, i32) {
    %c0_i32 = arith.constant 0 : i32
    return %arg0, %arg1 : i32, i32
  }
}

module attributes {stable_mosaic.version = 11 : i64} {
  func.func @kernel(%arg0: i32, %arg1: i32, %arg2: i32, %arg3: memref<16x384xbf16, #tpu.memory_space<vmem>>, %arg4: memref<384x128xbf16, #tpu.memory_space<vmem>>, %arg5: memref<1x128xf32, #tpu.memory_space<vmem>>, %arg6: memref<16x128xf32, #tpu.memory_space<vmem>>, %arg7: memref<16x128xf32, #tpu.memory_space<vmem>>, %arg8: memref<16x128xf32, #tpu.memory_space<vmem>>) attributes {dimension_semantics = [#tpu.dimension_semantics<parallel>, #tpu.dimension_semantics<parallel>, #tpu.dimension_semantics<arbitrary>], iteration_bounds = array<i64: 1, 1, 3>, scalar_prefetch = 0 : i64, scratch_operands = 1 : i64, tpu.core_type = #tpu.core_type<tc>, window_params = [{transform_indices = @transform_0, window_bounds = array<i64: 16, 384>}, {transform_indices = @transform_1, window_bounds = array<i64: 384, 128>}, {transform_indices = @transform_2, window_bounds = array<i64: 1, 128>}, {transform_indices = @transform_3, window_bounds = array<i64: 16, 128>}, {transform_indices = @transform_4, window_bounds = array<i64: 16, 128>}]} {
    %c0_i32 = arith.constant 0 : i32
    %0 = arith.cmpi eq, %arg2, %c0_i32 : i32
    %1 = arith.extui %0 : i1 to i32
    %c0_i32_0 = arith.constant 0 : i32
    %2 = arith.cmpi ne, %1, %c0_i32_0 : i32
    scf.if %2 {
      %cst_9 = arith.constant 0.000000e+00 : f32
      %12 = vector.broadcast %cst_9 : f32 to vector<16x128xf32>
      %c0_10 = arith.constant 0 : index
      %c0_11 = arith.constant 0 : index
      %13 = vector.load %arg8[%c0_10, %c0_11] : memref<16x128xf32, #tpu.memory_space<vmem>>, vector<16x128xf32>
      tpu.vector_store %arg8[%c0_10, %c0_11], %12 {strides = array<i32>} : memref<16x128xf32, #tpu.memory_space<vmem>>, vector<16x128xf32>,
    } else {
    }
    %c0 = arith.constant 0 : index
    %c0_1 = arith.constant 0 : index
    %3 = vector.load %arg8[%c0, %c0_1] : memref<16x128xf32, #tpu.memory_space<vmem>>, vector<16x128xf32>
    %c0_2 = arith.constant 0 : index
    %c0_3 = arith.constant 0 : index
    %4 = vector.load %arg3[%c0_2, %c0_3] : memref<16x384xbf16, #tpu.memory_space<vmem>>, vector<16x384xbf16>
    %c0_4 = arith.constant 0 : index
    %c0_5 = arith.constant 0 : index
    %5 = vector.load %arg4[%c0_4, %c0_5] : memref<384x128xbf16, #tpu.memory_space<vmem>>, vector<384x128xbf16>
    %cst = arith.constant dense<0.000000e+00> : vector<16x128xf32>
    %6 = tpu.matmul %4, %5, %cst {dimension_numbers = #tpu.dot_dimension_numbers<[1], [0], [0], [1], [0, 0, 1, 1], [], []>} : vector<16x384xbf16>, vector<384x128xbf16>, vector<16x128xf32> -> vector<16x128xf32>
    %7 = arith.addf %3, %6 : vector<16x128xf32>
    %c0_6 = arith.constant 0 : index
    %c0_7 = arith.constant 0 : index
    %8 = vector.load %arg8[%c0_6, %c0_7] : memref<16x128xf32, #tpu.memory_space<vmem>>, vector<16x128xf32>
    tpu.vector_store %arg8[%c0_6, %c0_7], %7 {strides = array<i32>} : memref<16x128xf32, #tpu.memory_space<vmem>>, vector<16x128xf32>,
    %c2_i32 = arith.constant 2 : i32
    %9 = arith.cmpi eq, %arg2, %c2_i32 : i32
    %10 = arith.extui %9 : i1 to i32
    %c0_i32_8 = arith.constant 0 : i32
    %11 = arith.cmpi ne, %10, %c0_i32_8 : i32
    scf.if %11 {
      %c0_9 = arith.constant 0 : index
      %c0_10 = arith.constant 0 : index
      %12 = vector.load %arg8[%c0_9, %c0_10] : memref<16x128xf32, #tpu.memory_space<vmem>>, vector<16x128xf32>
      %c0_11 = arith.constant 0 : index
      %c0_12 = arith.constant 0 : index
      %13 = vector.load %arg5[%c0_11, %c0_12] : memref<1x128xf32, #tpu.memory_space<vmem>>, vector<1x128xf32>
      %14 = vector.broadcast %13 : vector<1x128xf32> to vector<16x128xf32>
      %15 = arith.addf %12, %14 : vector<16x128xf32>
      %c0_13 = arith.constant 0 : index
      %c0_14 = arith.constant 0 : index
      %16 = vector.load %arg6[%c0_13, %c0_14] : memref<16x128xf32, #tpu.memory_space<vmem>>, vector<16x128xf32>
      %17 = arith.addf %15, %16 : vector<16x128xf32>
      %cst_15 = arith.constant 0.000000e+00 : f32
      %18 = vector.broadcast %cst_15 : f32 to vector<16x128xf32>
      %19 = arith.maximumf %17, %18 : vector<16x128xf32>
      %c0_16 = arith.constant 0 : index
      %c0_17 = arith.constant 0 : index
      %20 = vector.load %arg7[%c0_16, %c0_17] : memref<16x128xf32, #tpu.memory_space<vmem>>, vector<16x128xf32>
      tpu.vector_store %arg7[%c0_16, %c0_17], %19 {strides = array<i32>} : memref<16x128xf32, #tpu.memory_space<vmem>>, vector<16x128xf32>,
    } else {
    }
    return
  }
  func.func @transform_0(%arg0: i32, %arg1: i32, %arg2: i32) -> (i32, i32) {
    %c0_i32 = arith.constant 0 : i32
    return %arg0, %arg2 : i32, i32
  }
  func.func @transform_1(%arg0: i32, %arg1: i32, %arg2: i32) -> (i32, i32) {
    %c0_i32 = arith.constant 0 : i32
    return %arg2, %arg1 : i32, i32
  }
  func.func @transform_2(%arg0: i32, %arg1: i32, %arg2: i32) -> (i32, i32) {
    %c0_i32 = arith.constant 0 : i32
    %c0_i32_0 = arith.constant 0 : i32
    return %c0_i32, %arg1 : i32, i32
  }
  func.func @transform_3(%arg0: i32, %arg1: i32, %arg2: i32) -> (i32, i32) {
    %c0_i32 = arith.constant 0 : i32
    return %arg0, %arg1 : i32, i32
  }
  func.func @transform_4(%arg0: i32, %arg1: i32, %arg2: i32) -> (i32, i32) {
    %c0_i32 = arith.constant 0 : i32
    return %arg0, %arg1 : i32, i32
  }
}

module attributes {stable_mosaic.version = 11 : i64} {
  func.func @kernel(%arg0: i32, %arg1: i32, %arg2: i32, %arg3: memref<16x384xbf16, #tpu.memory_space<vmem>>, %arg4: memref<384x256xbf16, #tpu.memory_space<vmem>>, %arg5: memref<1x256xf32, #tpu.memory_space<vmem>>, %arg6: memref<16x256xf32, #tpu.memory_space<vmem>>, %arg7: memref<16x256xf32, #tpu.memory_space<vmem>>) attributes {dimension_semantics = [#tpu.dimension_semantics<parallel>, #tpu.dimension_semantics<parallel>, #tpu.dimension_semantics<arbitrary>], iteration_bounds = array<i64: 1, 1, 3>, scalar_prefetch = 0 : i64, scratch_operands = 1 : i64, tpu.core_type = #tpu.core_type<tc>, window_params = [{transform_indices = @transform_0, window_bounds = array<i64: 16, 384>}, {transform_indices = @transform_1, window_bounds = array<i64: 384, 256>}, {transform_indices = @transform_2, window_bounds = array<i64: 1, 256>}, {transform_indices = @transform_3, window_bounds = array<i64: 16, 256>}]} {
    %c0_i32 = arith.constant 0 : i32
    %0 = arith.cmpi eq, %arg2, %c0_i32 : i32
    %1 = arith.extui %0 : i1 to i32
    %c0_i32_0 = arith.constant 0 : i32
    %2 = arith.cmpi ne, %1, %c0_i32_0 : i32
    scf.if %2 {
      %cst_9 = arith.constant 0.000000e+00 : f32
      %12 = vector.broadcast %cst_9 : f32 to vector<16x256xf32>
      %c0_10 = arith.constant 0 : index
      %c0_11 = arith.constant 0 : index
      %13 = vector.load %arg7[%c0_10, %c0_11] : memref<16x256xf32, #tpu.memory_space<vmem>>, vector<16x256xf32>
      tpu.vector_store %arg7[%c0_10, %c0_11], %12 {strides = array<i32>} : memref<16x256xf32, #tpu.memory_space<vmem>>, vector<16x256xf32>,
    } else {
    }
    %c0 = arith.constant 0 : index
    %c0_1 = arith.constant 0 : index
    %3 = vector.load %arg7[%c0, %c0_1] : memref<16x256xf32, #tpu.memory_space<vmem>>, vector<16x256xf32>
    %c0_2 = arith.constant 0 : index
    %c0_3 = arith.constant 0 : index
    %4 = vector.load %arg3[%c0_2, %c0_3] : memref<16x384xbf16, #tpu.memory_space<vmem>>, vector<16x384xbf16>
    %c0_4 = arith.constant 0 : index
    %c0_5 = arith.constant 0 : index
    %5 = vector.load %arg4[%c0_4, %c0_5] : memref<384x256xbf16, #tpu.memory_space<vmem>>, vector<384x256xbf16>
    %cst = arith.constant dense<0.000000e+00> : vector<16x256xf32>
    %6 = tpu.matmul %4, %5, %cst {dimension_numbers = #tpu.dot_dimension_numbers<[1], [0], [0], [1], [0, 0, 1, 1], [], []>} : vector<16x384xbf16>, vector<384x256xbf16>, vector<16x256xf32> -> vector<16x256xf32>
    %7 = arith.addf %3, %6 : vector<16x256xf32>
    %c0_6 = arith.constant 0 : index
    %c0_7 = arith.constant 0 : index
    %8 = vector.load %arg7[%c0_6, %c0_7] : memref<16x256xf32, #tpu.memory_space<vmem>>, vector<16x256xf32>
    tpu.vector_store %arg7[%c0_6, %c0_7], %7 {strides = array<i32>} : memref<16x256xf32, #tpu.memory_space<vmem>>, vector<16x256xf32>,
    %c2_i32 = arith.constant 2 : i32
    %9 = arith.cmpi eq, %arg2, %c2_i32 : i32
    %10 = arith.extui %9 : i1 to i32
    %c0_i32_8 = arith.constant 0 : i32
    %11 = arith.cmpi ne, %10, %c0_i32_8 : i32
    scf.if %11 {
      %c0_9 = arith.constant 0 : index
      %c0_10 = arith.constant 0 : index
      %12 = vector.load %arg7[%c0_9, %c0_10] : memref<16x256xf32, #tpu.memory_space<vmem>>, vector<16x256xf32>
      %c0_11 = arith.constant 0 : index
      %c0_12 = arith.constant 0 : index
      %13 = vector.load %arg5[%c0_11, %c0_12] : memref<1x256xf32, #tpu.memory_space<vmem>>, vector<1x256xf32>
      %14 = vector.broadcast %13 : vector<1x256xf32> to vector<16x256xf32>
      %15 = arith.addf %12, %14 : vector<16x256xf32>
      %cst_13 = arith.constant 0.000000e+00 : f32
      %16 = vector.broadcast %cst_13 : f32 to vector<16x256xf32>
      %17 = arith.maximumf %15, %16 : vector<16x256xf32>
      %c0_14 = arith.constant 0 : index
      %c0_15 = arith.constant 0 : index
      %18 = vector.load %arg6[%c0_14, %c0_15] : memref<16x256xf32, #tpu.memory_space<vmem>>, vector<16x256xf32>
      tpu.vector_store %arg6[%c0_14, %c0_15], %17 {strides = array<i32>} : memref<16x256xf32, #tpu.memory_space<vmem>>, vector<16x256xf32>,
    } else {
    }
    return
  }
  func.func @transform_0(%arg0: i32, %arg1: i32, %arg2: i32) -> (i32, i32) {
    %c0_i32 = arith.constant 0 : i32
    return %arg0, %arg2 : i32, i32
  }
  func.func @transform_1(%arg0: i32, %arg1: i32, %arg2: i32) -> (i32, i32) {
    %c0_i32 = arith.constant 0 : i32
    return %arg2, %arg1 : i32, i32
  }
  func.func @transform_2(%arg0: i32, %arg1: i32, %arg2: i32) -> (i32, i32) {
    %c0_i32 = arith.constant 0 : i32
    %c0_i32_0 = arith.constant 0 : i32
    return %c0_i32, %arg1 : i32, i32
  }
  func.func @transform_3(%arg0: i32, %arg1: i32, %arg2: i32) -> (i32, i32) {
    %c0_i32 = arith.constant 0 : i32
    return %arg0, %arg1 : i32, i32
  }
}

module attributes {stable_mosaic.version = 11 : i64} {
  func.func @kernel(%arg0: i32, %arg1: i32, %arg2: i32, %arg3: memref<16x128xbf16, #tpu.memory_space<vmem>>, %arg4: memref<128x256xbf16, #tpu.memory_space<vmem>>, %arg5: memref<1x256xf32, #tpu.memory_space<vmem>>, %arg6: memref<16x256xf32, #tpu.memory_space<vmem>>, %arg7: memref<16x256xf32, #tpu.memory_space<vmem>>) attributes {dimension_semantics = [#tpu.dimension_semantics<parallel>, #tpu.dimension_semantics<parallel>, #tpu.dimension_semantics<arbitrary>], iteration_bounds = array<i64: 1, 1, 1>, scalar_prefetch = 0 : i64, scratch_operands = 1 : i64, tpu.core_type = #tpu.core_type<tc>, window_params = [{transform_indices = @transform_0, window_bounds = array<i64: 16, 128>}, {transform_indices = @transform_1, window_bounds = array<i64: 128, 256>}, {transform_indices = @transform_2, window_bounds = array<i64: 1, 256>}, {transform_indices = @transform_3, window_bounds = array<i64: 16, 256>}]} {
    %c0_i32 = arith.constant 0 : i32
    %0 = arith.cmpi eq, %arg2, %c0_i32 : i32
    %1 = arith.extui %0 : i1 to i32
    %c0_i32_0 = arith.constant 0 : i32
    %2 = arith.cmpi ne, %1, %c0_i32_0 : i32
    scf.if %2 {
      %cst_10 = arith.constant 0.000000e+00 : f32
      %12 = vector.broadcast %cst_10 : f32 to vector<16x256xf32>
      %c0_11 = arith.constant 0 : index
      %c0_12 = arith.constant 0 : index
      %13 = vector.load %arg7[%c0_11, %c0_12] : memref<16x256xf32, #tpu.memory_space<vmem>>, vector<16x256xf32>
      tpu.vector_store %arg7[%c0_11, %c0_12], %12 {strides = array<i32>} : memref<16x256xf32, #tpu.memory_space<vmem>>, vector<16x256xf32>,
    } else {
    }
    %c0 = arith.constant 0 : index
    %c0_1 = arith.constant 0 : index
    %3 = vector.load %arg7[%c0, %c0_1] : memref<16x256xf32, #tpu.memory_space<vmem>>, vector<16x256xf32>
    %c0_2 = arith.constant 0 : index
    %c0_3 = arith.constant 0 : index
    %4 = vector.load %arg3[%c0_2, %c0_3] : memref<16x128xbf16, #tpu.memory_space<vmem>>, vector<16x128xbf16>
    %c0_4 = arith.constant 0 : index
    %c0_5 = arith.constant 0 : index
    %5 = vector.load %arg4[%c0_4, %c0_5] : memref<128x256xbf16, #tpu.memory_space<vmem>>, vector<128x256xbf16>
    %cst = arith.constant dense<0.000000e+00> : vector<16x256xf32>
    %6 = tpu.matmul %4, %5, %cst {dimension_numbers = #tpu.dot_dimension_numbers<[1], [0], [0], [1], [0, 0, 1, 1], [], []>} : vector<16x128xbf16>, vector<128x256xbf16>, vector<16x256xf32> -> vector<16x256xf32>
    %7 = arith.addf %3, %6 : vector<16x256xf32>
    %c0_6 = arith.constant 0 : index
    %c0_7 = arith.constant 0 : index
    %8 = vector.load %arg7[%c0_6, %c0_7] : memref<16x256xf32, #tpu.memory_space<vmem>>, vector<16x256xf32>
    tpu.vector_store %arg7[%c0_6, %c0_7], %7 {strides = array<i32>} : memref<16x256xf32, #tpu.memory_space<vmem>>, vector<16x256xf32>,
    %c0_i32_8 = arith.constant 0 : i32
    %9 = arith.cmpi eq, %arg2, %c0_i32_8 : i32
    %10 = arith.extui %9 : i1 to i32
    %c0_i32_9 = arith.constant 0 : i32
    %11 = arith.cmpi ne, %10, %c0_i32_9 : i32
    scf.if %11 {
      %c0_10 = arith.constant 0 : index
      %c0_11 = arith.constant 0 : index
      %12 = vector.load %arg7[%c0_10, %c0_11] : memref<16x256xf32, #tpu.memory_space<vmem>>, vector<16x256xf32>
      %c0_12 = arith.constant 0 : index
      %c0_13 = arith.constant 0 : index
      %13 = vector.load %arg5[%c0_12, %c0_13] : memref<1x256xf32, #tpu.memory_space<vmem>>, vector<1x256xf32>
      %14 = vector.broadcast %13 : vector<1x256xf32> to vector<16x256xf32>
      %15 = arith.addf %12, %14 : vector<16x256xf32>
      %c0_14 = arith.constant 0 : index
      %c0_15 = arith.constant 0 : index
      %16 = vector.load %arg6[%c0_14, %c0_15] : memref<16x256xf32, #tpu.memory_space<vmem>>, vector<16x256xf32>
      tpu.vector_store %arg6[%c0_14, %c0_15], %15 {strides = array<i32>} : memref<16x256xf32, #tpu.memory_space<vmem>>, vector<16x256xf32>,
    } else {
    }
    return
  }
  func.func @transform_0(%arg0: i32, %arg1: i32, %arg2: i32) -> (i32, i32) {
    %c0_i32 = arith.constant 0 : i32
    return %arg0, %arg2 : i32, i32
  }
  func.func @transform_1(%arg0: i32, %arg1: i32, %arg2: i32) -> (i32, i32) {
    %c0_i32 = arith.constant 0 : i32
    return %arg2, %arg1 : i32, i32
  }
  func.func @transform_2(%arg0: i32, %arg1: i32, %arg2: i32) -> (i32, i32) {
    %c0_i32 = arith.constant 0 : i32
    %c0_i32_0 = arith.constant 0 : i32
    return %c0_i32, %arg1 : i32, i32
  }
  func.func @transform_3(%arg0: i32, %arg1: i32, %arg2: i32) -> (i32, i32) {
    %c0_i32 = arith.constant 0 : i32
    return %arg0, %arg1 : i32, i32
  }
}

module attributes {stable_mosaic.version = 11 : i64} {
  func.func @kernel(%arg0: i32, %arg1: i32, %arg2: i32, %arg3: memref<16x384xbf16, #tpu.memory_space<vmem>>, %arg4: memref<384x256xbf16, #tpu.memory_space<vmem>>, %arg5: memref<1x256xf32, #tpu.memory_space<vmem>>, %arg6: memref<16x256xf32, #tpu.memory_space<vmem>>, %arg7: memref<16x256xf32, #tpu.memory_space<vmem>>, %arg8: memref<16x256xf32, #tpu.memory_space<vmem>>) attributes {dimension_semantics = [#tpu.dimension_semantics<parallel>, #tpu.dimension_semantics<parallel>, #tpu.dimension_semantics<arbitrary>], iteration_bounds = array<i64: 1, 1, 6>, scalar_prefetch = 0 : i64, scratch_operands = 1 : i64, tpu.core_type = #tpu.core_type<tc>, window_params = [{transform_indices = @transform_0, window_bounds = array<i64: 16, 384>}, {transform_indices = @transform_1, window_bounds = array<i64: 384, 256>}, {transform_indices = @transform_2, window_bounds = array<i64: 1, 256>}, {transform_indices = @transform_3, window_bounds = array<i64: 16, 256>}, {transform_indices = @transform_4, window_bounds = array<i64: 16, 256>}]} {
    %c0_i32 = arith.constant 0 : i32
    %0 = arith.cmpi eq, %arg2, %c0_i32 : i32
    %1 = arith.extui %0 : i1 to i32
    %c0_i32_0 = arith.constant 0 : i32
    %2 = arith.cmpi ne, %1, %c0_i32_0 : i32
    scf.if %2 {
      %cst_9 = arith.constant 0.000000e+00 : f32
      %12 = vector.broadcast %cst_9 : f32 to vector<16x256xf32>
      %c0_10 = arith.constant 0 : index
      %c0_11 = arith.constant 0 : index
      %13 = vector.load %arg8[%c0_10, %c0_11] : memref<16x256xf32, #tpu.memory_space<vmem>>, vector<16x256xf32>
      tpu.vector_store %arg8[%c0_10, %c0_11], %12 {strides = array<i32>} : memref<16x256xf32, #tpu.memory_space<vmem>>, vector<16x256xf32>,
    } else {
    }
    %c0 = arith.constant 0 : index
    %c0_1 = arith.constant 0 : index
    %3 = vector.load %arg8[%c0, %c0_1] : memref<16x256xf32, #tpu.memory_space<vmem>>, vector<16x256xf32>
    %c0_2 = arith.constant 0 : index
    %c0_3 = arith.constant 0 : index
    %4 = vector.load %arg3[%c0_2, %c0_3] : memref<16x384xbf16, #tpu.memory_space<vmem>>, vector<16x384xbf16>
    %c0_4 = arith.constant 0 : index
    %c0_5 = arith.constant 0 : index
    %5 = vector.load %arg4[%c0_4, %c0_5] : memref<384x256xbf16, #tpu.memory_space<vmem>>, vector<384x256xbf16>
    %cst = arith.constant dense<0.000000e+00> : vector<16x256xf32>
    %6 = tpu.matmul %4, %5, %cst {dimension_numbers = #tpu.dot_dimension_numbers<[1], [0], [0], [1], [0, 0, 1, 1], [], []>} : vector<16x384xbf16>, vector<384x256xbf16>, vector<16x256xf32> -> vector<16x256xf32>
    %7 = arith.addf %3, %6 : vector<16x256xf32>
    %c0_6 = arith.constant 0 : index
    %c0_7 = arith.constant 0 : index
    %8 = vector.load %arg8[%c0_6, %c0_7] : memref<16x256xf32, #tpu.memory_space<vmem>>, vector<16x256xf32>
    tpu.vector_store %arg8[%c0_6, %c0_7], %7 {strides = array<i32>} : memref<16x256xf32, #tpu.memory_space<vmem>>, vector<16x256xf32>,
    %c5_i32 = arith.constant 5 : i32
    %9 = arith.cmpi eq, %arg2, %c5_i32 : i32
    %10 = arith.extui %9 : i1 to i32
    %c0_i32_8 = arith.constant 0 : i32
    %11 = arith.cmpi ne, %10, %c0_i32_8 : i32
    scf.if %11 {
      %c0_9 = arith.constant 0 : index
      %c0_10 = arith.constant 0 : index
      %12 = vector.load %arg8[%c0_9, %c0_10] : memref<16x256xf32, #tpu.memory_space<vmem>>, vector<16x256xf32>
      %c0_11 = arith.constant 0 : index
      %c0_12 = arith.constant 0 : index
      %13 = vector.load %arg5[%c0_11, %c0_12] : memref<1x256xf32, #tpu.memory_space<vmem>>, vector<1x256xf32>
      %14 = vector.broadcast %13 : vector<1x256xf32> to vector<16x256xf32>
      %15 = arith.addf %12, %14 : vector<16x256xf32>
      %c0_13 = arith.constant 0 : index
      %c0_14 = arith.constant 0 : index
      %16 = vector.load %arg6[%c0_13, %c0_14] : memref<16x256xf32, #tpu.memory_space<vmem>>, vector<16x256xf32>
      %17 = arith.addf %15, %16 : vector<16x256xf32>
      %cst_15 = arith.constant 0.000000e+00 : f32
      %18 = vector.broadcast %cst_15 : f32 to vector<16x256xf32>
      %19 = arith.maximumf %17, %18 : vector<16x256xf32>
      %c0_16 = arith.constant 0 : index
      %c0_17 = arith.constant 0 : index
      %20 = vector.load %arg7[%c0_16, %c0_17] : memref<16x256xf32, #tpu.memory_space<vmem>>, vector<16x256xf32>
      tpu.vector_store %arg7[%c0_16, %c0_17], %19 {strides = array<i32>} : memref<16x256xf32, #tpu.memory_space<vmem>>, vector<16x256xf32>,
    } else {
    }
    return
  }
  func.func @transform_0(%arg0: i32, %arg1: i32, %arg2: i32) -> (i32, i32) {
    %c0_i32 = arith.constant 0 : i32
    return %arg0, %arg2 : i32, i32
  }
  func.func @transform_1(%arg0: i32, %arg1: i32, %arg2: i32) -> (i32, i32) {
    %c0_i32 = arith.constant 0 : i32
    return %arg2, %arg1 : i32, i32
  }
  func.func @transform_2(%arg0: i32, %arg1: i32, %arg2: i32) -> (i32, i32) {
    %c0_i32 = arith.constant 0 : i32
    %c0_i32_0 = arith.constant 0 : i32
    return %c0_i32, %arg1 : i32, i32
  }
  func.func @transform_3(%arg0: i32, %arg1: i32, %arg2: i32) -> (i32, i32) {
    %c0_i32 = arith.constant 0 : i32
    return %arg0, %arg1 : i32, i32
  }
  func.func @transform_4(%arg0: i32, %arg1: i32, %arg2: i32) -> (i32, i32) {
    %c0_i32 = arith.constant 0 : i32
    return %arg0, %arg1 : i32, i32
  }
}

module attributes {stable_mosaic.version = 11 : i64} {
  func.func @kernel(%arg0: i32, %arg1: i32, %arg2: i32, %arg3: memref<16x384xbf16, #tpu.memory_space<vmem>>, %arg4: memref<384x256xbf16, #tpu.memory_space<vmem>>, %arg5: memref<1x256xf32, #tpu.memory_space<vmem>>, %arg6: memref<16x256xf32, #tpu.memory_space<vmem>>, %arg7: memref<16x256xf32, #tpu.memory_space<vmem>>) attributes {dimension_semantics = [#tpu.dimension_semantics<parallel>, #tpu.dimension_semantics<parallel>, #tpu.dimension_semantics<arbitrary>], iteration_bounds = array<i64: 1, 2, 6>, scalar_prefetch = 0 : i64, scratch_operands = 1 : i64, tpu.core_type = #tpu.core_type<tc>, window_params = [{transform_indices = @transform_0, window_bounds = array<i64: 16, 384>}, {transform_indices = @transform_1, window_bounds = array<i64: 384, 256>}, {transform_indices = @transform_2, window_bounds = array<i64: 1, 256>}, {transform_indices = @transform_3, window_bounds = array<i64: 16, 256>}]} {
    %c0_i32 = arith.constant 0 : i32
    %0 = arith.cmpi eq, %arg2, %c0_i32 : i32
    %1 = arith.extui %0 : i1 to i32
    %c0_i32_0 = arith.constant 0 : i32
    %2 = arith.cmpi ne, %1, %c0_i32_0 : i32
    scf.if %2 {
      %cst_9 = arith.constant 0.000000e+00 : f32
      %12 = vector.broadcast %cst_9 : f32 to vector<16x256xf32>
      %c0_10 = arith.constant 0 : index
      %c0_11 = arith.constant 0 : index
      %13 = vector.load %arg7[%c0_10, %c0_11] : memref<16x256xf32, #tpu.memory_space<vmem>>, vector<16x256xf32>
      tpu.vector_store %arg7[%c0_10, %c0_11], %12 {strides = array<i32>} : memref<16x256xf32, #tpu.memory_space<vmem>>, vector<16x256xf32>,
    } else {
    }
    %c0 = arith.constant 0 : index
    %c0_1 = arith.constant 0 : index
    %3 = vector.load %arg7[%c0, %c0_1] : memref<16x256xf32, #tpu.memory_space<vmem>>, vector<16x256xf32>
    %c0_2 = arith.constant 0 : index
    %c0_3 = arith.constant 0 : index
    %4 = vector.load %arg3[%c0_2, %c0_3] : memref<16x384xbf16, #tpu.memory_space<vmem>>, vector<16x384xbf16>
    %c0_4 = arith.constant 0 : index
    %c0_5 = arith.constant 0 : index
    %5 = vector.load %arg4[%c0_4, %c0_5] : memref<384x256xbf16, #tpu.memory_space<vmem>>, vector<384x256xbf16>
    %cst = arith.constant dense<0.000000e+00> : vector<16x256xf32>
    %6 = tpu.matmul %4, %5, %cst {dimension_numbers = #tpu.dot_dimension_numbers<[1], [0], [0], [1], [0, 0, 1, 1], [], []>} : vector<16x384xbf16>, vector<384x256xbf16>, vector<16x256xf32> -> vector<16x256xf32>
    %7 = arith.addf %3, %6 : vector<16x256xf32>
    %c0_6 = arith.constant 0 : index
    %c0_7 = arith.constant 0 : index
    %8 = vector.load %arg7[%c0_6, %c0_7] : memref<16x256xf32, #tpu.memory_space<vmem>>, vector<16x256xf32>
    tpu.vector_store %arg7[%c0_6, %c0_7], %7 {strides = array<i32>} : memref<16x256xf32, #tpu.memory_space<vmem>>, vector<16x256xf32>,
    %c5_i32 = arith.constant 5 : i32
    %9 = arith.cmpi eq, %arg2, %c5_i32 : i32
    %10 = arith.extui %9 : i1 to i32
    %c0_i32_8 = arith.constant 0 : i32
    %11 = arith.cmpi ne, %10, %c0_i32_8 : i32
    scf.if %11 {
      %c0_9 = arith.constant 0 : index
      %c0_10 = arith.constant 0 : index
      %12 = vector.load %arg7[%c0_9, %c0_10] : memref<16x256xf32, #tpu.memory_space<vmem>>, vector<16x256xf32>
      %c0_11 = arith.constant 0 : index
      %c0_12 = arith.constant 0 : index
      %13 = vector.load %arg5[%c0_11, %c0_12] : memref<1x256xf32, #tpu.memory_space<vmem>>, vector<1x256xf32>
      %14 = vector.broadcast %13 : vector<1x256xf32> to vector<16x256xf32>
      %15 = arith.addf %12, %14 : vector<16x256xf32>
      %cst_13 = arith.constant 0.000000e+00 : f32
      %16 = vector.broadcast %cst_13 : f32 to vector<16x256xf32>
      %17 = arith.maximumf %15, %16 : vector<16x256xf32>
      %c0_14 = arith.constant 0 : index
      %c0_15 = arith.constant 0 : index
      %18 = vector.load %arg6[%c0_14, %c0_15] : memref<16x256xf32, #tpu.memory_space<vmem>>, vector<16x256xf32>
      tpu.vector_store %arg6[%c0_14, %c0_15], %17 {strides = array<i32>} : memref<16x256xf32, #tpu.memory_space<vmem>>, vector<16x256xf32>,
    } else {
    }
    return
  }
  func.func @transform_0(%arg0: i32, %arg1: i32, %arg2: i32) -> (i32, i32) {
    %c0_i32 = arith.constant 0 : i32
    return %arg0, %arg2 : i32, i32
  }
  func.func @transform_1(%arg0: i32, %arg1: i32, %arg2: i32) -> (i32, i32) {
    %c0_i32 = arith.constant 0 : i32
    return %arg2, %arg1 : i32, i32
  }
  func.func @transform_2(%arg0: i32, %arg1: i32, %arg2: i32) -> (i32, i32) {
    %c0_i32 = arith.constant 0 : i32
    %c0_i32_0 = arith.constant 0 : i32
    return %c0_i32, %arg1 : i32, i32
  }
  func.func @transform_3(%arg0: i32, %arg1: i32, %arg2: i32) -> (i32, i32) {
    %c0_i32 = arith.constant 0 : i32
    return %arg0, %arg1 : i32, i32
  }
}

module attributes {stable_mosaic.version = 11 : i64} {
  func.func @kernel(%arg0: i32, %arg1: i32, %arg2: i32, %arg3: memref<16x256xbf16, #tpu.memory_space<vmem>>, %arg4: memref<256x256xbf16, #tpu.memory_space<vmem>>, %arg5: memref<1x256xf32, #tpu.memory_space<vmem>>, %arg6: memref<16x256xf32, #tpu.memory_space<vmem>>, %arg7: memref<16x256xf32, #tpu.memory_space<vmem>>) attributes {dimension_semantics = [#tpu.dimension_semantics<parallel>, #tpu.dimension_semantics<parallel>, #tpu.dimension_semantics<arbitrary>], iteration_bounds = array<i64: 1, 2, 1>, scalar_prefetch = 0 : i64, scratch_operands = 1 : i64, tpu.core_type = #tpu.core_type<tc>, window_params = [{transform_indices = @transform_0, window_bounds = array<i64: 16, 256>}, {transform_indices = @transform_1, window_bounds = array<i64: 256, 256>}, {transform_indices = @transform_2, window_bounds = array<i64: 1, 256>}, {transform_indices = @transform_3, window_bounds = array<i64: 16, 256>}]} {
    %c0_i32 = arith.constant 0 : i32
    %0 = arith.cmpi eq, %arg2, %c0_i32 : i32
    %1 = arith.extui %0 : i1 to i32
    %c0_i32_0 = arith.constant 0 : i32
    %2 = arith.cmpi ne, %1, %c0_i32_0 : i32
    scf.if %2 {
      %cst_10 = arith.constant 0.000000e+00 : f32
      %12 = vector.broadcast %cst_10 : f32 to vector<16x256xf32>
      %c0_11 = arith.constant 0 : index
      %c0_12 = arith.constant 0 : index
      %13 = vector.load %arg7[%c0_11, %c0_12] : memref<16x256xf32, #tpu.memory_space<vmem>>, vector<16x256xf32>
      tpu.vector_store %arg7[%c0_11, %c0_12], %12 {strides = array<i32>} : memref<16x256xf32, #tpu.memory_space<vmem>>, vector<16x256xf32>,
    } else {
    }
    %c0 = arith.constant 0 : index
    %c0_1 = arith.constant 0 : index
    %3 = vector.load %arg7[%c0, %c0_1] : memref<16x256xf32, #tpu.memory_space<vmem>>, vector<16x256xf32>
    %c0_2 = arith.constant 0 : index
    %c0_3 = arith.constant 0 : index
    %4 = vector.load %arg3[%c0_2, %c0_3] : memref<16x256xbf16, #tpu.memory_space<vmem>>, vector<16x256xbf16>
    %c0_4 = arith.constant 0 : index
    %c0_5 = arith.constant 0 : index
    %5 = vector.load %arg4[%c0_4, %c0_5] : memref<256x256xbf16, #tpu.memory_space<vmem>>, vector<256x256xbf16>
    %cst = arith.constant dense<0.000000e+00> : vector<16x256xf32>
    %6 = tpu.matmul %4, %5, %cst {dimension_numbers = #tpu.dot_dimension_numbers<[1], [0], [0], [1], [0, 0, 1, 1], [], []>} : vector<16x256xbf16>, vector<256x256xbf16>, vector<16x256xf32> -> vector<16x256xf32>
    %7 = arith.addf %3, %6 : vector<16x256xf32>
    %c0_6 = arith.constant 0 : index
    %c0_7 = arith.constant 0 : index
    %8 = vector.load %arg7[%c0_6, %c0_7] : memref<16x256xf32, #tpu.memory_space<vmem>>, vector<16x256xf32>
    tpu.vector_store %arg7[%c0_6, %c0_7], %7 {strides = array<i32>} : memref<16x256xf32, #tpu.memory_space<vmem>>, vector<16x256xf32>,
    %c0_i32_8 = arith.constant 0 : i32
    %9 = arith.cmpi eq, %arg2, %c0_i32_8 : i32
    %10 = arith.extui %9 : i1 to i32
    %c0_i32_9 = arith.constant 0 : i32
    %11 = arith.cmpi ne, %10, %c0_i32_9 : i32
    scf.if %11 {
      %c0_10 = arith.constant 0 : index
      %c0_11 = arith.constant 0 : index
      %12 = vector.load %arg7[%c0_10, %c0_11] : memref<16x256xf32, #tpu.memory_space<vmem>>, vector<16x256xf32>
      %c0_12 = arith.constant 0 : index
      %c0_13 = arith.constant 0 : index
      %13 = vector.load %arg5[%c0_12, %c0_13] : memref<1x256xf32, #tpu.memory_space<vmem>>, vector<1x256xf32>
      %14 = vector.broadcast %13 : vector<1x256xf32> to vector<16x256xf32>
      %15 = arith.addf %12, %14 : vector<16x256xf32>
      %c0_14 = arith.constant 0 : index
      %c0_15 = arith.constant 0 : index
      %16 = vector.load %arg6[%c0_14, %c0_15] : memref<16x256xf32, #tpu.memory_space<vmem>>, vector<16x256xf32>
      tpu.vector_store %arg6[%c0_14, %c0_15], %15 {strides = array<i32>} : memref<16x256xf32, #tpu.memory_space<vmem>>, vector<16x256xf32>,
    } else {
    }
    return
  }
  func.func @transform_0(%arg0: i32, %arg1: i32, %arg2: i32) -> (i32, i32) {
    %c0_i32 = arith.constant 0 : i32
    return %arg0, %arg2 : i32, i32
  }
  func.func @transform_1(%arg0: i32, %arg1: i32, %arg2: i32) -> (i32, i32) {
    %c0_i32 = arith.constant 0 : i32
    return %arg2, %arg1 : i32, i32
  }
  func.func @transform_2(%arg0: i32, %arg1: i32, %arg2: i32) -> (i32, i32) {
    %c0_i32 = arith.constant 0 : i32
    %c0_i32_0 = arith.constant 0 : i32
    return %c0_i32, %arg1 : i32, i32
  }
  func.func @transform_3(%arg0: i32, %arg1: i32, %arg2: i32) -> (i32, i32) {
    %c0_i32 = arith.constant 0 : i32
    return %arg0, %arg1 : i32, i32
  }
}

module attributes {stable_mosaic.version = 11 : i64} {
  func.func @kernel(%arg0: i32, %arg1: i32, %arg2: i32, %arg3: memref<16x512xbf16, #tpu.memory_space<vmem>>, %arg4: memref<512x256xbf16, #tpu.memory_space<vmem>>, %arg5: memref<1x256xf32, #tpu.memory_space<vmem>>, %arg6: memref<16x256xf32, #tpu.memory_space<vmem>>, %arg7: memref<16x256xf32, #tpu.memory_space<vmem>>, %arg8: memref<16x256xf32, #tpu.memory_space<vmem>>) attributes {dimension_semantics = [#tpu.dimension_semantics<parallel>, #tpu.dimension_semantics<parallel>, #tpu.dimension_semantics<arbitrary>], iteration_bounds = array<i64: 1, 2, 9>, scalar_prefetch = 0 : i64, scratch_operands = 1 : i64, tpu.core_type = #tpu.core_type<tc>, window_params = [{transform_indices = @transform_0, window_bounds = array<i64: 16, 512>}, {transform_indices = @transform_1, window_bounds = array<i64: 512, 256>}, {transform_indices = @transform_2, window_bounds = array<i64: 1, 256>}, {transform_indices = @transform_3, window_bounds = array<i64: 16, 256>}, {transform_indices = @transform_4, window_bounds = array<i64: 16, 256>}]} {
    %c0_i32 = arith.constant 0 : i32
    %0 = arith.cmpi eq, %arg2, %c0_i32 : i32
    %1 = arith.extui %0 : i1 to i32
    %c0_i32_0 = arith.constant 0 : i32
    %2 = arith.cmpi ne, %1, %c0_i32_0 : i32
    scf.if %2 {
      %cst_9 = arith.constant 0.000000e+00 : f32
      %12 = vector.broadcast %cst_9 : f32 to vector<16x256xf32>
      %c0_10 = arith.constant 0 : index
      %c0_11 = arith.constant 0 : index
      %13 = vector.load %arg8[%c0_10, %c0_11] : memref<16x256xf32, #tpu.memory_space<vmem>>, vector<16x256xf32>
      tpu.vector_store %arg8[%c0_10, %c0_11], %12 {strides = array<i32>} : memref<16x256xf32, #tpu.memory_space<vmem>>, vector<16x256xf32>,
    } else {
    }
    %c0 = arith.constant 0 : index
    %c0_1 = arith.constant 0 : index
    %3 = vector.load %arg8[%c0, %c0_1] : memref<16x256xf32, #tpu.memory_space<vmem>>, vector<16x256xf32>
    %c0_2 = arith.constant 0 : index
    %c0_3 = arith.constant 0 : index
    %4 = vector.load %arg3[%c0_2, %c0_3] : memref<16x512xbf16, #tpu.memory_space<vmem>>, vector<16x512xbf16>
    %c0_4 = arith.constant 0 : index
    %c0_5 = arith.constant 0 : index
    %5 = vector.load %arg4[%c0_4, %c0_5] : memref<512x256xbf16, #tpu.memory_space<vmem>>, vector<512x256xbf16>
    %cst = arith.constant dense<0.000000e+00> : vector<16x256xf32>
    %6 = tpu.matmul %4, %5, %cst {dimension_numbers = #tpu.dot_dimension_numbers<[1], [0], [0], [1], [0, 0, 1, 1], [], []>} : vector<16x512xbf16>, vector<512x256xbf16>, vector<16x256xf32> -> vector<16x256xf32>
    %7 = arith.addf %3, %6 : vector<16x256xf32>
    %c0_6 = arith.constant 0 : index
    %c0_7 = arith.constant 0 : index
    %8 = vector.load %arg8[%c0_6, %c0_7] : memref<16x256xf32, #tpu.memory_space<vmem>>, vector<16x256xf32>
    tpu.vector_store %arg8[%c0_6, %c0_7], %7 {strides = array<i32>} : memref<16x256xf32, #tpu.memory_space<vmem>>, vector<16x256xf32>,
    %c8_i32 = arith.constant 8 : i32
    %9 = arith.cmpi eq, %arg2, %c8_i32 : i32
    %10 = arith.extui %9 : i1 to i32
    %c0_i32_8 = arith.constant 0 : i32
    %11 = arith.cmpi ne, %10, %c0_i32_8 : i32
    scf.if %11 {
      %c0_9 = arith.constant 0 : index
      %c0_10 = arith.constant 0 : index
      %12 = vector.load %arg8[%c0_9, %c0_10] : memref<16x256xf32, #tpu.memory_space<vmem>>, vector<16x256xf32>
      %c0_11 = arith.constant 0 : index
      %c0_12 = arith.constant 0 : index
      %13 = vector.load %arg5[%c0_11, %c0_12] : memref<1x256xf32, #tpu.memory_space<vmem>>, vector<1x256xf32>
      %14 = vector.broadcast %13 : vector<1x256xf32> to vector<16x256xf32>
      %15 = arith.addf %12, %14 : vector<16x256xf32>
      %c0_13 = arith.constant 0 : index
      %c0_14 = arith.constant 0 : index
      %16 = vector.load %arg6[%c0_13, %c0_14] : memref<16x256xf32, #tpu.memory_space<vmem>>, vector<16x256xf32>
      %17 = arith.addf %15, %16 : vector<16x256xf32>
      %cst_15 = arith.constant 0.000000e+00 : f32
      %18 = vector.broadcast %cst_15 : f32 to vector<16x256xf32>
      %19 = arith.maximumf %17, %18 : vector<16x256xf32>
      %c0_16 = arith.constant 0 : index
      %c0_17 = arith.constant 0 : index
      %20 = vector.load %arg7[%c0_16, %c0_17] : memref<16x256xf32, #tpu.memory_space<vmem>>, vector<16x256xf32>
      tpu.vector_store %arg7[%c0_16, %c0_17], %19 {strides = array<i32>} : memref<16x256xf32, #tpu.memory_space<vmem>>, vector<16x256xf32>,
    } else {
    }
    return
  }
  func.func @transform_0(%arg0: i32, %arg1: i32, %arg2: i32) -> (i32, i32) {
    %c0_i32 = arith.constant 0 : i32
    return %arg0, %arg2 : i32, i32
  }
  func.func @transform_1(%arg0: i32, %arg1: i32, %arg2: i32) -> (i32, i32) {
    %c0_i32 = arith.constant 0 : i32
    return %arg2, %arg1 : i32, i32
  }
  func.func @transform_2(%arg0: i32, %arg1: i32, %arg2: i32) -> (i32, i32) {
    %c0_i32 = arith.constant 0 : i32
    %c0_i32_0 = arith.constant 0 : i32
    return %c0_i32, %arg1 : i32, i32
  }
  func.func @transform_3(%arg0: i32, %arg1: i32, %arg2: i32) -> (i32, i32) {
    %c0_i32 = arith.constant 0 : i32
    return %arg0, %arg1 : i32, i32
  }
  func.func @transform_4(%arg0: i32, %arg1: i32, %arg2: i32) -> (i32, i32) {
    %c0_i32 = arith.constant 0 : i32
    return %arg0, %arg1 : i32, i32
  }
}

module attributes {stable_mosaic.version = 11 : i64} {
  func.func @_tail_kernel(%arg0: i32, %arg1: memref<1x1x512xf32, #tpu.memory_space<vmem>>, %arg2: memref<1x512xf32, #tpu.memory_space<vmem>>, %arg3: memref<1x1xf32, #tpu.memory_space<vmem>>, %arg4: memref<512x128xf32, #tpu.memory_space<vmem>>, %arg5: memref<1x128xf32, #tpu.memory_space<vmem>>, %arg6: memref<1x1x128xf32, #tpu.memory_space<vmem>>) attributes {dimension_semantics = [#tpu.dimension_semantics<parallel>], iteration_bounds = array<i64: 2>, scalar_prefetch = 0 : i64, scratch_operands = 0 : i64, tpu.core_type = #tpu.core_type<tc>, window_params = [{transform_indices = @transform_0, window_bounds = array<i64: 1, 1, 512>}, {pipeline_mode = #tpu.pipeline_mode<synchronous>, transform_indices = @transform_1, window_bounds = array<i64: 1, 512>}, {pipeline_mode = #tpu.pipeline_mode<synchronous>, transform_indices = @transform_2, window_bounds = array<i64: 1, 1>}, {pipeline_mode = #tpu.pipeline_mode<synchronous>, transform_indices = @transform_3, window_bounds = array<i64: 512, 128>}, {pipeline_mode = #tpu.pipeline_mode<synchronous>, transform_indices = @transform_4, window_bounds = array<i64: 1, 128>}, {transform_indices = @transform_5, window_bounds = array<i64: 1, 1, 128>}]} {
    %c0 = arith.constant 0 : index
    %c0_0 = arith.constant 0 : index
    %c0_1 = arith.constant 0 : index
    %0 = vector.load %arg1[%c0, %c0_0, %c0_1] : memref<1x1x512xf32, #tpu.memory_space<vmem>>, vector<1x1x512xf32>
    %1 = vector.shape_cast %0 : vector<1x1x512xf32> to vector<1x512xf32>
    %c0_2 = arith.constant 0 : index
    %c0_3 = arith.constant 0 : index
    %2 = vector.load %arg2[%c0_2, %c0_3] : memref<1x512xf32, #tpu.memory_space<vmem>>, vector<1x512xf32>
    %3 = arith.mulf %1, %2 : vector<1x512xf32>
    %cst = arith.constant dense<0.000000e+00> : vector<1xf32>
    %4 = vector.multi_reduction <add>, %3, %cst [1] : vector<1x512xf32> to vector<1xf32>
    %5 = vector.shape_cast %4 : vector<1xf32> to vector<1x1xf32>
    %c0_4 = arith.constant 0 : index
    %c0_5 = arith.constant 0 : index
    %6 = vector.load %arg3[%c0_4, %c0_5] : memref<1x1xf32, #tpu.memory_space<vmem>>, vector<1x1xf32>
    %7 = arith.addf %5, %6 : vector<1x1xf32>
    %8 = arith.negf %7 : vector<1x1xf32>
    %9 = math.exp %8 : vector<1x1xf32>
    %cst_6 = arith.constant 1.000000e+00 : f32
    %10 = vector.broadcast %cst_6 : f32 to vector<1x1xf32>
    %11 = arith.addf %10, %9 : vector<1x1xf32>
    %12 = arith.divf %10, %11 : vector<1x1xf32>
    %13 = vector.broadcast %12 : vector<1x1xf32> to vector<1x512xf32>
    %14 = arith.mulf %1, %13 : vector<1x512xf32>
    %cst_7 = arith.constant dense<0.000000e+00> : vector<512xf32>
    %15 = vector.multi_reduction <add>, %14, %cst_7 [0] : vector<1x512xf32> to vector<512xf32>
    %16 = vector.shape_cast %15 : vector<512xf32> to vector<1x512xf32>
    %cst_8 = arith.constant 1.000000e+00 : f32
    %17 = vector.broadcast %cst_8 : f32 to vector<1x512xf32>
    %18 = arith.divf %16, %17 : vector<1x512xf32>
    %c0_9 = arith.constant 0 : index
    %c0_10 = arith.constant 0 : index
    %19 = vector.load %arg4[%c0_9, %c0_10] : memref<512x128xf32, #tpu.memory_space<vmem>>, vector<512x128xf32>
    %cst_11 = arith.constant dense<0.000000e+00> : vector<1x128xf32>
    %20 = tpu.matmul %18, %19, %cst_11 {dimension_numbers = #tpu.dot_dimension_numbers<[1], [0], [0], [1], [0, 0, 1, 1], [], []>} : vector<1x512xf32>, vector<512x128xf32>, vector<1x128xf32> -> vector<1x128xf32>
    %c0_12 = arith.constant 0 : index
    %c0_13 = arith.constant 0 : index
    %21 = vector.load %arg5[%c0_12, %c0_13] : memref<1x128xf32, #tpu.memory_space<vmem>>, vector<1x128xf32>
    %22 = arith.addf %20, %21 : vector<1x128xf32>
    %c0_14 = arith.constant 0 : index
    %c0_15 = arith.constant 0 : index
    %c0_16 = arith.constant 0 : index
    %23 = vector.load %arg6[%c0_14, %c0_15, %c0_16] : memref<1x1x128xf32, #tpu.memory_space<vmem>>, vector<1x1x128xf32>
    %24 = vector.shape_cast %23 : vector<1x1x128xf32> to vector<1x128xf32>
    %25 = vector.shape_cast %22 : vector<1x128xf32> to vector<1x1x128xf32>
    tpu.vector_store %arg6[%c0_14, %c0_15, %c0_16], %25 {strides = array<i32>} : memref<1x1x128xf32, #tpu.memory_space<vmem>>, vector<1x1x128xf32>,
    return
  }
  func.func @transform_0(%arg0: i32) -> (i32, i32, i32) {
    %c0_i32 = arith.constant 0 : i32
    %c0_i32_0 = arith.constant 0 : i32
    %c0_i32_1 = arith.constant 0 : i32
    return %arg0, %c0_i32, %c0_i32_0 : i32, i32, i32
  }
  func.func @transform_1(%arg0: i32) -> (i32, i32) {
    %c0_i32 = arith.constant 0 : i32
    %c0_i32_0 = arith.constant 0 : i32
    %c0_i32_1 = arith.constant 0 : i32
    return %c0_i32, %c0_i32_0 : i32, i32
  }
  func.func @transform_2(%arg0: i32) -> (i32, i32) {
    %c0_i32 = arith.constant 0 : i32
    %c0_i32_0 = arith.constant 0 : i32
    %c0_i32_1 = arith.constant 0 : i32
    return %c0_i32, %c0_i32_0 : i32, i32
  }
  func.func @transform_3(%arg0: i32) -> (i32, i32) {
    %c0_i32 = arith.constant 0 : i32
    %c0_i32_0 = arith.constant 0 : i32
    %c0_i32_1 = arith.constant 0 : i32
    return %c0_i32, %c0_i32_0 : i32, i32
  }
  func.func @transform_4(%arg0: i32) -> (i32, i32) {
    %c0_i32 = arith.constant 0 : i32
    %c0_i32_0 = arith.constant 0 : i32
    %c0_i32_1 = arith.constant 0 : i32
    return %c0_i32, %c0_i32_0 : i32, i32
  }
  func.func @transform_5(%arg0: i32) -> (i32, i32, i32) {
    %c0_i32 = arith.constant 0 : i32
    %c0_i32_0 = arith.constant 0 : i32
    %c0_i32_1 = arith.constant 0 : i32
    return %arg0, %c0_i32, %c0_i32_0 : i32, i32, i32
  }
}

</mosaic_0001>

<bundles_post_ra>
// kernel: resnet_forward.15
= control target key start
LH: loop header
LB: loop body
LE: loop exit
PB: predicated region body
PF: predicated region fallthrough
CT: control target
= control target key end

     0   :  { %s492_s15 = smov 0   ;;  %s570_s0 = inlined_call_operand.vmem [shape: f32[2,5,5,64], index: 0, kind: input, shape index: {}]   ;;  %s571_s1 = inlined_call_operand.vmem [shape: f32[2,5,5,64], index: 1, kind: input, shape index: {}]   ;;  %s572_s2 = inlined_call_operand.vmem [shape: f32[2,5,5,64], index: 2, kind: input, shape index: {}]   ;;  %s573_s3 = inlined_call_operand.vmem [shape: f32[2,5,5,64], index: 3, kind: input, shape index: {}]   ;;  %s574_s4 = inlined_call_operand.vmem [shape: f32[2,4,4,64], index: 4, kind: output, shape index: {}]  }
   0x1 LB: > { %s424_s16 = sadd.s32 4294967295, %s465_s15   ;;  %p428_p0 = scmp.ge.s32.totalorder %s465_s15, 1  ;;  %s465_s15 = sphi %s492_s15, %s14_s15  }
   0x2   : > { %p192_p1 = scmp.lt.s32.totalorder %s465_s15, 3 }
   0x4   : > { %p193_p2 = pnand %p428_p0, %p192_p1 }
   0x5   : > { %p233_p3 = scmp.lt.s32.totalorder (!%p193_p2), %s424_s16, 1  ;;  %vm328_vm0 = vcmask (!%p193_p2), 519168  }
   0x6   : > { %196 = sbr.rel (%p193_p2) target bundleno = 40 (0x28), region = 36 }
   0xd   : > { %s576_s16 = smov (!%p233_p3, %s424_s16), 1 }
   0xe   : > { %s450_s17 = smul.u32 40, %s576_s16  ;;  %s449_s30 = sshll.u32 %s576_s16, 4 }
   0xf   : > { %s257_s7 = scalar_lea.vmem %s574_s4, %s449_s30 }
  0x10   : > { %s506_s20 = scalar_lea.vmem %s570_s0, %s450_s17  ;;  %s511_s23 = scalar_lea.vmem %s571_s1, %s450_s17 }
  0x11   : > { %s516_s26 = scalar_lea.vmem %s572_s2, %s450_s17  ;;  %v258_v0 = vld [vmem:[%s506_s20] sm:$0xf]  ;;  %s524_s29 = scalar_lea.vmem %s573_s3, %s450_s17  ;;  %v259_v6 = vld [vmem:[%s506_s20 + $0x8] sm:$0xf]  ;;  %v260_v15 = vld [vmem:[%s506_s20 + $0x10] sm:$0xf] }
  0x12   : > { %v262_v1 = vld [vmem:[%s511_s23] sm:$0xf]  ;;  %v263_v7 = vld [vmem:[%s511_s23 + $0x8] sm:$0xf]  ;;  %v264_v16 = vld [vmem:[%s511_s23 + $0x10] sm:$0xf] }
  0x13   : > { %v270_v2 = vld [vmem:[%s506_s20 + $0x1] sm:$0xf]  ;;  %v266_v3 = vmax.f32 %v258_v0, %v262_v1  ;;  %v271_v8 = vld [vmem:[%s506_s20 + $0x9] sm:$0xf]  ;;  %v267_v10 = vmax.f32 %v259_v6, %v263_v7  ;;  %v272_v17 = vld [vmem:[%s506_s20 + $0x11] sm:$0xf]  ;;  %v268_v20 = vmax.f32 %v260_v15, %v264_v16 }
  0x14   : > { %v278_v4 = vld [vmem:[%s516_s26] sm:$0xf]  ;;  %v279_v13 = vld [vmem:[%s516_s26 + $0x8] sm:$0xf]  ;;  %v280_v24 = vld [vmem:[%s516_s26 + $0x10] sm:$0xf] }
  0x15   : > { %v274_v5 = vmax.f32 %v266_v3, %v270_v2  ;;  %v286_v9 = vld [vmem:[%s524_s29] sm:$0xf]  ;;  %v275_v14 = vmax.f32 %v267_v10, %v271_v8  ;;  %v287_v19 = vld [vmem:[%s524_s29 + $0x8] sm:$0xf]  ;;  %v276_v26 = vmax.f32 %v268_v20, %v272_v17  ;;  %v261_v27 = vld [vmem:[%s506_s20 + $0x18] sm:$0xf] }
  0x16   : > { %v294_v12 = vld [vmem:[%s516_s26 + $0x1] sm:$0xf]  ;;  %v435_v21 = vld [vmem:[%s506_s20 + $0x8] sm:$0xf]  ;;  %v265_v28 = vld [vmem:[%s511_s23 + $0x18] sm:$0xf] }
  0x17   : > { %v282_v11 = vmax.f32 %v274_v5, %v278_v4  ;;  %v283_v22 = vmax.f32 %v275_v14, %v279_v13  ;;  %v295_v23 = vld [vmem:[%s516_s26 + $0x9] sm:$0xf]  ;;  %v273_v29 = vld [vmem:[%s506_s20 + $0x19] sm:$0xf]  ;;  %v288_v32 = vld [vmem:[%s524_s29 + $0x10] sm:$0xf]  ;;  %v269_v33 = vmax.f32 %v261_v27, %v265_v28  ;;  %v284_v36 = vmax.f32 %v276_v26, %v280_v24 }
  0x18   : > { %v439_v30 = vld [vmem:[%s511_s23 + $0x8] sm:$0xf]  ;;  %v436_v35 = vld [vmem:[%s506_s20 + $0x10] sm:$0xf]  ;;  %v281_v37 = vld [vmem:[%s516_s26 + $0x18] sm:$0xf] }
  0x19   : > { %v290_v18 = vmax.f32 %v282_v11, %v286_v9  ;;  %v291_v31 = vmax.f32 %v283_v22, %v287_v19  ;;  %v443_v38 = vld [vmem:[%s506_s20 + $0x9] sm:$0xf]  ;;  %v296_v40 = vld [vmem:[%s516_s26 + $0x11] sm:$0xf]  ;;  %v277_v41 = vmax.f32 %v269_v33, %v273_v29  ;;  %v292_v44 = vmax.f32 %v284_v36, %v288_v32  ;;  %v289_v45 = vld [vmem:[%s524_s29 + $0x18] sm:$0xf] }
  0x1a   : > { %v440_v43 = vld [vmem:[%s511_s23 + $0x10] sm:$0xf]  ;;  %v437_v47 = vld [vmem:[%s506_s20 + $0x18] sm:$0xf]  ;;  %v438_v57 = vld [vmem:[%s506_s20 + $0x20] sm:$0xf] }
  0x1b   : > { %v298_v25 = vmax.f32 %v290_v18, %v294_v12  ;;  %v299_v39 = vmax.f32 %v291_v31, %v295_v23  ;;  %v285_v48 = vmax.f32 %v277_v41, %v281_v37  ;;  %v444_v50 = vld [vmem:[%s506_s20 + $0x11] sm:$0xf]  ;;  %v300_v51 = vmax.f32 %v292_v44, %v296_v40  ;;  %v297_v52 = vld [vmem:[%s516_s26 + $0x19] sm:$0xf]  ;;  %v442_v62 = vld [vmem:[%s511_s23 + $0x20] sm:$0xf] }
  0x1c   : > { %v441_v54 = vld [vmem:[%s511_s23 + $0x18] sm:$0xf]  ;;  %v446_v1 = vld [vmem:[%s506_s20 + $0x21] sm:$0xf] }
  0x1d   : > { %v307_v34 = vmax.f32 %v298_v25, %v435_v21  ;;  %v308_v46 = vmax.f32 %v299_v39, %v436_v35  ;;  %v293_v55 = vmax.f32 %v285_v48, %v289_v45  ;;  %v309_v56 = vmax.f32 %v300_v51, %v437_v47  ;;  %v445_v59 = vld [vmem:[%s506_s20 + $0x19] sm:$0xf] }
  0x1f   : > { %v316_v42 = vmax.f32 %v307_v34, %v439_v30  ;;  %v317_v53 = vmax.f32 %v308_v46, %v440_v43  ;;  %v301_v60 = vmax.f32 %v293_v55, %v297_v52  ;;  %v318_v61 = vmax.f32 %v309_v56, %v441_v54 }
  0x21   : > { %v324_v49 = vmax.f32 %v316_v42, %v443_v38  ;;  %v325_v58 = vmax.f32 %v317_v53, %v444_v50  ;;  %v310_v63 = vmax.f32 %v301_v60, %v438_v57  ;;  %v326_v0 = vmax.f32 %v318_v61, %v445_v59 }
  0x23   : > { %329 = vst.msk [vmem:[%s257_s7] sm:$0xf] %vm328_vm0, %v324_v49  ;;  %330 = vst.msk [vmem:[%s257_s7 + $0x4] sm:$0xf] %vm328_vm0, %v325_v58  ;;  %v319_v2 = vmax.f32 %v310_v63, %v442_v62 }
  0x24   : > { %331 = vst.msk [vmem:[%s257_s7 + $0x8] sm:$0xf] %vm328_vm0, %v326_v0 }
  0x25   : > { %v327_v3 = vmax.f32 %v319_v2, %v446_v1 }
  0x27   : > { %332 = vst.msk [vmem:[%s257_s7 + $0xc] sm:$0xf] %vm328_vm0, %v327_v3 }
  0x28 PF: > { %s14_s15 = sadd.s32 1, %s465_s15  }
  0x29   : > { %p11_p4 = scmp.ge.s32.totalorder %s14_s15, 4  }
  0x2b   :  { %13 = sbr.rel (!%p11_p4) target bundleno = 1 (0x1), region = 77 }

// kernel: resnet_forward.14
= control target key start
LH: loop header
LB: loop body
LE: loop exit
PB: predicated region body
PF: predicated region fallthrough
CT: control target
= control target key end

     0   :  { %s820_s1 = inlined_call_operand.vmem [shape: bf16[256,128], index: 1, kind: input, shape index: {}]   ;;  %s821_s0 = inlined_call_operand.vmem [shape: bf16[128,256], index: 0, kind: input, shape index: {}]   ;;  %s822_s2 = inlined_call_operand.vmem [shape: f32[1,128], index: 2, kind: input, shape index: {}]   ;;  %s823_s3 = inlined_call_operand.vmem [shape: f32[128,128], index: 3, kind: output, shape index: {}]  }
   0x1   :  { %v595_v0 = vld [vmem:[%s820_s1 + $0x40] sm:$0xff]   ;;  %v597_v2 = vld [vmem:[%s820_s1 + $0x48] sm:$0xff]   ;;  %v599_v4 = vld [vmem:[%s820_s1 + $0x50] sm:$0xff]  }
   0x2   :  { %v596_v1 = vld [vmem:[%s820_s1] sm:$0xff]   ;;  %515 = vmatprep.subr.bf16.mxu0 %v595_v0  ;;  %579 = vmatprep.subr.bf16.mxu1 %v595_v0  ;;  %v598_v3 = vld [vmem:[%s820_s1 + $0x8] sm:$0xff]   ;;  %v600_v5 = vld [vmem:[%s820_s1 + $0x10] sm:$0xff]  }
   0x3   :  { %516 = vmatpush3.bf16.msra.mxu0 %v596_v1  ;;  %587 = vmatpush3.bf16.msra.mxu1 %v596_v1  ;;  %v601_v6 = vld [vmem:[%s820_s1 + $0x58] sm:$0xff]   ;;  %v603_v8 = vld [vmem:[%s820_s1 + $0x60] sm:$0xff]   ;;  %v605_v10 = vld [vmem:[%s820_s1 + $0x68] sm:$0xff]  }
   0x4   :  { %517 = vmatprep.subr.bf16.mxu0 %v597_v2  ;;  %580 = vmatprep.subr.bf16.mxu1 %v597_v2  ;;  %v602_v7 = vld [vmem:[%s820_s1 + $0x18] sm:$0xff]   ;;  %v604_v9 = vld [vmem:[%s820_s1 + $0x20] sm:$0xff]   ;;  %v606_v13 = vld [vmem:[%s820_s1 + $0x28] sm:$0xff]  }
   0x5   :  { %v613_v11 = vld [vmem:[%s821_s0 + $0x4] ss:$8 sps:$4 sm:$0xff]   ;;  %v607_v14 = vld [vmem:[%s820_s1 + $0x70] sm:$0xff]   ;;  %v609_v16 = vld [vmem:[%s820_s1 + $0x78] sm:$0xff]  }
   0x6   :  { %v616_v12 = vld [vmem:[%s821_s0 + $0x44] ss:$8 sps:$4 sm:$0xff]   ;;  %307 = vmatprep.mubr.bf16.mxu0 %v613_v11  ;;  %v608_v15 = vld [vmem:[%s820_s1 + $0x30] sm:$0xff]   ;;  %v610_v17 = vld [vmem:[%s820_s1 + $0x38] sm:$0xff]  }
   0x7   :  { %518 = vmatpush3.bf16.msra.mxu0 %v598_v3  ;;  %588 = vmatpush3.bf16.msra.mxu1 %v598_v3  ;;  %v611_v18 = vld [vmem:[%s821_s0] ss:$8 sps:$4 sm:$0xff]   ;;  %v617_v20 = vld [vmem:[%s821_s0 + $0x14] ss:$8 sps:$4 sm:$0xff]   ;;  %v621_v22 = vld [vmem:[%s821_s0 + $0x10] ss:$8 sps:$4 sm:$0xff]  }
   0x8   :  { %519 = vmatprep.subr.bf16.mxu0 %v599_v4  ;;  %581 = vmatprep.subr.bf16.mxu1 %v599_v4  ;;  %v614_v19 = vld [vmem:[%s821_s0 + $0x40] ss:$8 sps:$4 sm:$0xff]   ;;  %v619_v21 = vld [vmem:[%s821_s0 + $0x54] ss:$8 sps:$4 sm:$0xff]   ;;  %v622_v23 = vld [vmem:[%s821_s0 + $0x50] ss:$8 sps:$4 sm:$0xff]  }
   0x9   :  { %339 = vmatprep.mubr.bf16.mxu1 %v616_v12  ;;  %v623_v24 = vld [vmem:[%s821_s0 + $0x24] ss:$8 sps:$4 sm:$0xff]   ;;  %v627_v26 = vld [vmem:[%s821_s0 + $0x20] ss:$8 sps:$4 sm:$0xff]   ;;  %v629_v28 = vld [vmem:[%s821_s0 + $0x34] ss:$8 sps:$4 sm:$0xff]  }
   0xa   :  { %v625_v25 = vld [vmem:[%s821_s0 + $0x64] ss:$8 sps:$4 sm:$0xff]   ;;  %v628_v27 = vld [vmem:[%s821_s0 + $0x60] ss:$8 sps:$4 sm:$0xff]   ;;  %v631_v29 = vld [vmem:[%s821_s0 + $0x74] ss:$8 sps:$4 sm:$0xff]  }
   0xb   :  { %520 = vmatpush3.bf16.msra.mxu0 %v600_v5  ;;  %589 = vmatpush3.bf16.msra.mxu1 %v600_v5  ;;  %v633_v30 = vld [vmem:[%s821_s0 + $0x30] ss:$8 sps:$4 sm:$0xff]   ;;  %v754_v35 = vld [vmem:[%s822_s2] ss:$0 sm:$0xff] }
   0xc   :  { %521 = vmatprep.subr.bf16.mxu0 %v601_v6  ;;  %582 = vmatprep.subr.bf16.mxu1 %v601_v6  ;;  %v634_v31 = vld [vmem:[%s821_s0 + $0x70] ss:$8 sps:$4 sm:$0xff]  }
   0xf   :  { %522 = vmatpush3.bf16.msra.mxu0 %v602_v7  ;;  %590 = vmatpush3.bf16.msra.mxu1 %v602_v7 }
  0x10   :  { %523 = vmatprep.subr.bf16.mxu0 %v603_v8  ;;  %583 = vmatprep.subr.bf16.mxu1 %v603_v8 }
  0x13   :  { %524 = vmatpush3.bf16.msra.mxu0 %v604_v9  ;;  %591 = vmatpush3.bf16.msra.mxu1 %v604_v9 }
  0x14   :  { %525 = vmatprep.subr.bf16.mxu0 %v605_v10  ;;  %584 = vmatprep.subr.bf16.mxu1 %v605_v10 }
  0x17   :  { %526 = vmatpush3.bf16.msra.mxu0 %v606_v13  ;;  %592 = vmatpush3.bf16.msra.mxu1 %v606_v13 }
  0x18   :  { %527 = vmatprep.subr.bf16.mxu0 %v607_v14  ;;  %585 = vmatprep.subr.bf16.mxu1 %v607_v14 }
  0x1b   :  { %528 = vmatpush3.bf16.msra.mxu0 %v608_v15  ;;  %593 = vmatpush3.bf16.msra.mxu1 %v608_v15 }
  0x1c   :  { %529 = vmatprep.subr.bf16.mxu0 %v609_v16  ;;  %586 = vmatprep.subr.bf16.mxu1 %v609_v16 }
  0x1f   :  { %530 = vmatpush3.bf16.msra.mxu0 %v610_v17  ;;  %594 = vmatpush3.bf16.msra.mxu1 %v610_v17 }
  0x22   :  { %308 = vmatmul.mubr.bf16.vlgmr.msra.gmra.mrb[0].mxu0 %v611_v18  ;;  %340 = vmatmul.mubr.bf16.vlgmr.msra.gmra.mrb[0].mxu1 %v614_v19 }
  0x23   :  { %315 = vmatprep.mubr.bf16.mxu0 %v617_v20  ;;  %347 = vmatprep.mubr.bf16.mxu1 %v619_v21 }
  0x2a   :  { %316 = vmatmul.mubr.bf16.gmra.mrb[4].mxu0 %v621_v22  ;;  %348 = vmatmul.mubr.bf16.gmra.mrb[4].mxu1 %v622_v23 }
  0x2b   :  { %323 = vmatprep.mubr.bf16.mxu0 %v623_v24  ;;  %355 = vmatprep.mubr.bf16.mxu1 %v625_v25 }
  0x32   :  { %324 = vmatmul.mubr.bf16.gmra.mrb[8].mxu0 %v627_v26  ;;  %356 = vmatmul.mubr.bf16.gmra.mrb[8].mxu1 %v628_v27 }
  0x33   :  { %331 = vmatprep.mubr.bf16.mxu0 %v629_v28  ;;  %363 = vmatprep.mubr.bf16.mxu1 %v631_v29 }
  0x3a   :  { %332 = vmatmul.mubr.bf16.gmra.mrb[12].mxu0 %v633_v30  ;;  %364 = vmatmul.mubr.bf16.gmra.mrb[12].mxu1 %v634_v31 }
  0xf5   :  { %v531_v32 = vpop.f32.mrb[0].mxu0  ;;  %v555_v33 = vpop.f32.mrb[0].mxu1 }
  0xf6   :  { %v532_v34 = vpop.f32.mrb[1].mxu0  ;;  %v556_v36 = vpop.f32.mrb[1].mxu1 }
  0xf7   :  { %v533_v37 = vadd.f32 %v532_v34, %v531_v32  ;;  %v557_v38 = vadd.f32 %v556_v36, %v555_v33  ;;  %v534_v39 = vpop.f32.mrb[2].mxu0  ;;  %v558_v40 = vpop.f32.mrb[2].mxu1 }
  0xf8   :  { %v535_v41 = vpop.f32.mrb[3].mxu0  ;;  %v559_v42 = vpop.f32.mrb[3].mxu1 }
  0xf9   :  { %v430_v43 = vadd.f32 %v533_v37, %v754_v35  ;;  %v438_v44 = vadd.f32 %v557_v38, %v754_v35  ;;  %v536_v45 = vadd.f32 %v535_v41, %v534_v39  ;;  %v560_v46 = vadd.f32 %v559_v42, %v558_v40 }
  0xfb   :  { %v446_v47 = vmax.f32 %v430_v43, 0.0  ;;  %v454_v48 = vmax.f32 %v438_v44, 0.0  ;;  %v431_v49 = vadd.f32 %v536_v45, %v754_v35  ;;  %v439_v50 = vadd.f32 %v560_v46, %v754_v35 }
  0xfd   :  { %462 = vst [vmem:[%s823_s3] sm:$0xff] %v446_v47  ;;  %470 = vst [vmem:[%s823_s3 + $0x40] sm:$0xff] %v454_v48  ;;  %v447_v51 = vmax.f32 %v431_v49, 0.0  ;;  %v455_v52 = vmax.f32 %v439_v50, 0.0  ;;  %v537_v53 = vpop.f32.mrb[4].mxu0  ;;  %v561_v54 = vpop.f32.mrb[4].mxu1 }
  0xfe   :  { %v538_v55 = vpop.f32.mrb[5].mxu0  ;;  %v562_v56 = vpop.f32.mrb[5].mxu1 }
  0xff   :  { %463 = vst [vmem:[%s823_s3 + $0x8] sm:$0xff] %v447_v51  ;;  %471 = vst [vmem:[%s823_s3 + $0x48] sm:$0xff] %v455_v52  ;;  %v539_v57 = vadd.f32 %v538_v55, %v537_v53  ;;  %v563_v58 = vadd.f32 %v562_v56, %v561_v54  ;;  %v540_v59 = vpop.f32.mrb[6].mxu0  ;;  %v564_v60 = vpop.f32.mrb[6].mxu1 }
 0x100   :  { %v541_v61 = vpop.f32.mrb[7].mxu0  ;;  %v565_v62 = vpop.f32.mrb[7].mxu1 }
 0x101   :  { %v432_v63 = vadd.f32 %v539_v57, %v754_v35  ;;  %v440_v0 = vadd.f32 %v563_v58, %v754_v35  ;;  %v542_v1 = vadd.f32 %v541_v61, %v540_v59  ;;  %v566_v2 = vadd.f32 %v565_v62, %v564_v60 }
 0x103   :  { %v448_v3 = vmax.f32 %v432_v63, 0.0  ;;  %v456_v4 = vmax.f32 %v440_v0, 0.0  ;;  %v433_v5 = vadd.f32 %v542_v1, %v754_v35  ;;  %v441_v6 = vadd.f32 %v566_v2, %v754_v35 }
 0x105   :  { %464 = vst [vmem:[%s823_s3 + $0x10] sm:$0xff] %v448_v3  ;;  %472 = vst [vmem:[%s823_s3 + $0x50] sm:$0xff] %v456_v4  ;;  %v449_v7 = vmax.f32 %v433_v5, 0.0  ;;  %v457_v8 = vmax.f32 %v441_v6, 0.0  ;;  %v543_v9 = vpop.f32.mrb[8].mxu0  ;;  %v567_v10 = vpop.f32.mrb[8].mxu1 }
 0x106   :  { %v544_v11 = vpop.f32.mrb[9].mxu0  ;;  %v568_v12 = vpop.f32.mrb[9].mxu1 }
 0x107   :  { %465 = vst [vmem:[%s823_s3 + $0x18] sm:$0xff] %v449_v7  ;;  %473 = vst [vmem:[%s823_s3 + $0x58] sm:$0xff] %v457_v8  ;;  %v545_v13 = vadd.f32 %v544_v11, %v543_v9  ;;  %v569_v14 = vadd.f32 %v568_v12, %v567_v10  ;;  %v546_v15 = vpop.f32.mrb[10].mxu0  ;;  %v570_v16 = vpop.f32.mrb[10].mxu1 }
 0x108   :  { %v547_v17 = vpop.f32.mrb[11].mxu0  ;;  %v571_v18 = vpop.f32.mrb[11].mxu1 }
 0x109   :  { %v434_v19 = vadd.f32 %v545_v13, %v754_v35  ;;  %v442_v20 = vadd.f32 %v569_v14, %v754_v35  ;;  %v548_v21 = vadd.f32 %v547_v17, %v546_v15  ;;  %v572_v22 = vadd.f32 %v571_v18, %v570_v16 }
 0x10b   :  { %v450_v23 = vmax.f32 %v434_v19, 0.0  ;;  %v458_v24 = vmax.f32 %v442_v20, 0.0  ;;  %v435_v25 = vadd.f32 %v548_v21, %v754_v35  ;;  %v443_v26 = vadd.f32 %v572_v22, %v754_v35 }
 0x10d   :  { %466 = vst [vmem:[%s823_s3 + $0x20] sm:$0xff] %v450_v23  ;;  %474 = vst [vmem:[%s823_s3 + $0x60] sm:$0xff] %v458_v24  ;;  %v451_v27 = vmax.f32 %v435_v25, 0.0  ;;  %v459_v28 = vmax.f32 %v443_v26, 0.0  ;;  %v549_v29 = vpop.f32.mrb[12].mxu0  ;;  %v573_v30 = vpop.f32.mrb[12].mxu1 }
 0x10e   :  { %v550_v31 = vpop.f32.mrb[13].mxu0  ;;  %v574_v32 = vpop.f32.mrb[13].mxu1 }
 0x10f   :  { %467 = vst [vmem:[%s823_s3 + $0x28] sm:$0xff] %v451_v27  ;;  %475 = vst [vmem:[%s823_s3 + $0x68] sm:$0xff] %v459_v28  ;;  %v551_v33 = vadd.f32 %v550_v31, %v549_v29  ;;  %v575_v34 = vadd.f32 %v574_v32, %v573_v30  ;;  %v552_v36 = vpop.f32.mrb[14].mxu0  ;;  %v576_v37 = vpop.f32.mrb[14].mxu1 }
 0x110   :  { %v553_v38 = vpop.f32.mrb[15].mxu0  ;;  %v577_v39 = vpop.f32.mrb[15].mxu1 }
 0x111   :  { %v436_v40 = vadd.f32 %v551_v33, %v754_v35  ;;  %v444_v41 = vadd.f32 %v575_v34, %v754_v35  ;;  %v554_v42 = vadd.f32 %v553_v38, %v552_v36  ;;  %v578_v43 = vadd.f32 %v577_v39, %v576_v37 }
 0x113   :  { %v452_v44 = vmax.f32 %v436_v40, 0.0  ;;  %v460_v45 = vmax.f32 %v444_v41, 0.0  ;;  %v437_v46 = vadd.f32 %v554_v42, %v754_v35  ;;  %v445_v47 = vadd.f32 %v578_v43, %v754_v35 }
 0x115   :  { %468 = vst [vmem:[%s823_s3 + $0x30] sm:$0xff] %v452_v44  ;;  %476 = vst [vmem:[%s823_s3 + $0x70] sm:$0xff] %v460_v45  ;;  %v453_v48 = vmax.f32 %v437_v46, 0.0  ;;  %v461_v49 = vmax.f32 %v445_v47, 0.0 }
 0x117   :  { %469 = vst [vmem:[%s823_s3 + $0x38] sm:$0xff] %v453_v48  ;;  %477 = vst [vmem:[%s823_s3 + $0x78] sm:$0xff] %v461_v49 }

// kernel: resnet_forward.16
= control target key start
LH: loop header
LB: loop body
LE: loop exit
PB: predicated region body
PF: predicated region fallthrough
CT: control target
= control target key end

     0   :  { %s761_s12 = smov 0   ;;  %s763_s13 = smov 0   ;;  %s860_s0 = inlined_call_operand.vmem [shape: bf16[32,640], index: 0, kind: input, shape index: {}]   ;;  %s861_s1 = inlined_call_operand.vmem [shape: bf16[640,128], index: 1, kind: input, shape index: {}]   ;;  %s862_s2 = inlined_call_operand.vmem [shape: f32[1,128], index: 2, kind: input, shape index: {}]   ;;  %s863_s3 = inlined_call_operand.vmem [shape: f32[32,128], index: 3, kind: output, shape index: {}]  }
   0x1   :  { %s765_s14 = smov 0   ;;  %s767_s15 = smov 0  }
   0x2   :  { %s769_s16 = smov 0  }
   0x3 LB: > { %s25_s17 = sadd.s32 1, %s734_s15  ;;  %p48_p1 = scmp.ne.s32.totalorder %s726_s13, %s722_s12  ;;  %s738_s16 = sphi %s769_s16, %s13_s16   ;;  %s734_s15 = sphi %s767_s15, %s867_s15   ;;  %s730_s14 = sphi %s765_s14, %s866_s14   ;;  %s726_s13 = sphi %s763_s13, %s865_s13   ;;  %s722_s12 = sphi %s761_s12, %s864_s12  }
   0x4   : > { %p26_p0 = scmp.ge.s32.totalorder %s25_s17, 5  ;;  %p49_p2 = scmp.eq.s32.totalorder %s738_s16, 0 }
   0x5   : > { %s41_s19 = sadd.s32 1, %s726_s13  ;;  %p595_p5 = scmp.ge.s32.totalorder %s738_s16, 5 }
   0x6   : > { %s869_s17 = smov (%p26_p0, %s25_s17), 0  ;;  %p50_p3 = por %p49_p2, %p48_p1 }
   0x7   : > { %s37_s18 = ssub.s32 %s734_s15, %s869_s17  ;;  %162 = sbr.rel (%p595_p5) target bundleno = 21 (0x15), region = 20 }
   0x8   : > { %p39_p4 = scmp.eq.s32.totalorder %s37_s18, 0 }
   0xa   : > { %s796_s20 = scalar_select %p39_p4, %s726_s13, %s41_s19  }
   0xe   : > { %165 = sbr.rel (!%p50_p3) target bundleno = 21 (0x15), region = 24  ;;  %s167_s21 = sand.u32 (%p50_p3), 1, %s726_s13  }
   0xf   : > { %s597_s22 = sshll.u32 (%p50_p3), %s734_s15, 2  ;;  %s596_s23 = sshll.u32 (%p50_p3), %s167_s21, 4 }
  0x10   : > { %s174_s26 = scalar_lea.vmem (%p50_p3), %s860_s0, %s597_s22  ;;  %s169_s27 = scalar_lea.vmem (%p50_p3), [#allocation3], %s596_s23 }
  0x11   : > { %v190_v0 = vld [vmem:[%s174_s26] sm:$0xf] (%p50_p3)  ;;  %v192_v1 = vld [vmem:[%s174_s26 + $0x14] sm:$0xf] (%p50_p3)  ;;  %v194_v2 = vld [vmem:[%s174_s26 + $0x28] sm:$0xf] (%p50_p3) }
  0x12   : > { %191 = vst [vmem:[%s169_s27] sm:$0xf] (%p50_p3), %v190_v0  ;;  %193 = vst [vmem:[%s169_s27 + $0x4] sm:$0xf] (%p50_p3), %v192_v1  ;;  %v196_v3 = vld [vmem:[%s174_s26 + $0x3c] sm:$0xf] (%p50_p3) }
  0x13   : > { %195 = vst [vmem:[%s169_s27 + $0x8] sm:$0xf] (%p50_p3), %v194_v2  ;;  %197 = vst [vmem:[%s169_s27 + $0xc] sm:$0xf] (%p50_p3), %v196_v3 }
  0x15 PF: > { %p598_p6 = scmp.ge.s32.totalorder %s738_s16, 1  ;;  %p239_p7 = scmp.lt.s32.totalorder %s738_s16, 6 }
  0x17   : > { %p240_p8 = pnand %p598_p6, %p239_p7 }
  0x18   : > { %s246_s28 = sand.u32 (!%p240_p8), 1, %s722_s12   ;;  %s600_s29 = sshll.u32 (!%p240_p8), %s730_s14, 4 }
  0x19   : > { %243 = sbr.rel (%p240_p8) target bundleno = 302 (0x12e), region = 69  ;;  %s808_s30 = sshll.u32 (!%p240_p8), %s246_s28, 4 }
  0x1a   : > { %p285_p9 = scmp.lt.s32.totalorder (!%p240_p8), %s600_s29, 79  ;;  %s248_s8 = scalar_lea.vmem (!%p240_p8), [#allocation3], %s808_s30 }
  0x1b   : > { %p602_p10 = scmp.ne.s32.totalorder (!%p240_p8), %s730_s14, 0 }
  0x20   : > { %s871_s29 = smov (!%p285_p9, %s600_s29), 79  ;;  %309 = sbr.rel (%p602_p10) target bundleno = 39 (0x27), region = 77 }
  0x21   : > { %s601_s4 = sshll.u32 %s871_s29, 2  ;;  %v740_v4 = vmov (!%p602_p10), 0.0  }
  0x22   : > { %s813_s7 = scalar_lea.vmem %s861_s1, %s601_s4  ;;  %310 = vst [vmem:[#allocation2] sm:$0xff] (!%p602_p10), %v740_v4  ;;  %311 = vst [vmem:[#allocation2 + $0x8] sm:$0xff] (!%p602_p10), %v740_v4 }
  0x23   : > { %312 = vst [vmem:[#allocation2 + $0x10] sm:$0xff] (!%p602_p10), %v740_v4  ;;  %313 = vst [vmem:[#allocation2 + $0x18] sm:$0xff] (!%p602_p10), %v740_v4 }
  0x27 PF: > { %v690_v5 = vld [vmem:[%s813_s7] sm:$0xff]   ;;  %v691_v6 = vld [vmem:[%s813_s7 + $0x8] sm:$0xff]   ;;  %v692_v7 = vld [vmem:[%s813_s7 + $0x10] sm:$0xff]   ;;  %p613_p11 = scmp.ne.s32.totalorder %s730_s14, 4 }
  0x28   : > { %629 = vmatprep.subr.bf16.mxu0 %v690_v5  ;;  %v693_v8 = vld [vmem:[%s813_s7 + $0x18] sm:$0xff]   ;;  %v698_v9 = vld [vmem:[%s248_s8] sm:$0xff]   ;;  %v695_v11 = vld [vmem:[%s813_s7 + $0x28] sm:$0xff]  }
  0x29   : > { %630 = vmatpush3.bf16.msra.mxu0 %v690_v5  ;;  %645 = vmatprep.mubr.bf16.mxu0 %v698_v9  ;;  %v694_v10 = vld [vmem:[%s813_s7 + $0x20] sm:$0xff]   ;;  %v696_v12 = vld [vmem:[%s813_s7 + $0x30] sm:$0xff]   ;;  %v697_v13 = vld [vmem:[%s813_s7 + $0x38] sm:$0xff]  }
  0x2a   : > { %631 = vmatprep.subr.bf16.mxu0 %v691_v6  ;;  %v699_v14 = vld [vmem:[%s248_s8 + $0x8] sm:$0xff]   ;;  %v316_v15 = vld [vmem:[#allocation2 + $0x10] sm:$0xff]  ;;  %v314_v16 = vld [vmem:[#allocation2] sm:$0xff] }
  0x2b   : > { %v317_v18 = vld [vmem:[#allocation2 + $0x18] sm:$0xff]  ;;  %v315_v21 = vld [vmem:[#allocation2 + $0x8] sm:$0xff]  ;;  %v614_v28 = vld [vmem:[%s862_s2] ss:$0 sm:$0xff] (!%p613_p11) }
  0x2d   : > { %632 = vmatpush3.bf16.msra.mxu0 %v691_v6 }
  0x2e   : > { %633 = vmatprep.subr.bf16.mxu0 %v692_v7 }
  0x31   : > { %634 = vmatpush3.bf16.msra.mxu0 %v692_v7 }
  0x32   : > { %635 = vmatprep.subr.bf16.mxu0 %v693_v8 }
  0x35   : > { %636 = vmatpush3.bf16.msra.mxu0 %v693_v8 }
  0x36   : > { %637 = vmatprep.subr.bf16.mxu0 %v694_v10 }
  0x39   : > { %638 = vmatpush3.bf16.msra.mxu0 %v694_v10 }
  0x3a   : > { %639 = vmatprep.subr.bf16.mxu0 %v695_v11 }
  0x3d   : > { %640 = vmatpush3.bf16.msra.mxu0 %v695_v11 }
  0x3e   : > { %641 = vmatprep.subr.bf16.mxu0 %v696_v12 }
  0x41   : > { %642 = vmatpush3.bf16.msra.mxu0 %v696_v12 }
  0x42   : > { %643 = vmatprep.subr.bf16.mxu0 %v697_v13 }
  0x45   : > { %644 = vmatpush3.bf16.msra.mxu0 %v697_v13 }
  0x48   : > { %646 = vmatmul.mubr.bf16.vlgmr.msra.gmra.mrb[0].mxu0 %v699_v14 }
 0x11b   : > { %v647_v17 = vpop.f32.mrb[0].mxu0  ;;  %458 = sbr.rel (%p613_p11) target bundleno = 302 (0x12e), region = 81 }
 0x11c   : > { %v449_v19 = vadd.f32 %v647_v17, %v316_v15  ;;  %v432_v20 = vpop.f32.mrb[1].mxu0 }
 0x11d   : > { %v447_v22 = vadd.f32 %v432_v20, %v314_v16  ;;  %v648_v23 = vpop.f32.mrb[2].mxu0 }
 0x11e   : > { %453 = vst [vmem:[#allocation2 + $0x10] sm:$0xff] %v449_v19  ;;  %v450_v24 = vadd.f32 %v648_v23, %v317_v18  ;;  %v435_v25 = vpop.f32.mrb[3].mxu0 }
 0x11f   : > { %451 = vst [vmem:[#allocation2] sm:$0xff] %v447_v22  ;;  %v448_v26 = vadd.f32 %v435_v25, %v315_v21 }
 0x120   : > { %454 = vst [vmem:[#allocation2 + $0x18] sm:$0xff] %v450_v24 }
 0x121   : > { %452 = vst [vmem:[#allocation2 + $0x8] sm:$0xff] %v448_v26 }
 0x125   : > { %v461_v32 = vld [vmem:[#allocation2 + $0x10] sm:$0xff] }
 0x126   : > { %v459_v27 = vld [vmem:[#allocation2] sm:$0xff]  ;;  %v472_v34 = vadd.f32 %v614_v28, %v461_v32 }
 0x127   : > { %v470_v30 = vadd.f32 %v614_v28, %v459_v27  ;;  %v462_v33 = vld [vmem:[#allocation2 + $0x18] sm:$0xff] }
 0x128   : > { %v460_v29 = vld [vmem:[#allocation2 + $0x8] sm:$0xff]  ;;  %v473_v35 = vadd.f32 %v614_v28, %v462_v33  ;;  %v476_v38 = vmax.f32 %v472_v34, 0.0 }
 0x129   : > { %v471_v31 = vadd.f32 %v614_v28, %v460_v29  ;;  %v474_v36 = vmax.f32 %v470_v30, 0.0 }
 0x12a   : > { %v477_v39 = vmax.f32 %v473_v35, 0.0  ;;  %480 = vst [vmem:[%s863_s3 + $0x10] sm:$0xff] %v476_v38 }
 0x12b   : > { %v475_v37 = vmax.f32 %v471_v31, 0.0  ;;  %478 = vst [vmem:[%s863_s3] sm:$0xff] %v474_v36 }
 0x12c   : > { %481 = vst [vmem:[%s863_s3 + $0x18] sm:$0xff] %v477_v39 }
 0x12d   : > { %479 = vst [vmem:[%s863_s3 + $0x8] sm:$0xff] %v475_v37 }
 0x12e PF: > { %s13_s16 = sadd.s32 1, %s738_s16   ;;  %s864_s12 = smov %s726_s13 }
 0x12f   : > { %p10_p12 = scmp.ge.s32.totalorder %s13_s16, 7   ;;  %s865_s13 = smov %s796_s20 }
 0x130   : > { %s866_s14 = smov %s734_s15  ;;  %s867_s15 = smov %s869_s17 }
 0x131   :  { %12 = sbr.rel (!%p10_p12) target bundleno = 3 (0x3), region = 122 }

// kernel: resnet_forward.17
= control target key start
LH: loop header
LB: loop body
LE: loop exit
PB: predicated region body
PF: predicated region fallthrough
CT: control target
= control target key end

     0   :  { %s853_s15 = smov 0   ;;  %s855_s16 = smov 0   ;;  %s964_s0 = inlined_call_operand.vmem [shape: bf16[32,640], index: 0, kind: input, shape index: {}]   ;;  %s965_s1 = inlined_call_operand.vmem [shape: bf16[640,128], index: 1, kind: input, shape index: {}]   ;;  %s966_s2 = inlined_call_operand.vmem [shape: f32[1,128], index: 2, kind: input, shape index: {}]   ;;  %s967_s3 = inlined_call_operand.vmem [shape: f32[32,128], index: 3, kind: input, shape index: {}]   ;;  %s968_s4 = inlined_call_operand.vmem [shape: f32[32,128], index: 4, kind: output, shape index: {}]  }
   0x1   :  { %s857_s17 = smov 0   ;;  %s859_s18 = smov 0  }
   0x2   :  { %s861_s19 = smov 0  }
   0x3 LB: > { %s26_s20 = sadd.s32 1, %s821_s18  ;;  %p49_p1 = scmp.ne.s32.totalorder %s813_s16, %s809_s15  ;;  %s825_s19 = sphi %s861_s19, %s14_s19   ;;  %s821_s18 = sphi %s859_s18, %s972_s18   ;;  %s817_s17 = sphi %s857_s17, %s971_s17   ;;  %s813_s16 = sphi %s855_s16, %s970_s16   ;;  %s809_s15 = sphi %s853_s15, %s969_s15  }
   0x4   : > { %p27_p0 = scmp.ge.s32.totalorder %s26_s20, 5  ;;  %p50_p2 = scmp.eq.s32.totalorder %s825_s19, 0 }
   0x5   : > { %s42_s22 = sadd.s32 1, %s813_s16  ;;  %p682_p5 = scmp.ge.s32.totalorder %s825_s19, 5 }
   0x6   : > { %s974_s20 = smov (%p27_p0, %s26_s20), 0  ;;  %p51_p3 = por %p50_p2, %p49_p1 }
   0x7   : > { %s38_s21 = ssub.s32 %s821_s18, %s974_s20  ;;  %203 = sbr.rel (%p682_p5) target bundleno = 21 (0x15), region = 24 }
   0x8   : > { %p40_p4 = scmp.eq.s32.totalorder %s38_s21, 0 }
   0xa   : > { %s888_s23 = scalar_select %p40_p4, %s813_s16, %s42_s22  }
   0xe   : > { %206 = sbr.rel (!%p51_p3) target bundleno = 21 (0x15), region = 28  ;;  %s208_s24 = sand.u32 (%p51_p3), 1, %s813_s16  }
   0xf   : > { %s684_s25 = sshll.u32 (%p51_p3), %s821_s18, 2  ;;  %s683_s26 = sshll.u32 (%p51_p3), %s208_s24, 4 }
  0x10   : > { %s215_s29 = scalar_lea.vmem (%p51_p3), %s964_s0, %s684_s25  ;;  %s210_s30 = scalar_lea.vmem (%p51_p3), [#allocation3], %s683_s26 }
  0x11   : > { %v231_v0 = vld [vmem:[%s215_s29] sm:$0xf] (%p51_p3)  ;;  %v233_v1 = vld [vmem:[%s215_s29 + $0x14] sm:$0xf] (%p51_p3)  ;;  %v235_v2 = vld [vmem:[%s215_s29 + $0x28] sm:$0xf] (%p51_p3) }
  0x12   : > { %232 = vst [vmem:[%s210_s30] sm:$0xf] (%p51_p3), %v231_v0  ;;  %234 = vst [vmem:[%s210_s30 + $0x4] sm:$0xf] (%p51_p3), %v233_v1  ;;  %v237_v3 = vld [vmem:[%s215_s29 + $0x3c] sm:$0xf] (%p51_p3) }
  0x13   : > { %236 = vst [vmem:[%s210_s30 + $0x8] sm:$0xf] (%p51_p3), %v235_v2  ;;  %238 = vst [vmem:[%s210_s30 + $0xc] sm:$0xf] (%p51_p3), %v237_v3 }
  0x15 PF: > { %p685_p6 = scmp.ge.s32.totalorder %s825_s19, 1  ;;  %p280_p7 = scmp.lt.s32.totalorder %s825_s19, 6 }
  0x17   : > { %p281_p8 = pnand %p685_p6, %p280_p7 }
  0x18   : > { %s287_s5 = sand.u32 (!%p281_p8), 1, %s809_s15   ;;  %s687_s6 = sshll.u32 (!%p281_p8), %s817_s17, 4 }
  0x19   : > { %284 = sbr.rel (%p281_p8) target bundleno = 304 (0x130), region = 73  ;;  %s900_s7 = sshll.u32 (!%p281_p8), %s287_s5, 4 }
  0x1a   : > { %p336_p9 = scmp.lt.s32.totalorder (!%p281_p8), %s687_s6, 79  ;;  %s289_s12 = scalar_lea.vmem (!%p281_p8), [#allocation3], %s900_s7 }
  0x1b   : > { %p689_p10 = scmp.ne.s32.totalorder (!%p281_p8), %s817_s17, 0 }
  0x20   : > { %s976_s6 = smov (!%p336_p9, %s687_s6), 79  ;;  %369 = sbr.rel (%p689_p10) target bundleno = 39 (0x27), region = 81 }
  0x21   : > { %s688_s8 = sshll.u32 %s976_s6, 2  ;;  %v827_v4 = vmov (!%p689_p10), 0.0  }
  0x22   : > { %s905_s11 = scalar_lea.vmem %s965_s1, %s688_s8  ;;  %370 = vst [vmem:[#allocation2] sm:$0xff] (!%p689_p10), %v827_v4  ;;  %371 = vst [vmem:[#allocation2 + $0x8] sm:$0xff] (!%p689_p10), %v827_v4 }
  0x23   : > { %372 = vst [vmem:[#allocation2 + $0x10] sm:$0xff] (!%p689_p10), %v827_v4  ;;  %373 = vst [vmem:[#allocation2 + $0x18] sm:$0xff] (!%p689_p10), %v827_v4 }
  0x27 PF: > { %v777_v5 = vld [vmem:[%s905_s11] sm:$0xff]   ;;  %v778_v6 = vld [vmem:[%s905_s11 + $0x8] sm:$0xff]   ;;  %v779_v7 = vld [vmem:[%s905_s11 + $0x10] sm:$0xff]   ;;  %p700_p11 = scmp.ne.s32.totalorder %s817_s17, 4 }
  0x28   : > { %716 = vmatprep.subr.bf16.mxu0 %v777_v5  ;;  %v780_v8 = vld [vmem:[%s905_s11 + $0x18] sm:$0xff]   ;;  %v785_v9 = vld [vmem:[%s289_s12] sm:$0xff]   ;;  %v782_v11 = vld [vmem:[%s905_s11 + $0x28] sm:$0xff]  }
  0x29   : > { %717 = vmatpush3.bf16.msra.mxu0 %v777_v5  ;;  %732 = vmatprep.mubr.bf16.mxu0 %v785_v9  ;;  %v781_v10 = vld [vmem:[%s905_s11 + $0x20] sm:$0xff]   ;;  %v783_v12 = vld [vmem:[%s905_s11 + $0x30] sm:$0xff]   ;;  %v784_v13 = vld [vmem:[%s905_s11 + $0x38] sm:$0xff]  }
  0x2a   : > { %718 = vmatprep.subr.bf16.mxu0 %v778_v6  ;;  %v786_v14 = vld [vmem:[%s289_s12 + $0x8] sm:$0xff]   ;;  %v376_v15 = vld [vmem:[#allocation2 + $0x10] sm:$0xff]  ;;  %v374_v16 = vld [vmem:[#allocation2] sm:$0xff] }
  0x2b   : > { %v377_v18 = vld [vmem:[#allocation2 + $0x18] sm:$0xff]  ;;  %v375_v21 = vld [vmem:[#allocation2 + $0x8] sm:$0xff]  ;;  %v701_v28 = vld [vmem:[%s966_s2] ss:$0 sm:$0xff] (!%p700_p11) }
  0x2c   : > { %v534_v29 = vld [vmem:[%s967_s3] sm:$0xff] (!%p700_p11)  ;;  %v535_v32 = vld [vmem:[%s967_s3 + $0x8] sm:$0xff] (!%p700_p11)  ;;  %v536_v36 = vld [vmem:[%s967_s3 + $0x10] sm:$0xff] (!%p700_p11) }
  0x2d   : > { %719 = vmatpush3.bf16.msra.mxu0 %v778_v6  ;;  %v537_v38 = vld [vmem:[%s967_s3 + $0x18] sm:$0xff] (!%p700_p11) }
  0x2e   : > { %720 = vmatprep.subr.bf16.mxu0 %v779_v7 }
  0x31   : > { %721 = vmatpush3.bf16.msra.mxu0 %v779_v7 }
  0x32   : > { %722 = vmatprep.subr.bf16.mxu0 %v780_v8 }
  0x35   : > { %723 = vmatpush3.bf16.msra.mxu0 %v780_v8 }
  0x36   : > { %724 = vmatprep.subr.bf16.mxu0 %v781_v10 }
  0x39   : > { %725 = vmatpush3.bf16.msra.mxu0 %v781_v10 }
  0x3a   : > { %726 = vmatprep.subr.bf16.mxu0 %v782_v11 }
  0x3d   : > { %727 = vmatpush3.bf16.msra.mxu0 %v782_v11 }
  0x3e   : > { %728 = vmatprep.subr.bf16.mxu0 %v783_v12 }
  0x41   : > { %729 = vmatpush3.bf16.msra.mxu0 %v783_v12 }
  0x42   : > { %730 = vmatprep.subr.bf16.mxu0 %v784_v13 }
  0x45   : > { %731 = vmatpush3.bf16.msra.mxu0 %v784_v13 }
  0x48   : > { %733 = vmatmul.mubr.bf16.vlgmr.msra.gmra.mrb[0].mxu0 %v786_v14 }
 0x11b   : > { %v734_v17 = vpop.f32.mrb[0].mxu0  ;;  %518 = sbr.rel (%p700_p11) target bundleno = 304 (0x130), region = 85 }
 0x11c   : > { %v509_v19 = vadd.f32 %v734_v17, %v376_v15  ;;  %v492_v20 = vpop.f32.mrb[1].mxu0 }
 0x11d   : > { %v507_v22 = vadd.f32 %v492_v20, %v374_v16  ;;  %v735_v23 = vpop.f32.mrb[2].mxu0 }
 0x11e   : > { %513 = vst [vmem:[#allocation2 + $0x10] sm:$0xff] %v509_v19  ;;  %v510_v24 = vadd.f32 %v735_v23, %v377_v18  ;;  %v495_v25 = vpop.f32.mrb[3].mxu0 }
 0x11f   : > { %511 = vst [vmem:[#allocation2] sm:$0xff] %v507_v22  ;;  %v508_v26 = vadd.f32 %v495_v25, %v375_v21 }
 0x120   : > { %514 = vst [vmem:[#allocation2 + $0x18] sm:$0xff] %v510_v24 }
 0x121   : > { %512 = vst [vmem:[#allocation2 + $0x8] sm:$0xff] %v508_v26 }
 0x125   : > { %v521_v33 = vld [vmem:[#allocation2 + $0x10] sm:$0xff] }
 0x126   : > { %v519_v27 = vld [vmem:[#allocation2] sm:$0xff]  ;;  %v532_v35 = vadd.f32 %v701_v28, %v521_v33 }
 0x127   : > { %v530_v30 = vadd.f32 %v701_v28, %v519_v27  ;;  %v522_v37 = vld [vmem:[#allocation2 + $0x18] sm:$0xff] }
 0x128   : > { %v520_v31 = vld [vmem:[#allocation2 + $0x8] sm:$0xff]  ;;  %v533_v40 = vadd.f32 %v701_v28, %v522_v37  ;;  %v540_v42 = vadd.f32 %v536_v36, %v532_v35 }
 0x129   : > { %v531_v34 = vadd.f32 %v701_v28, %v520_v31  ;;  %v538_v39 = vadd.f32 %v534_v29, %v530_v30 }
 0x12a   : > { %v541_v44 = vadd.f32 %v537_v38, %v533_v40  ;;  %v544_v46 = vmax.f32 %v540_v42, 0.0 }
 0x12b   : > { %v539_v41 = vadd.f32 %v535_v32, %v531_v34  ;;  %v542_v43 = vmax.f32 %v538_v39, 0.0 }
 0x12c   : > { %v545_v47 = vmax.f32 %v541_v44, 0.0  ;;  %548 = vst [vmem:[%s968_s4 + $0x10] sm:$0xff] %v544_v46 }
 0x12d   : > { %v543_v45 = vmax.f32 %v539_v41, 0.0  ;;  %546 = vst [vmem:[%s968_s4] sm:$0xff] %v542_v43 }
 0x12e   : > { %549 = vst [vmem:[%s968_s4 + $0x18] sm:$0xff] %v545_v47 }
 0x12f   : > { %547 = vst [vmem:[%s968_s4 + $0x8] sm:$0xff] %v543_v45 }
 0x130 PF: > { %s14_s19 = sadd.s32 1, %s825_s19   ;;  %s969_s15 = smov %s813_s16 }
 0x131   : > { %p11_p12 = scmp.ge.s32.totalorder %s14_s19, 7   ;;  %s970_s16 = smov %s888_s23 }
 0x132   : > { %s971_s17 = smov %s821_s18  ;;  %s972_s18 = smov %s974_s20 }
 0x133   :  { %13 = sbr.rel (!%p11_p12) target bundleno = 3 (0x3), region = 129 }

// kernel: resnet_forward.19
= control target key start
LH: loop header
LB: loop body
LE: loop exit
PB: predicated region body
PF: predicated region fallthrough
CT: control target
= control target key end

     0   :  { %s722_s12 = smov 0   ;;  %s724_s13 = smov 0   ;;  %s813_s0 = inlined_call_operand.vmem [shape: bf16[16,640], index: 0, kind: input, shape index: {}]   ;;  %s814_s1 = inlined_call_operand.vmem [shape: bf16[640,128], index: 1, kind: input, shape index: {}]   ;;  %s815_s2 = inlined_call_operand.vmem [shape: f32[1,128], index: 2, kind: input, shape index: {}]   ;;  %s816_s3 = inlined_call_operand.vmem [shape: f32[16,128], index: 3, kind: output, shape index: {}]  }
   0x1   :  { %s726_s14 = smov 0   ;;  %s728_s15 = smov 0  }
   0x2   :  { %s730_s16 = smov 0  }
   0x3 LB: > { %s25_s17 = sadd.s32 1, %s693_s15  ;;  %p48_p1 = scmp.ne.s32.totalorder %s685_s13, %s681_s12  ;;  %s697_s16 = sphi %s730_s16, %s13_s16   ;;  %s693_s15 = sphi %s728_s15, %s820_s15   ;;  %s689_s14 = sphi %s726_s14, %s819_s14   ;;  %s685_s13 = sphi %s724_s13, %s818_s13   ;;  %s681_s12 = sphi %s722_s12, %s817_s12  }
   0x4   : > { %p26_p0 = scmp.ge.s32.totalorder %s25_s17, 5  ;;  %p49_p2 = scmp.eq.s32.totalorder %s697_s16, 0 }
   0x5   : > { %s41_s19 = sadd.s32 1, %s685_s13  ;;  %p555_p5 = scmp.ge.s32.totalorder %s697_s16, 5 }
   0x6   : > { %s822_s17 = smov (%p26_p0, %s25_s17), 0  ;;  %p50_p3 = por %p49_p2, %p48_p1 }
   0x7   : > { %s37_s18 = ssub.s32 %s693_s15, %s822_s17  ;;  %162 = sbr.rel (%p555_p5) target bundleno = 21 (0x15), region = 20 }
   0x8   : > { %p39_p4 = scmp.eq.s32.totalorder %s37_s18, 0 }
   0xa   : > { %s757_s20 = scalar_select %p39_p4, %s685_s13, %s41_s19  }
   0xe   : > { %165 = sbr.rel (!%p50_p3) target bundleno = 21 (0x15), region = 24  ;;  %s167_s21 = sand.u32 (%p50_p3), 1, %s685_s13  }
   0xf   : > { %s557_s22 = sshll.u32 (%p50_p3), %s693_s15, 2  ;;  %s556_s23 = sshll.u32 (%p50_p3), %s167_s21, 3 }
  0x10   : > { %s174_s26 = scalar_lea.vmem (%p50_p3), %s813_s0, %s557_s22  ;;  %s169_s27 = scalar_lea.vmem (%p50_p3), [#allocation3], %s556_s23 }
  0x11   : > { %v190_v0 = vld [vmem:[%s174_s26] sm:$0xf] (%p50_p3)  ;;  %v192_v1 = vld [vmem:[%s174_s26 + $0x14] sm:$0xf] (%p50_p3) }
  0x12   : > { %191 = vst [vmem:[%s169_s27] sm:$0xf] (%p50_p3), %v190_v0  ;;  %193 = vst [vmem:[%s169_s27 + $0x4] sm:$0xf] (%p50_p3), %v192_v1 }
  0x15 PF: > { %p558_p6 = scmp.ge.s32.totalorder %s697_s16, 1  ;;  %p231_p7 = scmp.lt.s32.totalorder %s697_s16, 6 }
  0x17   : > { %p232_p8 = pnand %p558_p6, %p231_p7 }
  0x18   : > { %s238_s28 = sand.u32 (!%p232_p8), 1, %s681_s12   ;;  %s560_s29 = sshll.u32 (!%p232_p8), %s689_s14, 4 }
  0x19   : > { %235 = sbr.rel (%p232_p8) target bundleno = 301 (0x12d), region = 69  ;;  %s769_s30 = sshll.u32 (!%p232_p8), %s238_s28, 3 }
  0x1a   : > { %p277_p9 = scmp.lt.s32.totalorder (!%p232_p8), %s560_s29, 79  ;;  %s240_s8 = scalar_lea.vmem (!%p232_p8), [#allocation3], %s769_s30 }
  0x1b   : > { %p562_p10 = scmp.ne.s32.totalorder (!%p232_p8), %s689_s14, 0 }
  0x20   : > { %s824_s29 = smov (!%p277_p9, %s560_s29), 79  ;;  %301 = sbr.rel (%p562_p10) target bundleno = 39 (0x27), region = 77 }
  0x21   : > { %s561_s4 = sshll.u32 %s824_s29, 2  ;;  %v699_v2 = vmov (!%p562_p10), 0.0  }
  0x22   : > { %s774_s7 = scalar_lea.vmem %s814_s1, %s561_s4  ;;  %302 = vst [vmem:[#allocation2] sm:$0xff] (!%p562_p10), %v699_v2  ;;  %303 = vst [vmem:[#allocation2 + $0x8] sm:$0xff] (!%p562_p10), %v699_v2 }
  0x27 PF: > { %v650_v3 = vld [vmem:[%s774_s7] sm:$0xff]   ;;  %v700_v4 = vmov 0.0   ;;  %v651_v5 = vld [vmem:[%s774_s7 + $0x8] sm:$0xff]   ;;  %vm701_vm0 = vmmov 0   ;;  %v652_v6 = vld [vmem:[%s774_s7 + $0x10] sm:$0xff]   ;;  %p572_p11 = scmp.ne.s32.totalorder %s689_s14, 4 }
  0x28   : > { %587 = vmatprep.subr.bf16.mxu0 %v700_v4  ;;  %603 = vmatprep.mubr.msk.bf16.mxu0 %vm701_vm0, %v700_v4  ;;  %v653_v7 = vld [vmem:[%s774_s7 + $0x18] sm:$0xff]   ;;  %v654_v8 = vld [vmem:[%s774_s7 + $0x20] sm:$0xff]   ;;  %v655_v9 = vld [vmem:[%s774_s7 + $0x28] sm:$0xff]  }
  0x29   : > { %588 = vmatpush3.bf16.msra.mxu0 %v650_v3  ;;  %v656_v10 = vld [vmem:[%s774_s7 + $0x30] sm:$0xff]   ;;  %v657_v11 = vld [vmem:[%s774_s7 + $0x38] sm:$0xff]   ;;  %v304_v13 = vld [vmem:[#allocation2] sm:$0xff] }
  0x2a   : > { %589 = vmatprep.subr.bf16.mxu0 %v700_v4  ;;  %v658_v12 = vld [vmem:[%s240_s8] sm:$0xff]   ;;  %v305_v15 = vld [vmem:[#allocation2 + $0x8] sm:$0xff]  ;;  %v573_v22 = vld [vmem:[%s815_s2] ss:$0 sm:$0xff] (!%p572_p11) }
  0x2d   : > { %590 = vmatpush3.bf16.msra.mxu0 %v651_v5 }
  0x2e   : > { %591 = vmatprep.subr.bf16.mxu0 %v700_v4 }
  0x31   : > { %592 = vmatpush3.bf16.msra.mxu0 %v652_v6 }
  0x32   : > { %593 = vmatprep.subr.bf16.mxu0 %v700_v4 }
  0x35   : > { %594 = vmatpush3.bf16.msra.mxu0 %v653_v7 }
  0x36   : > { %595 = vmatprep.subr.bf16.mxu0 %v700_v4 }
  0x39   : > { %596 = vmatpush3.bf16.msra.mxu0 %v654_v8 }
  0x3a   : > { %597 = vmatprep.subr.bf16.mxu0 %v700_v4 }
  0x3d   : > { %598 = vmatpush3.bf16.msra.mxu0 %v655_v9 }
  0x3e   : > { %599 = vmatprep.subr.bf16.mxu0 %v700_v4 }
  0x41   : > { %600 = vmatpush3.bf16.msra.mxu0 %v656_v10 }
  0x42   : > { %601 = vmatprep.subr.bf16.mxu0 %v700_v4 }
  0x45   : > { %602 = vmatpush3.bf16.msra.mxu0 %v657_v11 }
  0x48   : > { %604 = vmatmul.mubr.bf16.vlgmr.msra.gmra.mrb[0].mxu0 %v658_v12 }
 0x11a   : > { %426 = sbr.rel (%p572_p11) target bundleno = 301 (0x12d), region = 81 }
 0x11b   : > { %v412_v14 = vpop.f32.mrb[0].mxu0 }
 0x11c   : > { %v419_v16 = vadd.f32 %v412_v14, %v304_v13  ;;  %v605_v17 = vpop.f32.mrb[1].mxu0 }
 0x11d   : > { %v415_v18 = vpop.f32.mrb[2].mxu0 }
 0x11e   : > { %421 = vst [vmem:[#allocation2] sm:$0xff] %v419_v16  ;;  %v420_v19 = vadd.f32 %v415_v18, %v305_v15  ;;  %v606_v20 = vpop.f32.mrb[3].mxu0 }
 0x120   : > { %422 = vst [vmem:[#allocation2 + $0x8] sm:$0xff] %v420_v19 }
 0x125   : > { %v427_v21 = vld [vmem:[#allocation2] sm:$0xff] }
 0x126   : > { %v436_v24 = vadd.f32 %v573_v22, %v427_v21 }
 0x127   : > { %v428_v23 = vld [vmem:[#allocation2 + $0x8] sm:$0xff] }
 0x128   : > { %v437_v25 = vadd.f32 %v573_v22, %v428_v23  ;;  %v438_v26 = vmax.f32 %v436_v24, 0.0 }
 0x12a   : > { %v439_v27 = vmax.f32 %v437_v25, 0.0  ;;  %440 = vst [vmem:[%s816_s3] sm:$0xff] %v438_v26 }
 0x12c   : > { %441 = vst [vmem:[%s816_s3 + $0x8] sm:$0xff] %v439_v27 }
 0x12d PF: > { %s13_s16 = sadd.s32 1, %s697_s16   ;;  %s817_s12 = smov %s685_s13 }
 0x12e   : > { %p10_p12 = scmp.ge.s32.totalorder %s13_s16, 7   ;;  %s818_s13 = smov %s757_s20 }
 0x12f   : > { %s819_s14 = smov %s693_s15  ;;  %s820_s15 = smov %s822_s17 }
 0x130   :  { %12 = sbr.rel (!%p10_p12) target bundleno = 3 (0x3), region = 122 }

// kernel: resnet_forward.18
= control target key start
LH: loop header
LB: loop body
LE: loop exit
PB: predicated region body
PF: predicated region fallthrough
CT: control target
= control target key end

     0   :  { %v210_v0 = vmov 0.0   ;;  %vm211_vm0 = vmmov 0   ;;  %s268_s1 = inlined_call_operand.vmem [shape: bf16[128,128], index: 1, kind: input, shape index: {}]   ;;  %s269_s0 = inlined_call_operand.vmem [shape: bf16[16,128], index: 0, kind: input, shape index: {}]   ;;  %s270_s2 = inlined_call_operand.vmem [shape: f32[1,128], index: 2, kind: input, shape index: {}]   ;;  %s271_s3 = inlined_call_operand.vmem [shape: f32[16,128], index: 3, kind: output, shape index: {}]  }
   0x1   :  { %179 = vmatprep.subr.bf16.mxu0 %v210_v0  ;;  %v201_v1 = vld [vmem:[%s268_s1] sm:$0xff]   ;;  %195 = vmatprep.mubr.msk.bf16.mxu0 %vm211_vm0, %v210_v0  ;;  %v202_v2 = vld [vmem:[%s268_s1 + $0x8] sm:$0xff]   ;;  %v203_v3 = vld [vmem:[%s268_s1 + $0x10] sm:$0xff]  }
   0x2   :  { %180 = vmatpush3.bf16.msra.mxu0 %v201_v1  ;;  %v204_v4 = vld [vmem:[%s268_s1 + $0x18] sm:$0xff]   ;;  %v205_v5 = vld [vmem:[%s268_s1 + $0x20] sm:$0xff]   ;;  %v206_v6 = vld [vmem:[%s268_s1 + $0x28] sm:$0xff]  }
   0x3   :  { %181 = vmatprep.subr.bf16.mxu0 %v210_v0  ;;  %v207_v7 = vld [vmem:[%s268_s1 + $0x30] sm:$0xff]   ;;  %v208_v8 = vld [vmem:[%s268_s1 + $0x38] sm:$0xff]   ;;  %v209_v9 = vld [vmem:[%s269_s0] sm:$0xff]  }
   0x4   :  { %v169_v10 = vld [vmem:[%s270_s2] ss:$0 sm:$0xff] }
   0x6   :  { %182 = vmatpush3.bf16.msra.mxu0 %v202_v2 }
   0x7   :  { %183 = vmatprep.subr.bf16.mxu0 %v210_v0 }
   0xa   :  { %184 = vmatpush3.bf16.msra.mxu0 %v203_v3 }
   0xb   :  { %185 = vmatprep.subr.bf16.mxu0 %v210_v0 }
   0xe   :  { %186 = vmatpush3.bf16.msra.mxu0 %v204_v4 }
   0xf   :  { %187 = vmatprep.subr.bf16.mxu0 %v210_v0 }
  0x12   :  { %188 = vmatpush3.bf16.msra.mxu0 %v205_v5 }
  0x13   :  { %189 = vmatprep.subr.bf16.mxu0 %v210_v0 }
  0x16   :  { %190 = vmatpush3.bf16.msra.mxu0 %v206_v6 }
  0x17   :  { %191 = vmatprep.subr.bf16.mxu0 %v210_v0 }
  0x1a   :  { %192 = vmatpush3.bf16.msra.mxu0 %v207_v7 }
  0x1b   :  { %193 = vmatprep.subr.bf16.mxu0 %v210_v0 }
  0x1e   :  { %194 = vmatpush3.bf16.msra.mxu0 %v208_v8 }
  0x21   :  { %196 = vmatmul.mubr.bf16.vlgmr.msra.gmra.mrb[0].mxu0 %v209_v9 }
  0xf4   :  { %v129_v11 = vpop.f32.mrb[0].mxu0 }
  0xf5   :  { %v152_v12 = vadd.f32 %v169_v10, %v129_v11  ;;  %v197_v13 = vpop.f32.mrb[1].mxu0 }
  0xf6   :  { %v132_v14 = vpop.f32.mrb[2].mxu0 }
  0xf7   :  { %154 = vst [vmem:[%s271_s3] sm:$0xff] %v152_v12  ;;  %v153_v15 = vadd.f32 %v169_v10, %v132_v14  ;;  %v198_v16 = vpop.f32.mrb[3].mxu0 }
  0xf9   :  { %155 = vst [vmem:[%s271_s3 + $0x8] sm:$0xff] %v153_v15 }

// kernel: resnet_forward.20
= control target key start
LH: loop header
LB: loop body
LE: loop exit
PB: predicated region body
PF: predicated region fallthrough
CT: control target
= control target key end

     0   :  { %s1050_s15 = smov 0   ;;  %s1052_s16 = smov 0   ;;  %s1163_s0 = inlined_call_operand.vmem [shape: bf16[16,1152], index: 0, kind: input, shape index: {}]   ;;  %s1164_s1 = inlined_call_operand.vmem [shape: bf16[1152,128], index: 1, kind: input, shape index: {}]   ;;  %s1165_s2 = inlined_call_operand.vmem [shape: f32[1,128], index: 2, kind: input, shape index: {}]   ;;  %s1166_s3 = inlined_call_operand.vmem [shape: f32[16,128], index: 3, kind: input, shape index: {}]   ;;  %s1167_s4 = inlined_call_operand.vmem [shape: f32[16,128], index: 4, kind: output, shape index: {}]  }
   0x1   :  { %s1054_s17 = smov 0   ;;  %s1056_s18 = smov 0  }
   0x2   :  { %s1058_s19 = smov 0  }
   0x3 LB: > { %s26_s20 = sadd.s32 1, %s1016_s18  ;;  %p49_p1 = scmp.ne.s32.totalorder %s1008_s16, %s1004_s15  ;;  %s1020_s19 = sphi %s1058_s19, %s14_s19   ;;  %s1016_s18 = sphi %s1056_s18, %s1171_s18   ;;  %s1012_s17 = sphi %s1054_s17, %s1170_s17   ;;  %s1008_s16 = sphi %s1052_s16, %s1169_s16   ;;  %s1004_s15 = sphi %s1050_s15, %s1168_s15  }
   0x4   : > { %p27_p0 = scmp.ge.s32.totalorder %s26_s20, 3  ;;  %p50_p2 = scmp.eq.s32.totalorder %s1020_s19, 0 }
   0x5   : > { %s42_s22 = sadd.s32 1, %s1008_s16  ;;  %p815_p5 = scmp.ge.s32.totalorder %s1020_s19, 3 }
   0x6   : > { %s1173_s20 = smov (%p27_p0, %s26_s20), 0  ;;  %p51_p3 = por %p50_p2, %p49_p1 }
   0x7   : > { %s38_s21 = ssub.s32 %s1016_s18, %s1173_s20  ;;  %203 = sbr.rel (%p815_p5) target bundleno = 21 (0x15), region = 24 }
   0x8   : > { %p40_p4 = scmp.eq.s32.totalorder %s38_s21, 0 }
   0xa   : > { %s1085_s23 = scalar_select %p40_p4, %s1008_s16, %s42_s22  }
   0xe   : > { %206 = sbr.rel (!%p51_p3) target bundleno = 21 (0x15), region = 28  ;;  %s208_s24 = sand.u32 (%p51_p3), 1, %s1008_s16  }
   0xf   : > { %s857_s25 = smul.u32 (%p51_p3), 12, %s1016_s18 }
  0x10   : > { %s909_s26 = smul.u32 (%p51_p3), 24, %s208_s24 }
  0x11   : > { %s216_s29 = scalar_lea.vmem (%p51_p3), %s1163_s0, %s857_s25 }
  0x12   : > { %v231_v0 = vld [vmem:[%s216_s29] sm:$0xff] (%p51_p3)  ;;  %v817_v2 = vld [vmem:[%s216_s29 + $0x8] sm:$0xf] (%p51_p3)  ;;  %s210_s30 = scalar_lea.vmem (%p51_p3), [#allocation3], %s909_s26  ;;  %v819_v3 = vld [vmem:[%s216_s29 + $0x2c] sm:$0xf] (%p51_p3) }
  0x13   : > { %v233_v1 = vld [vmem:[%s216_s29 + $0x24] sm:$0xff] (%p51_p3)  ;;  %232 = vst [vmem:[%s210_s30] sm:$0xff] (%p51_p3), %v231_v0  ;;  %818 = vst [vmem:[%s210_s30 + $0x8] sm:$0xf] (%p51_p3), %v817_v2 }
  0x14   : > { %234 = vst [vmem:[%s210_s30 + $0xc] sm:$0xff] (%p51_p3), %v233_v1  ;;  %820 = vst [vmem:[%s210_s30 + $0x14] sm:$0xf] (%p51_p3), %v819_v3 }
  0x15 PF: > { %p821_p6 = scmp.ge.s32.totalorder %s1020_s19, 1  ;;  %p262_p7 = scmp.lt.s32.totalorder %s1020_s19, 4 }
  0x17   : > { %p263_p8 = pnand %p821_p6, %p262_p7 }
  0x18   : > { %s269_s5 = sand.u32 (!%p263_p8), 1, %s1004_s15   ;;  %s318_s6 = smul.u32 (!%p263_p8), 48, %s1012_s17 }
  0x19   : > { %266 = sbr.rel (%p263_p8) target bundleno = 308 (0x134), region = 58  ;;  %p823_p10 = scmp.ne.s32.totalorder (!%p263_p8), %s1012_s17, 0 }
  0x1a   : > { %s910_s7 = smul.u32 (!%p263_p8), 24, %s269_s5  ;;  %p319_p9 = scmp.lt.s32.totalorder (!%p263_p8), %s318_s6, 143 }
  0x1c   : > { %s1102_s12 = scalar_lea.vmem (!%p263_p8), [#allocation3], %s910_s7 }
  0x20   : > { %s1175_s6 = smov (!%p319_p9, %s318_s6), 143  ;;  %352 = sbr.rel (%p823_p10) target bundleno = 39 (0x27), region = 66 }
  0x21   : > { %s822_s8 = sshll.u32 %s1175_s6, 2  ;;  %v1022_v4 = vmov (!%p823_p10), 0.0  }
  0x22   : > { %s1100_s11 = scalar_lea.vmem %s1164_s1, %s822_s8  ;;  %353 = vst [vmem:[#allocation2] sm:$0xff] (!%p823_p10), %v1022_v4  ;;  %354 = vst [vmem:[#allocation2 + $0x8] sm:$0xff] (!%p823_p10), %v1022_v4 }
  0x27 PF: > { %v954_v5 = vld [vmem:[%s1100_s11 + $0x40] sm:$0xff]   ;;  %v1023_v6 = vmov 0.0   ;;  %vm1024_vm0 = vmmov 0   ;;  %v957_v9 = vld [vmem:[%s1100_s11 + $0x48] sm:$0xff]   ;;  %v960_v12 = vld [vmem:[%s1100_s11 + $0x50] sm:$0xff]   ;;  %p851_p11 = scmp.ne.s32.totalorder %s1012_s17, 2 }
  0x28   : > { %889 = vmatprep.subr.bf16.mxu1 %v1023_v6  ;;  %v955_v7 = vld [vmem:[%s1100_s11] sm:$0xff]   ;;  %858 = vmatprep.subr.bf16.mxu0 %v954_v5  ;;  %v958_v10 = vld [vmem:[%s1100_s11 + $0x8] sm:$0xff]   ;;  %v961_v13 = vld [vmem:[%s1100_s11 + $0x10] sm:$0xff]  }
  0x29   : > { %v956_v8 = vld [vmem:[%s1100_s11 + $0x80] sm:$0xff]   ;;  %905 = vmatprep.mubr.msk.bf16.mxu1 %vm1024_vm0, %v1023_v6  ;;  %859 = vmatpush3.bf16.msra.mxu0 %v955_v7  ;;  %v959_v11 = vld [vmem:[%s1100_s11 + $0x88] sm:$0xff]   ;;  %v962_v14 = vld [vmem:[%s1100_s11 + $0x90] sm:$0xff]  }
  0x2a   : > { %890 = vmatpush3.bf16.msra.mxu1 %v956_v8  ;;  %860 = vmatprep.subr.bf16.mxu0 %v957_v9  ;;  %v963_v15 = vld [vmem:[%s1100_s11 + $0x58] sm:$0xff]   ;;  %v966_v18 = vld [vmem:[%s1100_s11 + $0x60] sm:$0xff]   ;;  %v969_v21 = vld [vmem:[%s1100_s11 + $0x68] sm:$0xff]  }
  0x2b   : > { %891 = vmatprep.subr.bf16.mxu1 %v1023_v6  ;;  %v964_v16 = vld [vmem:[%s1100_s11 + $0x18] sm:$0xff]   ;;  %v967_v19 = vld [vmem:[%s1100_s11 + $0x20] sm:$0xff]   ;;  %v970_v22 = vld [vmem:[%s1100_s11 + $0x28] sm:$0xff]  }
  0x2c   : > { %v965_v17 = vld [vmem:[%s1100_s11 + $0x98] sm:$0xff]   ;;  %v968_v20 = vld [vmem:[%s1100_s11 + $0xa0] sm:$0xff]   ;;  %v971_v23 = vld [vmem:[%s1100_s11 + $0xa8] sm:$0xff]  }
  0x2d   : > { %861 = vmatpush3.bf16.msra.mxu0 %v958_v10  ;;  %v972_v24 = vld [vmem:[%s1100_s11 + $0x70] sm:$0xff]   ;;  %v975_v27 = vld [vmem:[%s1100_s11 + $0x78] sm:$0xff]   ;;  %v355_v39 = vld [vmem:[#allocation2] sm:$0xff] }
  0x2e   : > { %892 = vmatpush3.bf16.msra.mxu1 %v959_v11  ;;  %862 = vmatprep.subr.bf16.mxu0 %v960_v12  ;;  %v973_v25 = vld [vmem:[%s1100_s11 + $0x30] sm:$0xff]   ;;  %v976_v29 = vld [vmem:[%s1100_s11 + $0x38] sm:$0xff]   ;;  %v356_v45 = vld [vmem:[#allocation2 + $0x8] sm:$0xff] }
  0x2f   : > { %893 = vmatprep.subr.bf16.mxu1 %v1023_v6  ;;  %v974_v26 = vld [vmem:[%s1100_s11 + $0xb0] sm:$0xff]   ;;  %v977_v30 = vld [vmem:[%s1100_s11 + $0xb8] sm:$0xff]   ;;  %v852_v50 = vld [vmem:[%s1165_s2] ss:$0 sm:$0xff] (!%p851_p11) }
  0x30   : > { %v980_v28 = vld [vmem:[%s1102_s12 + $0x4] ss:$12 sps:$4 sm:$0xff]   ;;  %v978_v31 = vld [vmem:[%s1102_s12] ss:$12 sps:$4 sm:$0xff]   ;;  %v981_v32 = vld [vmem:[%s1102_s12 + $0x8] ss:$12 sps:$4 sm:$0xff]  }
  0x31   : > { %863 = vmatpush3.bf16.msra.mxu0 %v961_v13  ;;  %601 = vmatprep.mubr.bf16.mxu0 %v980_v28  ;;  %v670_v51 = vld [vmem:[%s1166_s3] sm:$0xff] (!%p851_p11)  ;;  %v671_v54 = vld [vmem:[%s1166_s3 + $0x8] sm:$0xff] (!%p851_p11) }
  0x32   : > { %894 = vmatpush3.bf16.msra.mxu1 %v962_v14  ;;  %864 = vmatprep.subr.bf16.mxu0 %v963_v15 }
  0x33   : > { %895 = vmatprep.subr.bf16.mxu1 %v1023_v6 }
  0x35   : > { %865 = vmatpush3.bf16.msra.mxu0 %v964_v16 }
  0x36   : > { %896 = vmatpush3.bf16.msra.mxu1 %v965_v17  ;;  %866 = vmatprep.subr.bf16.mxu0 %v966_v18 }
  0x37   : > { %897 = vmatprep.subr.bf16.mxu1 %v1023_v6 }
  0x39   : > { %867 = vmatpush3.bf16.msra.mxu0 %v967_v19 }
  0x3a   : > { %898 = vmatpush3.bf16.msra.mxu1 %v968_v20  ;;  %868 = vmatprep.subr.bf16.mxu0 %v969_v21 }
  0x3b   : > { %899 = vmatprep.subr.bf16.mxu1 %v1023_v6 }
  0x3d   : > { %869 = vmatpush3.bf16.msra.mxu0 %v970_v22 }
  0x3e   : > { %900 = vmatpush3.bf16.msra.mxu1 %v971_v23  ;;  %870 = vmatprep.subr.bf16.mxu0 %v972_v24 }
  0x3f   : > { %901 = vmatprep.subr.bf16.mxu1 %v1023_v6 }
  0x41   : > { %871 = vmatpush3.bf16.msra.mxu0 %v973_v25 }
  0x42   : > { %902 = vmatpush3.bf16.msra.mxu1 %v974_v26  ;;  %872 = vmatprep.subr.bf16.mxu0 %v975_v27 }
  0x43   : > { %903 = vmatprep.subr.bf16.mxu1 %v1023_v6 }
  0x45   : > { %873 = vmatpush3.bf16.msra.mxu0 %v976_v29 }
  0x46   : > { %904 = vmatpush3.bf16.msra.mxu1 %v977_v30 }
  0x48   : > { %602 = vmatmul.mubr.bf16.vlgmr.msra.gmra.mrb[0].mxu0 %v978_v31 }
  0x49   : > { %906 = vmatmul.mubr.bf16.vlgmr.msra.gmra.mrb[0].mxu1 %v981_v32 }
 0x11b   : > { %v874_v33 = vpop.f32.mrb[0].mxu0 }
 0x11c   : > { %v644_v34 = vpop.f32.mrb[0].mxu1  ;;  %v875_v35 = vpop.f32.mrb[1].mxu0 }
 0x11d   : > { %v876_v36 = vadd.f32 %v875_v35, %v874_v33  ;;  %v907_v37 = vpop.f32.mrb[1].mxu1  ;;  %v877_v38 = vpop.f32.mrb[2].mxu0 }
 0x11e   : > { %v647_v40 = vpop.f32.mrb[2].mxu1  ;;  %v878_v41 = vpop.f32.mrb[3].mxu0 }
 0x11f   : > { %v645_v42 = vadd.f32 %v876_v36, %v644_v34  ;;  %v879_v43 = vadd.f32 %v878_v41, %v877_v38  ;;  %v908_v44 = vpop.f32.mrb[3].mxu1  ;;  %658 = sbr.rel (%p851_p11) target bundleno = 308 (0x134), region = 70 }
 0x121   : > { %v651_v46 = vadd.f32 %v645_v42, %v355_v39  ;;  %v648_v47 = vadd.f32 %v879_v43, %v647_v40 }
 0x123   : > { %653 = vst [vmem:[#allocation2] sm:$0xff] %v651_v46  ;;  %v652_v48 = vadd.f32 %v648_v47, %v356_v45 }
 0x125   : > { %654 = vst [vmem:[#allocation2 + $0x8] sm:$0xff] %v652_v48 }
 0x12a   : > { %v659_v49 = vld [vmem:[#allocation2] sm:$0xff] }
 0x12b   : > { %v668_v52 = vadd.f32 %v852_v50, %v659_v49 }
 0x12c   : > { %v660_v53 = vld [vmem:[#allocation2 + $0x8] sm:$0xff] }
 0x12d   : > { %v669_v55 = vadd.f32 %v852_v50, %v660_v53  ;;  %v672_v56 = vadd.f32 %v670_v51, %v668_v52 }
 0x12f   : > { %v673_v57 = vadd.f32 %v671_v54, %v669_v55  ;;  %v674_v58 = vmax.f32 %v672_v56, 0.0 }
 0x131   : > { %v675_v59 = vmax.f32 %v673_v57, 0.0  ;;  %676 = vst [vmem:[%s1167_s4] sm:$0xff] %v674_v58 }
 0x133   : > { %677 = vst [vmem:[%s1167_s4 + $0x8] sm:$0xff] %v675_v59 }
 0x134 PF: > { %s14_s19 = sadd.s32 1, %s1020_s19   ;;  %s1168_s15 = smov %s1008_s16 }
 0x135   : > { %p11_p12 = scmp.ge.s32.totalorder %s14_s19, 5   ;;  %s1169_s16 = smov %s1085_s23 }
 0x136   : > { %s1170_s17 = smov %s1016_s18  ;;  %s1171_s18 = smov %s1173_s20 }
 0x137   :  { %13 = sbr.rel (!%p11_p12) target bundleno = 3 (0x3), region = 120 }

// kernel: resnet_forward.22
= control target key start
LH: loop header
LB: loop body
LE: loop exit
PB: predicated region body
PF: predicated region fallthrough
CT: control target
= control target key end

     0   :  { %s1137_s12 = smov 0   ;;  %s1139_s13 = smov 0   ;;  %s1274_s0 = inlined_call_operand.vmem [shape: bf16[16,1152], index: 0, kind: input, shape index: {}]   ;;  %s1275_s1 = inlined_call_operand.vmem [shape: bf16[1152,256], index: 1, kind: input, shape index: {}]   ;;  %s1276_s2 = inlined_call_operand.vmem [shape: f32[1,256], index: 2, kind: input, shape index: {}]   ;;  %s1277_s3 = inlined_call_operand.vmem [shape: f32[16,256], index: 3, kind: output, shape index: {}]  }
   0x1   :  { %s1141_s14 = smov 0   ;;  %s1143_s15 = smov 0  }
   0x2   :  { %s1145_s16 = smov 0  }
   0x3 LB: > { %s25_s17 = sadd.s32 1, %s1109_s15  ;;  %p48_p1 = scmp.ne.s32.totalorder %s1101_s13, %s1097_s12  ;;  %s1113_s16 = sphi %s1145_s16, %s13_s16   ;;  %s1109_s15 = sphi %s1143_s15, %s1281_s15   ;;  %s1105_s14 = sphi %s1141_s14, %s1280_s14   ;;  %s1101_s13 = sphi %s1139_s13, %s1279_s13   ;;  %s1097_s12 = sphi %s1137_s12, %s1278_s12  }
   0x4   : > { %p26_p0 = scmp.ge.s32.totalorder %s25_s17, 3  ;;  %p49_p2 = scmp.eq.s32.totalorder %s1113_s16, 0 }
   0x5   : > { %s41_s19 = sadd.s32 1, %s1101_s13  ;;  %p883_p5 = scmp.ge.s32.totalorder %s1113_s16, 3 }
   0x6   : > { %s1283_s17 = smov (%p26_p0, %s25_s17), 0  ;;  %p50_p3 = por %p49_p2, %p48_p1 }
   0x7   : > { %s37_s18 = ssub.s32 %s1109_s15, %s1283_s17  ;;  %164 = sbr.rel (%p883_p5) target bundleno = 21 (0x15), region = 20 }
   0x8   : > { %p39_p4 = scmp.eq.s32.totalorder %s37_s18, 0 }
   0xa   : > { %s1172_s20 = scalar_select %p39_p4, %s1101_s13, %s41_s19  }
   0xe   : > { %167 = sbr.rel (!%p50_p3) target bundleno = 21 (0x15), region = 24  ;;  %s169_s21 = sand.u32 (%p50_p3), 1, %s1101_s13  }
   0xf   : > { %s949_s22 = smul.u32 (%p50_p3), 12, %s1109_s15 }
  0x10   : > { %s955_s23 = smul.u32 (%p50_p3), 24, %s169_s21 }
  0x11   : > { %s177_s26 = scalar_lea.vmem (%p50_p3), %s1274_s0, %s949_s22 }
  0x12   : > { %v192_v0 = vld [vmem:[%s177_s26] sm:$0xff] (%p50_p3)  ;;  %v885_v2 = vld [vmem:[%s177_s26 + $0x8] sm:$0xf] (%p50_p3)  ;;  %s171_s27 = scalar_lea.vmem (%p50_p3), [#allocation3], %s955_s23  ;;  %v887_v3 = vld [vmem:[%s177_s26 + $0x2c] sm:$0xf] (%p50_p3) }
  0x13   : > { %v194_v1 = vld [vmem:[%s177_s26 + $0x24] sm:$0xff] (%p50_p3)  ;;  %193 = vst [vmem:[%s171_s27] sm:$0xff] (%p50_p3), %v192_v0  ;;  %886 = vst [vmem:[%s171_s27 + $0x8] sm:$0xf] (%p50_p3), %v885_v2 }
  0x14   : > { %195 = vst [vmem:[%s171_s27 + $0xc] sm:$0xff] (%p50_p3), %v194_v1  ;;  %888 = vst [vmem:[%s171_s27 + $0x14] sm:$0xf] (%p50_p3), %v887_v3 }
  0x15 PF: > { %p889_p6 = scmp.ge.s32.totalorder %s1113_s16, 1  ;;  %p226_p7 = scmp.lt.s32.totalorder %s1113_s16, 4 }
  0x17   : > { %p227_p8 = pnand %p889_p6, %p226_p7 }
  0x18   : > { %s233_s28 = sand.u32 (!%p227_p8), 1, %s1097_s12   ;;  %s277_s29 = smul.u32 (!%p227_p8), 48, %s1105_s14 }
  0x19   : > { %230 = sbr.rel (%p227_p8) target bundleno = 336 (0x150), region = 54  ;;  %p892_p10 = scmp.ne.s32.totalorder (!%p227_p8), %s1105_s14, 0 }
  0x1a   : > { %s956_s30 = smul.u32 (!%p227_p8), 24, %s233_s28  ;;  %p279_p9 = scmp.lt.s32.totalorder (!%p227_p8), %s277_s29, 143 }
  0x1c   : > { %s1189_s8 = scalar_lea.vmem (!%p227_p8), [#allocation3], %s956_s30 }
  0x20   : > { %s1285_s29 = smov (!%p279_p9, %s277_s29), 143  ;;  %310 = sbr.rel (%p892_p10) target bundleno = 39 (0x27), region = 62 }
  0x21   : > { %s950_s4 = sshll.u32 %s1285_s29, 3  ;;  %v1115_v4 = vmov (!%p892_p10), 0.0  }
  0x22   : > { %s1187_s7 = scalar_lea.vmem %s1275_s1, %s950_s4  ;;  %311 = vst [vmem:[#allocation2] sm:$0xff] (!%p892_p10), %v1115_v4  ;;  %312 = vst [vmem:[#allocation2 + $0x8] sm:$0xff] (!%p892_p10), %v1115_v4 }
  0x23   : > { %313 = vst [vmem:[#allocation2 + $0x10] sm:$0xff] (!%p892_p10), %v1115_v4  ;;  %314 = vst [vmem:[#allocation2 + $0x18] sm:$0xff] (!%p892_p10), %v1115_v4 }
  0x27 PF: > { %v999_v5 = vld [vmem:[%s1187_s7 + $0x4] ss:$8 sps:$4 sm:$0xff]   ;;  %v1001_v6 = vld [vmem:[%s1187_s7] ss:$8 sps:$4 sm:$0xff]   ;;  %v1116_v7 = vmov 0   ;;  %p944_p11 = scmp.ne.s32.totalorder %s1105_s14, 2 }
  0x28   : > { %702 = vmatprep.mubr.bf16.mxu0 %v1116_v7  ;;  %627 = vmatprep.subr.bf16.mxu1 %v999_v5  ;;  %v1002_v8 = vld [vmem:[%s1187_s7 + $0x14] ss:$8 sps:$4 sm:$0xff]   ;;  %v1004_v9 = vld [vmem:[%s1187_s7 + $0x10] ss:$8 sps:$4 sm:$0xff]   ;;  %v1005_v10 = vld [vmem:[%s1187_s7 + $0x24] ss:$8 sps:$4 sm:$0xff]  }
  0x29   : > { %628 = vmatpush1.bf16.msra.mxu1 %v1001_v6  ;;  %v1007_v11 = vld [vmem:[%s1187_s7 + $0x20] ss:$8 sps:$4 sm:$0xff]   ;;  %v1008_v12 = vld [vmem:[%s1187_s7 + $0x34] ss:$8 sps:$4 sm:$0xff]   ;;  %v1010_v13 = vld [vmem:[%s1187_s7 + $0x30] ss:$8 sps:$4 sm:$0xff]  }
  0x2a   : > { %629 = vmatprep.subr.bf16.mxu1 %v1002_v8  ;;  %v1023_v14 = vld [vmem:[%s1187_s7 + $0x104] ss:$8 sps:$4 sm:$0xff]   ;;  %v1025_v15 = vld [vmem:[%s1187_s7 + $0x100] ss:$8 sps:$4 sm:$0xff]   ;;  %v1029_v17 = vld [vmem:[%s1187_s7 + $0x114] ss:$8 sps:$4 sm:$0xff]  }
  0x2b   : > { %v1011_v16 = vld [vmem:[%s1187_s7 + $0x44] ss:$8 sps:$4 sm:$0xff]   ;;  %670 = vmatprep.subr.bf16.mxu0 %v1023_v14  ;;  %v1031_v18 = vld [vmem:[%s1187_s7 + $0x110] ss:$8 sps:$4 sm:$0xff]   ;;  %v1013_v19 = vld [vmem:[%s1187_s7 + $0x40] ss:$8 sps:$4 sm:$0xff]  }
  0x2c   : > { %671 = vmatpush1.bf16.msra.mxu0 %v1025_v15  ;;  %v1014_v20 = vld [vmem:[%s1187_s7 + $0x54] ss:$8 sps:$4 sm:$0xff]   ;;  %v1035_v21 = vld [vmem:[%s1187_s7 + $0x124] ss:$8 sps:$4 sm:$0xff]   ;;  %v1037_v22 = vld [vmem:[%s1187_s7 + $0x120] ss:$8 sps:$4 sm:$0xff]  }
  0x2d   : > { %630 = vmatpush1.bf16.msra.mxu1 %v1004_v9  ;;  %672 = vmatprep.subr.bf16.mxu0 %v1029_v17  ;;  %v1016_v23 = vld [vmem:[%s1187_s7 + $0x50] ss:$8 sps:$4 sm:$0xff]   ;;  %v1041_v24 = vld [vmem:[%s1187_s7 + $0x134] ss:$8 sps:$4 sm:$0xff]   ;;  %v1017_v25 = vld [vmem:[%s1187_s7 + $0x64] ss:$8 sps:$4 sm:$0xff]  }
  0x2e   : > { %631 = vmatprep.subr.bf16.mxu1 %v1005_v10  ;;  %v1043_v26 = vld [vmem:[%s1187_s7 + $0x130] ss:$8 sps:$4 sm:$0xff]   ;;  %v1019_v27 = vld [vmem:[%s1187_s7 + $0x60] ss:$8 sps:$4 sm:$0xff]   ;;  %v1047_v28 = vld [vmem:[%s1187_s7 + $0x144] ss:$8 sps:$4 sm:$0xff]  }
  0x2f   : > { %v1020_v29 = vld [vmem:[%s1187_s7 + $0x74] ss:$8 sps:$4 sm:$0xff]   ;;  %v1049_v30 = vld [vmem:[%s1187_s7 + $0x140] ss:$8 sps:$4 sm:$0xff]   ;;  %v1022_v31 = vld [vmem:[%s1187_s7 + $0x70] ss:$8 sps:$4 sm:$0xff]  }
  0x30   : > { %673 = vmatpush1.bf16.msra.mxu0 %v1031_v18  ;;  %v1053_v32 = vld [vmem:[%s1187_s7 + $0x154] ss:$8 sps:$4 sm:$0xff]   ;;  %v1026_v33 = vld [vmem:[%s1187_s7 + $0x84] ss:$8 sps:$4 sm:$0xff]   ;;  %v1055_v34 = vld [vmem:[%s1187_s7 + $0x150] ss:$8 sps:$4 sm:$0xff]  }
  0x31   : > { %632 = vmatpush1.bf16.msra.mxu1 %v1007_v11  ;;  %674 = vmatprep.subr.bf16.mxu0 %v1035_v21  ;;  %v1028_v35 = vld [vmem:[%s1187_s7 + $0x80] ss:$8 sps:$4 sm:$0xff]   ;;  %v1059_v36 = vld [vmem:[%s1187_s7 + $0x164] ss:$8 sps:$4 sm:$0xff]   ;;  %v1032_v37 = vld [vmem:[%s1187_s7 + $0x94] ss:$8 sps:$4 sm:$0xff]  }
  0x32   : > { %633 = vmatprep.subr.bf16.mxu1 %v1008_v12  ;;  %v1061_v38 = vld [vmem:[%s1187_s7 + $0x160] ss:$8 sps:$4 sm:$0xff]   ;;  %v1034_v40 = vld [vmem:[%s1187_s7 + $0x90] ss:$8 sps:$4 sm:$0xff]   ;;  %v1065_v41 = vld [vmem:[%s1187_s7 + $0x174] ss:$8 sps:$4 sm:$0xff]  }
  0x33   : > { %v1074_v39 = vld [vmem:[%s1189_s8 + $0x4] ss:$12 sps:$4 sm:$0xff]   ;;  %v1071_v46 = vld [vmem:[%s1189_s8 + $0x8] ss:$12 sps:$4 sm:$0xff]   ;;  %v1072_v56 = vld [vmem:[%s1189_s8] ss:$12 sps:$4 sm:$0xff]  }
  0x34   : > { %675 = vmatpush1.bf16.msra.mxu0 %v1037_v22  ;;  %v1038_v42 = vld [vmem:[%s1187_s7 + $0xa4] ss:$8 sps:$4 sm:$0xff]   ;;  %659 = vmatprep.mubr.bf16.mxu1 %v1074_v39  ;;  %v1067_v43 = vld [vmem:[%s1187_s7 + $0x170] ss:$8 sps:$4 sm:$0xff]   ;;  %v1040_v44 = vld [vmem:[%s1187_s7 + $0xa0] ss:$8 sps:$4 sm:$0xff]  }
  0x35   : > { %634 = vmatpush1.bf16.msra.mxu1 %v1010_v13  ;;  %676 = vmatprep.subr.bf16.mxu0 %v1041_v24  ;;  %v1044_v45 = vld [vmem:[%s1187_s7 + $0xb4] ss:$8 sps:$4 sm:$0xff]   ;;  %v1046_v47 = vld [vmem:[%s1187_s7 + $0xb0] ss:$8 sps:$4 sm:$0xff]   ;;  %v1050_v48 = vld [vmem:[%s1187_s7 + $0xc4] ss:$8 sps:$4 sm:$0xff]   ;;  %v731_v13 = vlaneseq (!%p944_p11) }
  0x36   : > { %635 = vmatprep.subr.bf16.mxu1 %v1011_v16  ;;  %v1052_v49 = vld [vmem:[%s1187_s7 + $0xc0] ss:$8 sps:$4 sm:$0xff]   ;;  %v1056_v50 = vld [vmem:[%s1187_s7 + $0xd4] ss:$8 sps:$4 sm:$0xff]   ;;  %v1058_v51 = vld [vmem:[%s1187_s7 + $0xd0] ss:$8 sps:$4 sm:$0xff]  }
  0x37   : > { %v1062_v52 = vld [vmem:[%s1187_s7 + $0xe4] ss:$8 sps:$4 sm:$0xff]   ;;  %v1064_v53 = vld [vmem:[%s1187_s7 + $0xe0] ss:$8 sps:$4 sm:$0xff]   ;;  %v1068_v54 = vld [vmem:[%s1187_s7 + $0xf4] ss:$8 sps:$4 sm:$0xff]  }
  0x38   : > { %677 = vmatpush1.bf16.msra.mxu0 %v1043_v26  ;;  %v1070_v55 = vld [vmem:[%s1187_s7 + $0xf0] ss:$8 sps:$4 sm:$0xff]   ;;  %v315_v61 = vld [vmem:[#allocation2] sm:$0xff]  ;;  %v316_v0 = vld [vmem:[#allocation2 + $0x8] sm:$0xff]  ;;  %v732_v14 = vshrl.u32 (!%p944_p11), %v731_v13, 7 }
  0x39   : > { %636 = vmatpush1.bf16.msra.mxu1 %v1013_v19  ;;  %678 = vmatprep.subr.bf16.mxu0 %v1047_v28  ;;  %v317_v3 = vld [vmem:[#allocation2 + $0x10] sm:$0xff]  ;;  %v318_v7 = vld [vmem:[#allocation2 + $0x18] sm:$0xff]  ;;  %v729_v15 = vld [vmem:[%s1276_s2] sm:$0x3] (!%p944_p11) }
  0x3a   : > { %637 = vmatprep.subr.bf16.mxu1 %v1014_v20  ;;  %v733_v17 = vsub.s32 (!%p944_p11), 0, %v732_v14  ;;  %v737_v18 = vsub.s32 (!%p944_p11), 1, %v732_v14 }
  0x3c   : > { %679 = vmatpush1.bf16.msra.mxu0 %v1049_v30  ;;  %v734_v22 = vrot.slane (!%p944_p11), %v729_v15, %v733_v17 }
  0x3d   : > { %638 = vmatpush1.bf16.msra.mxu1 %v1016_v23  ;;  %680 = vmatprep.subr.bf16.mxu0 %v1053_v32  ;;  %v738_v23 = vrot.slane (!%p944_p11), %v729_v15, %v737_v18 }
  0x3e   : > { %639 = vmatprep.subr.bf16.mxu1 %v1017_v25 }
  0x40   : > { %681 = vmatpush1.bf16.msra.mxu0 %v1055_v34 }
  0x41   : > { %640 = vmatpush1.bf16.msra.mxu1 %v1019_v27  ;;  %682 = vmatprep.subr.bf16.mxu0 %v1059_v36 }
  0x42   : > { %641 = vmatprep.subr.bf16.mxu1 %v1020_v29 }
  0x44   : > { %683 = vmatpush1.bf16.msra.mxu0 %v1061_v38 }
  0x45   : > { %642 = vmatpush1.bf16.msra.mxu1 %v1022_v31  ;;  %684 = vmatprep.subr.bf16.mxu0 %v1065_v41 }
  0x46   : > { %643 = vmatprep.subr.bf16.mxu1 %v1026_v33 }
  0x48   : > { %685 = vmatpush1.bf16.msra.mxu0 %v1067_v43 }
  0x49   : > { %644 = vmatpush1.bf16.msra.mxu1 %v1028_v35 }
  0x4a   : > { %645 = vmatprep.subr.bf16.mxu1 %v1032_v37 }
  0x4b   : > { %703 = vmatmul.mubr.bf16.vlgmr.msra.gmra.mrb[0].mxu0 %v1071_v46 }
  0x4d   : > { %646 = vmatpush1.bf16.msra.mxu1 %v1034_v40 }
  0x4e   : > { %647 = vmatprep.subr.bf16.mxu1 %v1038_v42 }
  0x51   : > { %648 = vmatpush1.bf16.msra.mxu1 %v1040_v44 }
  0x52   : > { %649 = vmatprep.subr.bf16.mxu1 %v1044_v45 }
  0x55   : > { %650 = vmatpush1.bf16.msra.mxu1 %v1046_v47 }
  0x56   : > { %651 = vmatprep.subr.bf16.mxu1 %v1050_v48 }
  0x59   : > { %652 = vmatpush1.bf16.msra.mxu1 %v1052_v49 }
  0x5a   : > { %653 = vmatprep.subr.bf16.mxu1 %v1056_v50 }
  0x5d   : > { %654 = vmatpush1.bf16.msra.mxu1 %v1058_v51 }
  0x5e   : > { %655 = vmatprep.subr.bf16.mxu1 %v1062_v52 }
  0x61   : > { %656 = vmatpush1.bf16.msra.mxu1 %v1064_v53 }
  0x62   : > { %657 = vmatprep.subr.bf16.mxu1 %v1068_v54 }
  0x65   : > { %658 = vmatpush1.bf16.msra.mxu1 %v1070_v55 }
  0x68   : > { %660 = vmatmul.mubr.bf16.vlgmr.msra.gmra.mrb[0].mxu1 %v1072_v56 }
 0x11e   : > { %v704_v57 = vpop.f32.mrb[0].mxu0 }
 0x11f   : > { %v706_v58 = vpop.f32.mrb[1].mxu0 }
 0x120   : > { %v708_v59 = vpop.f32.mrb[2].mxu0 }
 0x121   : > { %v710_v60 = vpop.f32.mrb[3].mxu0 }
 0x13b   : > { %v661_v62 = vpop.f32.mrb[0].mxu1 }
 0x13c   : > { %v705_v63 = vadd.f32 %v704_v57, %v661_v62  ;;  %v663_v1 = vpop.f32.mrb[1].mxu1 }
 0x13d   : > { %v707_v2 = vadd.f32 %v706_v58, %v663_v1  ;;  %v665_v4 = vpop.f32.mrb[2].mxu1  ;;  %724 = sbr.rel (%p944_p11) target bundleno = 336 (0x150), region = 66 }
 0x13e   : > { %v713_v5 = vadd.f32 %v705_v63, %v315_v61  ;;  %v709_v6 = vadd.f32 %v708_v59, %v665_v4  ;;  %v667_v8 = vpop.f32.mrb[3].mxu1 }
 0x13f   : > { %v714_v9 = vadd.f32 %v707_v2, %v316_v0  ;;  %v711_v10 = vadd.f32 %v710_v60, %v667_v8 }
 0x140   : > { %717 = vst [vmem:[#allocation2] sm:$0xff] %v713_v5  ;;  %v715_v11 = vadd.f32 %v709_v6, %v317_v3 }
 0x141   : > { %718 = vst [vmem:[#allocation2 + $0x8] sm:$0xff] %v714_v9  ;;  %v716_v12 = vadd.f32 %v711_v10, %v318_v7 }
 0x142   : > { %719 = vst [vmem:[#allocation2 + $0x10] sm:$0xff] %v715_v11 }
 0x143   : > { %720 = vst [vmem:[#allocation2 + $0x18] sm:$0xff] %v716_v12 }
 0x147   : > { %v725_v16 = vld [vmem:[#allocation2] sm:$0xff] }
 0x148   : > { %v726_v19 = vld [vmem:[#allocation2 + $0x8] sm:$0xff]  ;;  %v741_v24 = vadd.f32 %v734_v22, %v725_v16 }
 0x149   : > { %v727_v20 = vld [vmem:[#allocation2 + $0x10] sm:$0xff]  ;;  %v742_v25 = vadd.f32 %v738_v23, %v726_v19 }
 0x14a   : > { %v728_v21 = vld [vmem:[#allocation2 + $0x18] sm:$0xff]  ;;  %v743_v26 = vadd.f32 %v734_v22, %v727_v20  ;;  %v745_v28 = vmax.f32 %v741_v24, 0.0 }
 0x14b   : > { %v744_v27 = vadd.f32 %v738_v23, %v728_v21  ;;  %v746_v29 = vmax.f32 %v742_v25, 0.0 }
 0x14c   : > { %v747_v30 = vmax.f32 %v743_v26, 0.0  ;;  %749 = vst [vmem:[%s1277_s3] sm:$0xff] %v745_v28 }
 0x14d   : > { %v748_v31 = vmax.f32 %v744_v27, 0.0  ;;  %750 = vst [vmem:[%s1277_s3 + $0x8] sm:$0xff] %v746_v29 }
 0x14e   : > { %751 = vst [vmem:[%s1277_s3 + $0x10] sm:$0xff] %v747_v30 }
 0x14f   : > { %752 = vst [vmem:[%s1277_s3 + $0x18] sm:$0xff] %v748_v31 }
 0x150 PF: > { %s13_s16 = sadd.s32 1, %s1113_s16   ;;  %s1278_s12 = smov %s1101_s13 }
 0x151   : > { %p10_p12 = scmp.ge.s32.totalorder %s13_s16, 5   ;;  %s1279_s13 = smov %s1172_s20 }
 0x152   : > { %s1280_s14 = smov %s1109_s15  ;;  %s1281_s15 = smov %s1283_s17 }
 0x153   :  { %12 = sbr.rel (!%p10_p12) target bundleno = 3 (0x3), region = 113 }

// kernel: resnet_forward.21
= control target key start
LH: loop header
LB: loop body
LE: loop exit
PB: predicated region body
PF: predicated region fallthrough
CT: control target
= control target key end

     0   :  { %v256_v1 = vmov 0   ;;  %v191_v18 = vlaneseq  ;;  %s343_s1 = inlined_call_operand.vmem [shape: bf16[128,256], index: 1, kind: input, shape index: {}]   ;;  %s344_s0 = inlined_call_operand.vmem [shape: bf16[16,128], index: 0, kind: input, shape index: {}]   ;;  %s345_s2 = inlined_call_operand.vmem [shape: f32[1,256], index: 2, kind: input, shape index: {}]   ;;  %s346_s3 = inlined_call_operand.vmem [shape: f32[16,256], index: 3, kind: output, shape index: {}]  }
   0x1   :  { %v231_v0 = vld [vmem:[%s343_s1 + $0x4] ss:$8 sps:$4 sm:$0xff]   ;;  %163 = vmatprep.mubr.bf16.mxu0 %v256_v1  ;;  %v233_v2 = vld [vmem:[%s343_s1] ss:$8 sps:$4 sm:$0xff]   ;;  %v234_v3 = vld [vmem:[%s343_s1 + $0x14] ss:$8 sps:$4 sm:$0xff]  }
   0x2   :  { %131 = vmatprep.subr.bf16.mxu0 %v231_v0  ;;  %v236_v4 = vld [vmem:[%s343_s1 + $0x10] ss:$8 sps:$4 sm:$0xff]   ;;  %v237_v5 = vld [vmem:[%s343_s1 + $0x24] ss:$8 sps:$4 sm:$0xff]   ;;  %v239_v6 = vld [vmem:[%s343_s1 + $0x20] ss:$8 sps:$4 sm:$0xff]  }
   0x3   :  { %132 = vmatpush1.bf16.msra.mxu0 %v233_v2  ;;  %v240_v7 = vld [vmem:[%s343_s1 + $0x34] ss:$8 sps:$4 sm:$0xff]   ;;  %v242_v8 = vld [vmem:[%s343_s1 + $0x30] ss:$8 sps:$4 sm:$0xff]   ;;  %v243_v9 = vld [vmem:[%s343_s1 + $0x44] ss:$8 sps:$4 sm:$0xff]  }
   0x4   :  { %133 = vmatprep.subr.bf16.mxu0 %v234_v3  ;;  %v245_v10 = vld [vmem:[%s343_s1 + $0x40] ss:$8 sps:$4 sm:$0xff]   ;;  %v246_v11 = vld [vmem:[%s343_s1 + $0x54] ss:$8 sps:$4 sm:$0xff]   ;;  %v248_v12 = vld [vmem:[%s343_s1 + $0x50] ss:$8 sps:$4 sm:$0xff]  }
   0x5   :  { %v249_v13 = vld [vmem:[%s343_s1 + $0x64] ss:$8 sps:$4 sm:$0xff]   ;;  %v251_v14 = vld [vmem:[%s343_s1 + $0x60] ss:$8 sps:$4 sm:$0xff]   ;;  %v252_v15 = vld [vmem:[%s343_s1 + $0x74] ss:$8 sps:$4 sm:$0xff]  }
   0x6   :  { %v254_v16 = vld [vmem:[%s343_s1 + $0x70] ss:$8 sps:$4 sm:$0xff]   ;;  %v255_v17 = vld [vmem:[%s344_s0] sm:$0xff]   ;;  %v192_v19 = vshrl.u32 %v191_v18, 7 }
   0x7   :  { %134 = vmatpush1.bf16.msra.mxu0 %v236_v4  ;;  %v189_v21 = vld [vmem:[%s345_s2] sm:$0x3] }
   0x8   :  { %135 = vmatprep.subr.bf16.mxu0 %v237_v5  ;;  %v193_v20 = vsub.s32 0, %v192_v19  ;;  %v197_v22 = vsub.s32 1, %v192_v19 }
   0xa   :  { %v194_v23 = vrot.slane %v189_v21, %v193_v20  ;;  %v198_v24 = vrot.slane %v189_v21, %v197_v22 }
   0xb   :  { %136 = vmatpush1.bf16.msra.mxu0 %v239_v6 }
   0xc   :  { %137 = vmatprep.subr.bf16.mxu0 %v240_v7 }
   0xf   :  { %138 = vmatpush1.bf16.msra.mxu0 %v242_v8 }
  0x10   :  { %139 = vmatprep.subr.bf16.mxu0 %v243_v9 }
  0x13   :  { %140 = vmatpush1.bf16.msra.mxu0 %v245_v10 }
  0x14   :  { %141 = vmatprep.subr.bf16.mxu0 %v246_v11 }
  0x17   :  { %142 = vmatpush1.bf16.msra.mxu0 %v248_v12 }
  0x18   :  { %143 = vmatprep.subr.bf16.mxu0 %v249_v13 }
  0x1b   :  { %144 = vmatpush1.bf16.msra.mxu0 %v251_v14 }
  0x1c   :  { %145 = vmatprep.subr.bf16.mxu0 %v252_v15 }
  0x1f   :  { %146 = vmatpush1.bf16.msra.mxu0 %v254_v16 }
  0x22   :  { %164 = vmatmul.mubr.bf16.vlgmr.msra.gmra.mrb[0].mxu0 %v255_v17 }
  0xf5   :  { %v165_v25 = vpop.f32.mrb[0].mxu0 }
  0xf6   :  { %v201_v26 = vadd.f32 %v194_v23, %v165_v25  ;;  %v167_v27 = vpop.f32.mrb[1].mxu0 }
  0xf7   :  { %v202_v28 = vadd.f32 %v198_v24, %v167_v27  ;;  %v169_v29 = vpop.f32.mrb[2].mxu0 }
  0xf8   :  { %205 = vst [vmem:[%s346_s3] sm:$0xff] %v201_v26  ;;  %v203_v30 = vadd.f32 %v194_v23, %v169_v29  ;;  %v171_v31 = vpop.f32.mrb[3].mxu0 }
  0xf9   :  { %206 = vst [vmem:[%s346_s3 + $0x8] sm:$0xff] %v202_v28  ;;  %v204_v32 = vadd.f32 %v198_v24, %v171_v31 }
  0xfa   :  { %207 = vst [vmem:[%s346_s3 + $0x10] sm:$0xff] %v203_v30 }
  0xfb   :  { %208 = vst [vmem:[%s346_s3 + $0x18] sm:$0xff] %v204_v32 }

// kernel: resnet_forward.23
= control target key start
LH: loop header
LB: loop body
LE: loop exit
PB: predicated region body
PF: predicated region fallthrough
CT: control target
= control target key end

     0   :  { %s1240_s15 = smov 0   ;;  %s1242_s16 = smov 0   ;;  %s1389_s0 = inlined_call_operand.vmem [shape: bf16[16,2304], index: 0, kind: input, shape index: {}]   ;;  %s1390_s1 = inlined_call_operand.vmem [shape: bf16[2304,256], index: 1, kind: input, shape index: {}]   ;;  %s1391_s2 = inlined_call_operand.vmem [shape: f32[1,256], index: 2, kind: input, shape index: {}]   ;;  %s1392_s3 = inlined_call_operand.vmem [shape: f32[16,256], index: 3, kind: input, shape index: {}]   ;;  %s1393_s4 = inlined_call_operand.vmem [shape: f32[16,256], index: 4, kind: output, shape index: {}]  }
   0x1   :  { %s1244_s17 = smov 0   ;;  %s1246_s18 = smov 0  }
   0x2   :  { %s1248_s19 = smov 0  }
   0x3 LB: > { %s26_s20 = sadd.s32 1, %s1207_s18  ;;  %p49_p1 = scmp.ne.s32.totalorder %s1199_s16, %s1195_s15  ;;  %s1211_s19 = sphi %s1248_s19, %s14_s19   ;;  %s1207_s18 = sphi %s1246_s18, %s1397_s18   ;;  %s1203_s17 = sphi %s1244_s17, %s1396_s17   ;;  %s1199_s16 = sphi %s1242_s16, %s1395_s16   ;;  %s1195_s15 = sphi %s1240_s15, %s1394_s15  }
   0x4   : > { %p27_p0 = scmp.ge.s32.totalorder %s26_s20, 6  ;;  %p50_p2 = scmp.eq.s32.totalorder %s1211_s19, 0 }
   0x5   : > { %s42_s22 = sadd.s32 1, %s1199_s16  ;;  %p981_p5 = scmp.ge.s32.totalorder %s1211_s19, 6 }
   0x6   : > { %s1399_s20 = smov (%p27_p0, %s26_s20), 0  ;;  %p51_p3 = por %p50_p2, %p49_p1 }
   0x7   : > { %s38_s21 = ssub.s32 %s1207_s18, %s1399_s20  ;;  %208 = sbr.rel (%p981_p5) target bundleno = 21 (0x15), region = 24 }
   0x8   : > { %p40_p4 = scmp.eq.s32.totalorder %s38_s21, 0 }
   0xa   : > { %s1275_s23 = scalar_select %p40_p4, %s1199_s16, %s42_s22  }
   0xe   : > { %211 = sbr.rel (!%p51_p3) target bundleno = 21 (0x15), region = 28  ;;  %s213_s24 = sand.u32 (%p51_p3), 1, %s1199_s16  }
   0xf   : > { %s1047_s25 = smul.u32 (%p51_p3), 12, %s1207_s18 }
  0x10   : > { %s1053_s26 = smul.u32 (%p51_p3), 24, %s213_s24 }
  0x11   : > { %s221_s29 = scalar_lea.vmem (%p51_p3), %s1389_s0, %s1047_s25 }
  0x12   : > { %v236_v0 = vld [vmem:[%s221_s29] sm:$0xff] (%p51_p3)  ;;  %v238_v1 = vld [vmem:[%s221_s29 + $0x48] sm:$0xff] (%p51_p3)  ;;  %s215_s30 = scalar_lea.vmem (%p51_p3), [#allocation3], %s1053_s26  ;;  %v985_v3 = vld [vmem:[%s221_s29 + $0x50] sm:$0xf] (%p51_p3) }
  0x13   : > { %v983_v2 = vld [vmem:[%s221_s29 + $0x8] sm:$0xf] (%p51_p3)  ;;  %237 = vst [vmem:[%s215_s30] sm:$0xff] (%p51_p3), %v236_v0  ;;  %239 = vst [vmem:[%s215_s30 + $0xc] sm:$0xff] (%p51_p3), %v238_v1 }
  0x14   : > { %984 = vst [vmem:[%s215_s30 + $0x8] sm:$0xf] (%p51_p3), %v983_v2  ;;  %986 = vst [vmem:[%s215_s30 + $0x14] sm:$0xf] (%p51_p3), %v985_v3 }
  0x15 PF: > { %p987_p6 = scmp.ge.s32.totalorder %s1211_s19, 1  ;;  %p270_p7 = scmp.lt.s32.totalorder %s1211_s19, 7 }
  0x17   : > { %p271_p8 = pnand %p987_p6, %p270_p7 }
  0x18   : > { %s277_s5 = sand.u32 (!%p271_p8), 1, %s1195_s15   ;;  %s333_s6 = smul.u32 (!%p271_p8), 48, %s1203_s17 }
  0x19   : > { %274 = sbr.rel (%p271_p8) target bundleno = 338 (0x152), region = 58  ;;  %p990_p10 = scmp.ne.s32.totalorder (!%p271_p8), %s1203_s17, 0 }
  0x1a   : > { %s1054_s7 = smul.u32 (!%p271_p8), 24, %s277_s5  ;;  %p335_p9 = scmp.lt.s32.totalorder (!%p271_p8), %s333_s6, 287 }
  0x1c   : > { %s1292_s12 = scalar_lea.vmem (!%p271_p8), [#allocation3], %s1054_s7 }
  0x20   : > { %s1401_s6 = smov (!%p335_p9, %s333_s6), 287  ;;  %378 = sbr.rel (%p990_p10) target bundleno = 39 (0x27), region = 66 }
  0x21   : > { %s1048_s8 = sshll.u32 %s1401_s6, 3  ;;  %v1213_v4 = vmov (!%p990_p10), 0.0  }
  0x22   : > { %s1290_s11 = scalar_lea.vmem %s1390_s1, %s1048_s8  ;;  %379 = vst [vmem:[#allocation2] sm:$0xff] (!%p990_p10), %v1213_v4  ;;  %380 = vst [vmem:[#allocation2 + $0x8] sm:$0xff] (!%p990_p10), %v1213_v4 }
  0x23   : > { %381 = vst [vmem:[#allocation2 + $0x10] sm:$0xff] (!%p990_p10), %v1213_v4  ;;  %382 = vst [vmem:[#allocation2 + $0x18] sm:$0xff] (!%p990_p10), %v1213_v4 }
  0x27 PF: > { %v1097_v5 = vld [vmem:[%s1290_s11 + $0x4] ss:$8 sps:$4 sm:$0xff]   ;;  %v1099_v6 = vld [vmem:[%s1290_s11] ss:$8 sps:$4 sm:$0xff]   ;;  %v1214_v7 = vmov 0   ;;  %p1042_p11 = scmp.ne.s32.totalorder %s1203_s17, 5 }
  0x28   : > { %770 = vmatprep.mubr.bf16.mxu0 %v1214_v7  ;;  %695 = vmatprep.subr.bf16.mxu1 %v1097_v5  ;;  %v1100_v8 = vld [vmem:[%s1290_s11 + $0x14] ss:$8 sps:$4 sm:$0xff]   ;;  %v1102_v9 = vld [vmem:[%s1290_s11 + $0x10] ss:$8 sps:$4 sm:$0xff]   ;;  %v1103_v10 = vld [vmem:[%s1290_s11 + $0x24] ss:$8 sps:$4 sm:$0xff]  }
  0x29   : > { %696 = vmatpush1.bf16.msra.mxu1 %v1099_v6  ;;  %v1105_v11 = vld [vmem:[%s1290_s11 + $0x20] ss:$8 sps:$4 sm:$0xff]   ;;  %v1106_v12 = vld [vmem:[%s1290_s11 + $0x34] ss:$8 sps:$4 sm:$0xff]   ;;  %v1108_v13 = vld [vmem:[%s1290_s11 + $0x30] ss:$8 sps:$4 sm:$0xff]  }
  0x2a   : > { %697 = vmatprep.subr.bf16.mxu1 %v1100_v8  ;;  %v1121_v14 = vld [vmem:[%s1290_s11 + $0x104] ss:$8 sps:$4 sm:$0xff]   ;;  %v1123_v15 = vld [vmem:[%s1290_s11 + $0x100] ss:$8 sps:$4 sm:$0xff]   ;;  %v1127_v17 = vld [vmem:[%s1290_s11 + $0x114] ss:$8 sps:$4 sm:$0xff]  }
  0x2b   : > { %v1109_v16 = vld [vmem:[%s1290_s11 + $0x44] ss:$8 sps:$4 sm:$0xff]   ;;  %738 = vmatprep.subr.bf16.mxu0 %v1121_v14  ;;  %v1129_v18 = vld [vmem:[%s1290_s11 + $0x110] ss:$8 sps:$4 sm:$0xff]   ;;  %v1111_v19 = vld [vmem:[%s1290_s11 + $0x40] ss:$8 sps:$4 sm:$0xff]  }
  0x2c   : > { %739 = vmatpush1.bf16.msra.mxu0 %v1123_v15  ;;  %v1112_v20 = vld [vmem:[%s1290_s11 + $0x54] ss:$8 sps:$4 sm:$0xff]   ;;  %v1133_v21 = vld [vmem:[%s1290_s11 + $0x124] ss:$8 sps:$4 sm:$0xff]   ;;  %v1135_v22 = vld [vmem:[%s1290_s11 + $0x120] ss:$8 sps:$4 sm:$0xff]  }
  0x2d   : > { %698 = vmatpush1.bf16.msra.mxu1 %v1102_v9  ;;  %740 = vmatprep.subr.bf16.mxu0 %v1127_v17  ;;  %v1114_v23 = vld [vmem:[%s1290_s11 + $0x50] ss:$8 sps:$4 sm:$0xff]   ;;  %v1139_v24 = vld [vmem:[%s1290_s11 + $0x134] ss:$8 sps:$4 sm:$0xff]   ;;  %v1115_v25 = vld [vmem:[%s1290_s11 + $0x64] ss:$8 sps:$4 sm:$0xff]  }
  0x2e   : > { %699 = vmatprep.subr.bf16.mxu1 %v1103_v10  ;;  %v1141_v26 = vld [vmem:[%s1290_s11 + $0x130] ss:$8 sps:$4 sm:$0xff]   ;;  %v1117_v27 = vld [vmem:[%s1290_s11 + $0x60] ss:$8 sps:$4 sm:$0xff]   ;;  %v1145_v28 = vld [vmem:[%s1290_s11 + $0x144] ss:$8 sps:$4 sm:$0xff]  }
  0x2f   : > { %v1118_v29 = vld [vmem:[%s1290_s11 + $0x74] ss:$8 sps:$4 sm:$0xff]   ;;  %v1147_v30 = vld [vmem:[%s1290_s11 + $0x140] ss:$8 sps:$4 sm:$0xff]   ;;  %v1120_v31 = vld [vmem:[%s1290_s11 + $0x70] ss:$8 sps:$4 sm:$0xff]  }
  0x30   : > { %741 = vmatpush1.bf16.msra.mxu0 %v1129_v18  ;;  %v1151_v32 = vld [vmem:[%s1290_s11 + $0x154] ss:$8 sps:$4 sm:$0xff]   ;;  %v1124_v33 = vld [vmem:[%s1290_s11 + $0x84] ss:$8 sps:$4 sm:$0xff]   ;;  %v1153_v34 = vld [vmem:[%s1290_s11 + $0x150] ss:$8 sps:$4 sm:$0xff]  }
  0x31   : > { %700 = vmatpush1.bf16.msra.mxu1 %v1105_v11  ;;  %742 = vmatprep.subr.bf16.mxu0 %v1133_v21  ;;  %v1126_v35 = vld [vmem:[%s1290_s11 + $0x80] ss:$8 sps:$4 sm:$0xff]   ;;  %v1157_v36 = vld [vmem:[%s1290_s11 + $0x164] ss:$8 sps:$4 sm:$0xff]   ;;  %v1130_v37 = vld [vmem:[%s1290_s11 + $0x94] ss:$8 sps:$4 sm:$0xff]  }
  0x32   : > { %701 = vmatprep.subr.bf16.mxu1 %v1106_v12  ;;  %v1159_v38 = vld [vmem:[%s1290_s11 + $0x160] ss:$8 sps:$4 sm:$0xff]   ;;  %v1132_v40 = vld [vmem:[%s1290_s11 + $0x90] ss:$8 sps:$4 sm:$0xff]   ;;  %v1163_v41 = vld [vmem:[%s1290_s11 + $0x174] ss:$8 sps:$4 sm:$0xff]  }
  0x33   : > { %v1172_v39 = vld [vmem:[%s1292_s12 + $0x4] ss:$12 sps:$4 sm:$0xff]   ;;  %v1169_v46 = vld [vmem:[%s1292_s12 + $0x8] ss:$12 sps:$4 sm:$0xff]   ;;  %v1170_v56 = vld [vmem:[%s1292_s12] ss:$12 sps:$4 sm:$0xff]  }
  0x34   : > { %743 = vmatpush1.bf16.msra.mxu0 %v1135_v22  ;;  %v1136_v42 = vld [vmem:[%s1290_s11 + $0xa4] ss:$8 sps:$4 sm:$0xff]   ;;  %727 = vmatprep.mubr.bf16.mxu1 %v1172_v39  ;;  %v1165_v43 = vld [vmem:[%s1290_s11 + $0x170] ss:$8 sps:$4 sm:$0xff]   ;;  %v1138_v44 = vld [vmem:[%s1290_s11 + $0xa0] ss:$8 sps:$4 sm:$0xff]  }
  0x35   : > { %702 = vmatpush1.bf16.msra.mxu1 %v1108_v13  ;;  %744 = vmatprep.subr.bf16.mxu0 %v1139_v24  ;;  %v1142_v45 = vld [vmem:[%s1290_s11 + $0xb4] ss:$8 sps:$4 sm:$0xff]   ;;  %v1144_v47 = vld [vmem:[%s1290_s11 + $0xb0] ss:$8 sps:$4 sm:$0xff]   ;;  %v1148_v48 = vld [vmem:[%s1290_s11 + $0xc4] ss:$8 sps:$4 sm:$0xff]   ;;  %v799_v13 = vlaneseq (!%p1042_p11) }
  0x36   : > { %703 = vmatprep.subr.bf16.mxu1 %v1109_v16  ;;  %v1150_v49 = vld [vmem:[%s1290_s11 + $0xc0] ss:$8 sps:$4 sm:$0xff]   ;;  %v1154_v50 = vld [vmem:[%s1290_s11 + $0xd4] ss:$8 sps:$4 sm:$0xff]   ;;  %v1156_v51 = vld [vmem:[%s1290_s11 + $0xd0] ss:$8 sps:$4 sm:$0xff]  }
  0x37   : > { %v1160_v52 = vld [vmem:[%s1290_s11 + $0xe4] ss:$8 sps:$4 sm:$0xff]   ;;  %v1162_v53 = vld [vmem:[%s1290_s11 + $0xe0] ss:$8 sps:$4 sm:$0xff]   ;;  %v1166_v54 = vld [vmem:[%s1290_s11 + $0xf4] ss:$8 sps:$4 sm:$0xff]  }
  0x38   : > { %745 = vmatpush1.bf16.msra.mxu0 %v1141_v26  ;;  %v1168_v55 = vld [vmem:[%s1290_s11 + $0xf0] ss:$8 sps:$4 sm:$0xff]   ;;  %v383_v61 = vld [vmem:[#allocation2] sm:$0xff]  ;;  %v384_v0 = vld [vmem:[#allocation2 + $0x8] sm:$0xff]  ;;  %v800_v14 = vshrl.u32 (!%p1042_p11), %v799_v13, 7 }
  0x39   : > { %704 = vmatpush1.bf16.msra.mxu1 %v1111_v19  ;;  %746 = vmatprep.subr.bf16.mxu0 %v1145_v28  ;;  %v385_v3 = vld [vmem:[#allocation2 + $0x10] sm:$0xff]  ;;  %v386_v7 = vld [vmem:[#allocation2 + $0x18] sm:$0xff]  ;;  %v797_v15 = vld [vmem:[%s1391_s2] sm:$0x3] (!%p1042_p11) }
  0x3a   : > { %705 = vmatprep.subr.bf16.mxu1 %v1112_v20  ;;  %v801_v17 = vsub.s32 (!%p1042_p11), 0, %v800_v14  ;;  %v805_v18 = vsub.s32 (!%p1042_p11), 1, %v800_v14  ;;  %v815_v26 = vld [vmem:[%s1392_s3 + $0x10] sm:$0xff] (!%p1042_p11) }
  0x3c   : > { %747 = vmatpush1.bf16.msra.mxu0 %v1147_v30  ;;  %v802_v22 = vrot.slane (!%p1042_p11), %v797_v15, %v801_v17  ;;  %v806_v24 = vrot.slane (!%p1042_p11), %v797_v15, %v805_v18 }
  0x3d   : > { %706 = vmatpush1.bf16.msra.mxu1 %v1114_v23  ;;  %748 = vmatprep.subr.bf16.mxu0 %v1151_v32  ;;  %v813_v23 = vld [vmem:[%s1392_s3] sm:$0xff] (!%p1042_p11) }
  0x3e   : > { %707 = vmatprep.subr.bf16.mxu1 %v1115_v25  ;;  %v814_v25 = vld [vmem:[%s1392_s3 + $0x8] sm:$0xff] (!%p1042_p11) }
  0x40   : > { %749 = vmatpush1.bf16.msra.mxu0 %v1153_v34 }
  0x41   : > { %708 = vmatpush1.bf16.msra.mxu1 %v1117_v27  ;;  %750 = vmatprep.subr.bf16.mxu0 %v1157_v36  ;;  %v816_v27 = vld [vmem:[%s1392_s3 + $0x18] sm:$0xff] (!%p1042_p11) }
  0x42   : > { %709 = vmatprep.subr.bf16.mxu1 %v1118_v29 }
  0x44   : > { %751 = vmatpush1.bf16.msra.mxu0 %v1159_v38 }
  0x45   : > { %710 = vmatpush1.bf16.msra.mxu1 %v1120_v31  ;;  %752 = vmatprep.subr.bf16.mxu0 %v1163_v41 }
  0x46   : > { %711 = vmatprep.subr.bf16.mxu1 %v1124_v33 }
  0x48   : > { %753 = vmatpush1.bf16.msra.mxu0 %v1165_v43 }
  0x49   : > { %712 = vmatpush1.bf16.msra.mxu1 %v1126_v35 }
  0x4a   : > { %713 = vmatprep.subr.bf16.mxu1 %v1130_v37 }
  0x4b   : > { %771 = vmatmul.mubr.bf16.vlgmr.msra.gmra.mrb[0].mxu0 %v1169_v46 }
  0x4d   : > { %714 = vmatpush1.bf16.msra.mxu1 %v1132_v40 }
  0x4e   : > { %715 = vmatprep.subr.bf16.mxu1 %v1136_v42 }
  0x51   : > { %716 = vmatpush1.bf16.msra.mxu1 %v1138_v44 }
  0x52   : > { %717 = vmatprep.subr.bf16.mxu1 %v1142_v45 }
  0x55   : > { %718 = vmatpush1.bf16.msra.mxu1 %v1144_v47 }
  0x56   : > { %719 = vmatprep.subr.bf16.mxu1 %v1148_v48 }
  0x59   : > { %720 = vmatpush1.bf16.msra.mxu1 %v1150_v49 }
  0x5a   : > { %721 = vmatprep.subr.bf16.mxu1 %v1154_v50 }
  0x5d   : > { %722 = vmatpush1.bf16.msra.mxu1 %v1156_v51 }
  0x5e   : > { %723 = vmatprep.subr.bf16.mxu1 %v1160_v52 }
  0x61   : > { %724 = vmatpush1.bf16.msra.mxu1 %v1162_v53 }
  0x62   : > { %725 = vmatprep.subr.bf16.mxu1 %v1166_v54 }
  0x65   : > { %726 = vmatpush1.bf16.msra.mxu1 %v1168_v55 }
  0x68   : > { %728 = vmatmul.mubr.bf16.vlgmr.msra.gmra.mrb[0].mxu1 %v1170_v56 }
 0x11e   : > { %v772_v57 = vpop.f32.mrb[0].mxu0 }
 0x11f   : > { %v774_v58 = vpop.f32.mrb[1].mxu0 }
 0x120   : > { %v776_v59 = vpop.f32.mrb[2].mxu0 }
 0x121   : > { %v778_v60 = vpop.f32.mrb[3].mxu0 }
 0x13b   : > { %v729_v62 = vpop.f32.mrb[0].mxu1 }
 0x13c   : > { %v773_v63 = vadd.f32 %v772_v57, %v729_v62  ;;  %v731_v1 = vpop.f32.mrb[1].mxu1 }
 0x13d   : > { %v775_v2 = vadd.f32 %v774_v58, %v731_v1  ;;  %v733_v4 = vpop.f32.mrb[2].mxu1  ;;  %792 = sbr.rel (%p1042_p11) target bundleno = 338 (0x152), region = 70 }
 0x13e   : > { %v781_v5 = vadd.f32 %v773_v63, %v383_v61  ;;  %v777_v6 = vadd.f32 %v776_v59, %v733_v4  ;;  %v735_v8 = vpop.f32.mrb[3].mxu1 }
 0x13f   : > { %v782_v9 = vadd.f32 %v775_v2, %v384_v0  ;;  %v779_v10 = vadd.f32 %v778_v60, %v735_v8 }
 0x140   : > { %785 = vst [vmem:[#allocation2] sm:$0xff] %v781_v5  ;;  %v783_v11 = vadd.f32 %v777_v6, %v385_v3 }
 0x141   : > { %786 = vst [vmem:[#allocation2 + $0x8] sm:$0xff] %v782_v9  ;;  %v784_v12 = vadd.f32 %v779_v10, %v386_v7 }
 0x142   : > { %787 = vst [vmem:[#allocation2 + $0x10] sm:$0xff] %v783_v11 }
 0x143   : > { %788 = vst [vmem:[#allocation2 + $0x18] sm:$0xff] %v784_v12 }
 0x147   : > { %v793_v16 = vld [vmem:[#allocation2] sm:$0xff] }
 0x148   : > { %v794_v19 = vld [vmem:[#allocation2 + $0x8] sm:$0xff]  ;;  %v809_v28 = vadd.f32 %v802_v22, %v793_v16 }
 0x149   : > { %v795_v20 = vld [vmem:[#allocation2 + $0x10] sm:$0xff]  ;;  %v810_v29 = vadd.f32 %v806_v24, %v794_v19 }
 0x14a   : > { %v796_v21 = vld [vmem:[#allocation2 + $0x18] sm:$0xff]  ;;  %v811_v30 = vadd.f32 %v802_v22, %v795_v20  ;;  %v817_v32 = vadd.f32 %v813_v23, %v809_v28 }
 0x14b   : > { %v812_v31 = vadd.f32 %v806_v24, %v796_v21  ;;  %v818_v33 = vadd.f32 %v814_v25, %v810_v29 }
 0x14c   : > { %v819_v34 = vadd.f32 %v815_v26, %v811_v30  ;;  %v821_v36 = vmax.f32 %v817_v32, 0.0 }
 0x14d   : > { %v820_v35 = vadd.f32 %v816_v27, %v812_v31  ;;  %v822_v37 = vmax.f32 %v818_v33, 0.0 }
 0x14e   : > { %v823_v38 = vmax.f32 %v819_v34, 0.0  ;;  %825 = vst [vmem:[%s1393_s4] sm:$0xff] %v821_v36 }
 0x14f   : > { %v824_v39 = vmax.f32 %v820_v35, 0.0  ;;  %826 = vst [vmem:[%s1393_s4 + $0x8] sm:$0xff] %v822_v37 }
 0x150   : > { %827 = vst [vmem:[%s1393_s4 + $0x10] sm:$0xff] %v823_v38 }
 0x151   : > { %828 = vst [vmem:[%s1393_s4 + $0x18] sm:$0xff] %v824_v39 }
 0x152 PF: > { %s14_s19 = sadd.s32 1, %s1211_s19   ;;  %s1394_s15 = smov %s1199_s16 }
 0x153   : > { %p11_p12 = scmp.ge.s32.totalorder %s14_s19, 8   ;;  %s1395_s16 = smov %s1275_s23 }
 0x154   : > { %s1396_s17 = smov %s1207_s18  ;;  %s1397_s18 = smov %s1399_s20 }
 0x155   :  { %13 = sbr.rel (!%p11_p12) target bundleno = 3 (0x3), region = 120 }

// kernel: resnet_forward.25
= control target key start
LH: loop header
LB: loop body
LE: loop exit
PB: predicated region body
PF: predicated region fallthrough
CT: control target
= control target key end

     0   :  { %s1790_s0 = inlined_call_operand.vmem [shape: bf16[16,2304], index: 0, kind: input, shape index: {}]   ;;  %s1791_s1 = inlined_call_operand.vmem [shape: bf16[2304,512], index: 1, kind: input, shape index: {}]   ;;  %s1792_s2 = inlined_call_operand.vmem [shape: f32[1,512], index: 2, kind: input, shape index: {}]   ;;  %s1793_s3 = inlined_call_operand.vmem [shape: f32[16,512], index: 3, kind: output, shape index: {}]  }
   0x1   :  { %1795 = sst [smem:[#allocation7_spill]] %s1790_s0 }
   0x2   :  { %1796 = sst [smem:[#allocation8_spill]] %s1791_s1 }
   0x3   :  { %s1453_s12 = smov 0   ;;  %s1455_s13 = smov 0  }
   0x4   :  { %s1457_s14 = smov 0   ;;  %s1459_s15 = smov 0  }
   0x5   :  { %s1461_s16 = smov 0   ;;  %s1463_s17 = smov 0  }
   0x6   :  { %s1465_s18 = smov 0   ;;  %s1467_s19 = smov 0  }
   0x7   :  { %s1469_s20 = smov 0   ;;  %s1471_s21 = smov 0  }
   0x8   :  { %s1473_s22 = smov 0  }
   0x9 LB: > { %s1093_s23 = sadd.s32 4294967295, %s1429_s22   ;;  %s25_s24 = sadd.s32 1, %s1421_s20  ;;  %s1429_s22 = sphi %s1473_s22, %s13_s22   ;;  %s1425_s21 = sphi %s1471_s21, %s1813_s21   ;;  %s1421_s20 = sphi %s1469_s20, %s1812_s20   ;;  %s1417_s19 = sphi %s1467_s19, %s1811_s19   ;;  %s1413_s18 = sphi %s1465_s18, %s1810_s18   ;;  %s1409_s17 = sphi %s1463_s17, %s1809_s17   ;;  %s1405_s16 = sphi %s1461_s16, %s1808_s16   ;;  %s1401_s15 = sphi %s1459_s15, %s1807_s15   ;;  %s1397_s14 = sphi %s1457_s14, %s1806_s14   ;;  %s1393_s13 = sphi %s1455_s13, %s1805_s13   ;;  %s1389_s12 = sphi %s1453_s12, %s1804_s12  }
   0xa   : > { %p26_p0 = scmp.ge.s32.totalorder %s25_s24, 6  ;;  %s28_s25 = sadd.s32 1, %s1425_s21 }
   0xb   : > { %s41_s26 = sadd.s32 1, %s1409_s17  ;;  %p48_p1 = scmp.ne.s32.totalorder %s1409_s17, %s1405_s16 }
   0xc   : > { %s1815_s24 = smov (%p26_p0, %s25_s24), 0  ;;  %s1817_s25 = smov (!%p26_p0, %s28_s25), %s1425_s21 }
   0xd   : > { %s37_s27 = ssub.s32 %s1421_s20, %s1815_s24  ;;  %p49_p2 = scmp.eq.s32.totalorder %s1429_s22, 0 }
   0xe   : > { %p30_p3 = scmp.ge.s32.totalorder %s1817_s25, 2  ;;  %p39_p4 = scmp.eq.s32.totalorder %s37_s27, 0 }
   0xf   : > { %p1520_p5 = por %p49_p2, %p48_p1  ;;  %s69_s29 = sadd.s32 1, %s1401_s15 }
  0x10   : > { %s1819_s25 = smov (%p30_p3, %s1817_s25), 0  ;;  %p76_p6 = scmp.ne.s32.totalorder %s1401_s15, %s1397_s14 }
  0x11   : > { %1798 = sst [smem:[#allocation6_spill]] %s1819_s25  ;;  %s65_s4 = ssub.s32 %s1425_s21, %s1819_s25 }
  0x12   : > { %s1528_s30 = scalar_select %p39_p4, %s1409_s17, %s41_s26  }
  0x13   : > { %s66_s5 = sor.u32 %s65_s4, %s37_s27  ;;  %p121_p7 = scmp.eq.s32.totalorder %s65_s4, 0 }
  0x14   : > { %p67_p8 = scmp.eq.s32.totalorder %s66_s5, 0  ;;  %p1534_p9 = por %p76_p6, %p49_p2 }
  0x15   : > { %s123_s7 = sadd.s32 1, %s1393_s13  ;;  %p133_p10 = scmp.ne.s32.totalorder %s1393_s13, %s1389_s12 }
  0x16   : > { %s1542_s8 = scalar_select %p67_p8, %s1401_s15, %s69_s29  }
  0x17   : > { %s1545_s9 = scalar_select %p121_p7, %s1393_s13, %s123_s7  }
  0x18   : > { %p134_p11 = scmp.eq.s32.totalorder %s1093_s23, 11  ;;  %p1096_p13 = scmp.ge.s32.totalorder %s1429_s22, 12 }
  0x1a   : > { %p1547_p12 = por %p134_p11, %p133_p10  ;;  %156 = sbr.rel (%p1096_p13) target bundleno = 78 (0x4e), region = 16 }
  0x21   : > { %159 = sbr.rel (!%p1520_p5) target bundleno = 44 (0x2c), region = 20  ;;  %s161_s11 = sand.u32 (%p1520_p5), 1, %s1409_s17  }
  0x22   : > { %s1166_s26 = smul.u32 (%p1520_p5), 12, %s1421_s20  ;;  %s1801_s0 = sld [smem:[#allocation7_spill]] (%p1520_p5) }
  0x23   : > { %s1173_s27 = smul.u32 (%p1520_p5), 24, %s161_s11 }
  0x25   : > { %s163_s23 = scalar_lea.vmem (%p1520_p5), [#allocation3], %s1173_s27 }
  0x28   : > { %s169_s5 = scalar_lea.vmem %s1801_s0, %s1166_s26 }
  0x29   : > { %v184_v0 = vld [vmem:[%s169_s5] sm:$0xff]  ;;  %v186_v1 = vld [vmem:[%s169_s5 + $0x48] sm:$0xff]  ;;  %v1100_v3 = vld [vmem:[%s169_s5 + $0x50] sm:$0xf] }
  0x2a   : > { %v1098_v2 = vld [vmem:[%s169_s5 + $0x8] sm:$0xf]  ;;  %185 = vst [vmem:[%s163_s23] sm:$0xff] %v184_v0  ;;  %187 = vst [vmem:[%s163_s23 + $0xc] sm:$0xff] %v186_v1 }
  0x2b   : > { %1099 = vst [vmem:[%s163_s23 + $0x8] sm:$0xf] %v1098_v2  ;;  %1101 = vst [vmem:[%s163_s23 + $0x14] sm:$0xf] %v1100_v3 }
  0x2c PF: > { %204 = sbr.rel (!%p1534_p9) target bundleno = 78 (0x4e), region = 46  ;;  %s206_s28 = sand.u32 (%p1534_p9), 1, %s1401_s15  }
  0x2d   : > { %s1174_s7 = smul.u32 (%p1534_p9), 384, %s206_s28  ;;  %s1102_s11 = sshll.u32 (%p1534_p9), %s1425_s21, 1 }
  0x2e   : > { %s1167_s26 = smul.u32 (%p1534_p9), 192, %s1421_s20  ;;  %s1802_s1 = sld [smem:[#allocation8_spill]] (%p1534_p9) }
  0x2f   : > { %s1572_s6 = scalar_lea.vmem (%p1534_p9), [#allocation4], %s1174_s7 }
  0x30   : > { %s212_s29 = sadd.s32 (%p1534_p9), %s1167_s26, %s1102_s11 }
  0x31   : > { %s1104_s4 = sshll.u32 (%p1534_p9), %s212_s29, 2 }
  0x34   : > { %s1567_s25 = scalar_lea.vmem %s1802_s1, %s1104_s4 }
  0x35   : > { %v336_v4 = vld [vmem:[%s1567_s25] sm:$0xff]  ;;  %v338_v5 = vld [vmem:[%s1567_s25 + $0x10] sm:$0xff] }
  0x36   : > { %v340_v6 = vld [vmem:[%s1567_s25 + $0x20] sm:$0xff]  ;;  %337 = vst [vmem:[%s1572_s6] sm:$0xff] %v336_v4  ;;  %339 = vst [vmem:[%s1572_s6 + $0x8] sm:$0xff] %v338_v5  ;;  %v342_v7 = vld [vmem:[%s1567_s25 + $0x30] sm:$0xff] }
  0x37   : > { %341 = vst [vmem:[%s1572_s6 + $0x10] sm:$0xff] %v340_v6  ;;  %v344_v8 = vld [vmem:[%s1567_s25 + $0x40] sm:$0xff]  ;;  %v346_v9 = vld [vmem:[%s1567_s25 + $0x50] sm:$0xff]  ;;  %343 = vst [vmem:[%s1572_s6 + $0x18] sm:$0xff] %v342_v7 }
  0x38   : > { %345 = vst [vmem:[%s1572_s6 + $0x20] sm:$0xff] %v344_v8  ;;  %347 = vst [vmem:[%s1572_s6 + $0x28] sm:$0xff] %v346_v9  ;;  %v348_v10 = vld [vmem:[%s1567_s25 + $0x60] sm:$0xff]  ;;  %v350_v11 = vld [vmem:[%s1567_s25 + $0x70] sm:$0xff] }
  0x39   : > { %v352_v12 = vld [vmem:[%s1567_s25 + $0x80] sm:$0xff]  ;;  %349 = vst [vmem:[%s1572_s6 + $0x30] sm:$0xff] %v348_v10  ;;  %351 = vst [vmem:[%s1572_s6 + $0x38] sm:$0xff] %v350_v11  ;;  %v354_v13 = vld [vmem:[%s1567_s25 + $0x90] sm:$0xff] }
  0x3a   : > { %353 = vst [vmem:[%s1572_s6 + $0x40] sm:$0xff] %v352_v12  ;;  %v356_v14 = vld [vmem:[%s1567_s25 + $0xa0] sm:$0xff]  ;;  %v358_v15 = vld [vmem:[%s1567_s25 + $0xb0] sm:$0xff]  ;;  %355 = vst [vmem:[%s1572_s6 + $0x48] sm:$0xff] %v354_v13 }
  0x3b   : > { %357 = vst [vmem:[%s1572_s6 + $0x50] sm:$0xff] %v356_v14  ;;  %359 = vst [vmem:[%s1572_s6 + $0x58] sm:$0xff] %v358_v15  ;;  %v360_v16 = vld [vmem:[%s1567_s25 + $0xc0] sm:$0xff]  ;;  %v362_v17 = vld [vmem:[%s1567_s25 + $0xd0] sm:$0xff] }
  0x3c   : > { %v364_v18 = vld [vmem:[%s1567_s25 + $0xe0] sm:$0xff]  ;;  %361 = vst [vmem:[%s1572_s6 + $0x60] sm:$0xff] %v360_v16  ;;  %363 = vst [vmem:[%s1572_s6 + $0x68] sm:$0xff] %v362_v17  ;;  %v366_v19 = vld [vmem:[%s1567_s25 + $0xf0] sm:$0xff] }
  0x3d   : > { %365 = vst [vmem:[%s1572_s6 + $0x70] sm:$0xff] %v364_v18  ;;  %v368_v20 = vld [vmem:[%s1567_s25 + $0x100] sm:$0xff]  ;;  %v370_v21 = vld [vmem:[%s1567_s25 + $0x110] sm:$0xff]  ;;  %367 = vst [vmem:[%s1572_s6 + $0x78] sm:$0xff] %v366_v19 }
  0x3e   : > { %369 = vst [vmem:[%s1572_s6 + $0x80] sm:$0xff] %v368_v20  ;;  %371 = vst [vmem:[%s1572_s6 + $0x88] sm:$0xff] %v370_v21  ;;  %v372_v22 = vld [vmem:[%s1567_s25 + $0x120] sm:$0xff]  ;;  %v374_v23 = vld [vmem:[%s1567_s25 + $0x130] sm:$0xff] }
  0x3f   : > { %v376_v24 = vld [vmem:[%s1567_s25 + $0x140] sm:$0xff]  ;;  %373 = vst [vmem:[%s1572_s6 + $0x90] sm:$0xff] %v372_v22  ;;  %375 = vst [vmem:[%s1572_s6 + $0x98] sm:$0xff] %v374_v23  ;;  %v378_v25 = vld [vmem:[%s1567_s25 + $0x150] sm:$0xff] }
  0x40   : > { %377 = vst [vmem:[%s1572_s6 + $0xa0] sm:$0xff] %v376_v24  ;;  %v380_v26 = vld [vmem:[%s1567_s25 + $0x160] sm:$0xff]  ;;  %v382_v27 = vld [vmem:[%s1567_s25 + $0x170] sm:$0xff]  ;;  %379 = vst [vmem:[%s1572_s6 + $0xa8] sm:$0xff] %v378_v25 }
  0x41   : > { %381 = vst [vmem:[%s1572_s6 + $0xb0] sm:$0xff] %v380_v26  ;;  %383 = vst [vmem:[%s1572_s6 + $0xb8] sm:$0xff] %v382_v27  ;;  %v384_v28 = vld [vmem:[%s1567_s25 + $0x180] sm:$0xff]  ;;  %v386_v29 = vld [vmem:[%s1567_s25 + $0x190] sm:$0xff] }
  0x42   : > { %v388_v30 = vld [vmem:[%s1567_s25 + $0x1a0] sm:$0xff]  ;;  %385 = vst [vmem:[%s1572_s6 + $0xc0] sm:$0xff] %v384_v28  ;;  %387 = vst [vmem:[%s1572_s6 + $0xc8] sm:$0xff] %v386_v29  ;;  %v390_v31 = vld [vmem:[%s1567_s25 + $0x1b0] sm:$0xff] }
  0x43   : > { %389 = vst [vmem:[%s1572_s6 + $0xd0] sm:$0xff] %v388_v30  ;;  %v392_v32 = vld [vmem:[%s1567_s25 + $0x1c0] sm:$0xff]  ;;  %v394_v33 = vld [vmem:[%s1567_s25 + $0x1d0] sm:$0xff]  ;;  %391 = vst [vmem:[%s1572_s6 + $0xd8] sm:$0xff] %v390_v31 }
  0x44   : > { %393 = vst [vmem:[%s1572_s6 + $0xe0] sm:$0xff] %v392_v32  ;;  %395 = vst [vmem:[%s1572_s6 + $0xe8] sm:$0xff] %v394_v33  ;;  %v396_v34 = vld [vmem:[%s1567_s25 + $0x1e0] sm:$0xff]  ;;  %v398_v35 = vld [vmem:[%s1567_s25 + $0x1f0] sm:$0xff] }
  0x45   : > { %v400_v36 = vld [vmem:[%s1567_s25 + $0x200] sm:$0xff]  ;;  %397 = vst [vmem:[%s1572_s6 + $0xf0] sm:$0xff] %v396_v34  ;;  %399 = vst [vmem:[%s1572_s6 + $0xf8] sm:$0xff] %v398_v35  ;;  %v402_v37 = vld [vmem:[%s1567_s25 + $0x210] sm:$0xff] }
  0x46   : > { %401 = vst [vmem:[%s1572_s6 + $0x100] sm:$0xff] %v400_v36  ;;  %v404_v38 = vld [vmem:[%s1567_s25 + $0x220] sm:$0xff]  ;;  %v406_v39 = vld [vmem:[%s1567_s25 + $0x230] sm:$0xff]  ;;  %403 = vst [vmem:[%s1572_s6 + $0x108] sm:$0xff] %v402_v37 }
  0x47   : > { %405 = vst [vmem:[%s1572_s6 + $0x110] sm:$0xff] %v404_v38  ;;  %407 = vst [vmem:[%s1572_s6 + $0x118] sm:$0xff] %v406_v39  ;;  %v408_v40 = vld [vmem:[%s1567_s25 + $0x240] sm:$0xff]  ;;  %v410_v41 = vld [vmem:[%s1567_s25 + $0x250] sm:$0xff] }
  0x48   : > { %v412_v42 = vld [vmem:[%s1567_s25 + $0x260] sm:$0xff]  ;;  %409 = vst [vmem:[%s1572_s6 + $0x120] sm:$0xff] %v408_v40  ;;  %411 = vst [vmem:[%s1572_s6 + $0x128] sm:$0xff] %v410_v41  ;;  %v414_v43 = vld [vmem:[%s1567_s25 + $0x270] sm:$0xff] }
  0x49   : > { %413 = vst [vmem:[%s1572_s6 + $0x130] sm:$0xff] %v412_v42  ;;  %v416_v44 = vld [vmem:[%s1567_s25 + $0x280] sm:$0xff]  ;;  %v418_v45 = vld [vmem:[%s1567_s25 + $0x290] sm:$0xff]  ;;  %415 = vst [vmem:[%s1572_s6 + $0x138] sm:$0xff] %v414_v43 }
  0x4a   : > { %417 = vst [vmem:[%s1572_s6 + $0x140] sm:$0xff] %v416_v44  ;;  %419 = vst [vmem:[%s1572_s6 + $0x148] sm:$0xff] %v418_v45  ;;  %v420_v46 = vld [vmem:[%s1567_s25 + $0x2a0] sm:$0xff]  ;;  %v422_v47 = vld [vmem:[%s1567_s25 + $0x2b0] sm:$0xff] }
  0x4b   : > { %v424_v48 = vld [vmem:[%s1567_s25 + $0x2c0] sm:$0xff]  ;;  %421 = vst [vmem:[%s1572_s6 + $0x150] sm:$0xff] %v420_v46  ;;  %423 = vst [vmem:[%s1572_s6 + $0x158] sm:$0xff] %v422_v47  ;;  %v426_v49 = vld [vmem:[%s1567_s25 + $0x2d0] sm:$0xff] }
  0x4c   : > { %425 = vst [vmem:[%s1572_s6 + $0x160] sm:$0xff] %v424_v48  ;;  %v428_v50 = vld [vmem:[%s1567_s25 + $0x2e0] sm:$0xff]  ;;  %v430_v51 = vld [vmem:[%s1567_s25 + $0x2f0] sm:$0xff]  ;;  %427 = vst [vmem:[%s1572_s6 + $0x168] sm:$0xff] %v426_v49 }
  0x4d   : > { %429 = vst [vmem:[%s1572_s6 + $0x170] sm:$0xff] %v428_v50  ;;  %431 = vst [vmem:[%s1572_s6 + $0x178] sm:$0xff] %v430_v51 }
  0x4e PF: > { %p1105_p0 = scmp.ge.s32.totalorder %s1429_s22, 1  ;;  %p444_p1 = scmp.lt.s32.totalorder %s1429_s22, 13 }
  0x50   : > { %p445_p2 = pnand %p1105_p0, %p444_p1 }
  0x51   : > { %s451_s0 = sand.u32 (!%p445_p2), 1, %s1405_s16   ;;  %s458_s5 = sand.u32 (!%p445_p2), 1, %s1397_s14  }
  0x52   : > { %448 = sbr.rel (%p445_p2) target bundleno = 401 (0x191), region = 88  ;;  %s485_s28 = sand.u32 (!%p445_p2), 1, %s1389_s12  }
  0x53   : > { %s1175_s23 = smul.u32 (!%p445_p2), 24, %s451_s0  ;;  %s1106_s7 = sshll.u32 (!%p445_p2), %s485_s28, 5 }
  0x54   : > { %s1176_s25 = smul.u32 (!%p445_p2), 384, %s458_s5  ;;  %s1107_s11 = sshll.u32 (!%p445_p2), %s1417_s19, 1 }
  0x55   : > { %p493_p3 = scmp.lt.s32.totalorder (!%p445_p2), %s1107_s11, 3  ;;  %s1679_s27 = scalar_lea.vmem (!%p445_p2), [#allocation3], %s1175_s23 }
  0x56   : > { %s1681_s6 = scalar_lea.vmem (!%p445_p2), [#allocation4], %s1176_s25  ;;  %s1683_s1 = scalar_lea.vmem (!%p445_p2), [#allocation5], %s1106_s7 }
  0x57   : > { %p1108_p4 = scmp.ne.s32.totalorder (!%p445_p2), %s1413_s18, 0 }
  0x59   : > { %s1821_s11 = smov (!%p493_p3, %s1107_s11), 3  ;;  %503 = sbr.rel (%p1108_p4) target bundleno = 96 (0x60), region = 100 }
  0x5a   : > { %s495_s4 = scalar_lea.vmem %s1792_s2, %s1821_s11  ;;  %v1431_v52 = vmov (!%p1108_p4), 0.0  }
  0x5b   : > { %504 = vst [vmem:[#allocation2] sm:$0xff] (!%p1108_p4), %v1431_v52  ;;  %505 = vst [vmem:[#allocation2 + $0x8] sm:$0xff] (!%p1108_p4), %v1431_v52 }
  0x5c   : > { %506 = vst [vmem:[#allocation2 + $0x10] sm:$0xff] (!%p1108_p4), %v1431_v52  ;;  %507 = vst [vmem:[#allocation2 + $0x18] sm:$0xff] (!%p1108_p4), %v1431_v52 }
  0x60 PF: > { %v1267_v53 = vld [vmem:[%s1681_s6 + $0x4] ss:$8 sps:$4 sm:$0xff]   ;;  %v1269_v54 = vld [vmem:[%s1681_s6] ss:$8 sps:$4 sm:$0xff]   ;;  %v1432_v55 = vmov 0   ;;  %p1160_p5 = scmp.ne.s32.totalorder %s1413_s18, 5 }
  0x61   : > { %895 = vmatprep.mubr.bf16.mxu0 %v1432_v55  ;;  %820 = vmatprep.subr.bf16.mxu1 %v1267_v53  ;;  %v1270_v56 = vld [vmem:[%s1681_s6 + $0x14] ss:$8 sps:$4 sm:$0xff]   ;;  %v1272_v57 = vld [vmem:[%s1681_s6 + $0x10] ss:$8 sps:$4 sm:$0xff]   ;;  %v1273_v58 = vld [vmem:[%s1681_s6 + $0x24] ss:$8 sps:$4 sm:$0xff]  }
  0x62   : > { %821 = vmatpush1.bf16.msra.mxu1 %v1269_v54  ;;  %v1275_v59 = vld [vmem:[%s1681_s6 + $0x20] ss:$8 sps:$4 sm:$0xff]   ;;  %v1276_v60 = vld [vmem:[%s1681_s6 + $0x34] ss:$8 sps:$4 sm:$0xff]   ;;  %v1278_v61 = vld [vmem:[%s1681_s6 + $0x30] ss:$8 sps:$4 sm:$0xff]  }
  0x63   : > { %822 = vmatprep.subr.bf16.mxu1 %v1270_v56  ;;  %v1291_v62 = vld [vmem:[%s1681_s6 + $0x104] ss:$8 sps:$4 sm:$0xff]   ;;  %v1293_v63 = vld [vmem:[%s1681_s6 + $0x100] ss:$8 sps:$4 sm:$0xff]   ;;  %v1297_v1 = vld [vmem:[%s1681_s6 + $0x114] ss:$8 sps:$4 sm:$0xff]  }
  0x64   : > { %v1279_v0 = vld [vmem:[%s1681_s6 + $0x44] ss:$8 sps:$4 sm:$0xff]   ;;  %863 = vmatprep.subr.bf16.mxu0 %v1291_v62  ;;  %v1299_v2 = vld [vmem:[%s1681_s6 + $0x110] ss:$8 sps:$4 sm:$0xff]   ;;  %v1281_v3 = vld [vmem:[%s1681_s6 + $0x40] ss:$8 sps:$4 sm:$0xff]  }
  0x65   : > { %864 = vmatpush1.bf16.msra.mxu0 %v1293_v63  ;;  %v1282_v4 = vld [vmem:[%s1681_s6 + $0x54] ss:$8 sps:$4 sm:$0xff]   ;;  %v1303_v5 = vld [vmem:[%s1681_s6 + $0x124] ss:$8 sps:$4 sm:$0xff]   ;;  %v1305_v6 = vld [vmem:[%s1681_s6 + $0x120] ss:$8 sps:$4 sm:$0xff]  }
  0x66   : > { %823 = vmatpush1.bf16.msra.mxu1 %v1272_v57  ;;  %865 = vmatprep.subr.bf16.mxu0 %v1297_v1  ;;  %v1284_v7 = vld [vmem:[%s1681_s6 + $0x50] ss:$8 sps:$4 sm:$0xff]   ;;  %v1309_v8 = vld [vmem:[%s1681_s6 + $0x134] ss:$8 sps:$4 sm:$0xff]   ;;  %v1285_v9 = vld [vmem:[%s1681_s6 + $0x64] ss:$8 sps:$4 sm:$0xff]  }
  0x67   : > { %824 = vmatprep.subr.bf16.mxu1 %v1273_v58  ;;  %v1311_v10 = vld [vmem:[%s1681_s6 + $0x130] ss:$8 sps:$4 sm:$0xff]   ;;  %v1287_v11 = vld [vmem:[%s1681_s6 + $0x60] ss:$8 sps:$4 sm:$0xff]   ;;  %v1315_v12 = vld [vmem:[%s1681_s6 + $0x144] ss:$8 sps:$4 sm:$0xff]  }
  0x68   : > { %v1288_v13 = vld [vmem:[%s1681_s6 + $0x74] ss:$8 sps:$4 sm:$0xff]   ;;  %v1317_v14 = vld [vmem:[%s1681_s6 + $0x140] ss:$8 sps:$4 sm:$0xff]   ;;  %v1290_v15 = vld [vmem:[%s1681_s6 + $0x70] ss:$8 sps:$4 sm:$0xff]  }
  0x69   : > { %866 = vmatpush1.bf16.msra.mxu0 %v1299_v2  ;;  %v1321_v16 = vld [vmem:[%s1681_s6 + $0x154] ss:$8 sps:$4 sm:$0xff]   ;;  %v1294_v17 = vld [vmem:[%s1681_s6 + $0x84] ss:$8 sps:$4 sm:$0xff]   ;;  %v1323_v18 = vld [vmem:[%s1681_s6 + $0x150] ss:$8 sps:$4 sm:$0xff]  }
  0x6a   : > { %825 = vmatpush1.bf16.msra.mxu1 %v1275_v59  ;;  %867 = vmatprep.subr.bf16.mxu0 %v1303_v5  ;;  %v1296_v19 = vld [vmem:[%s1681_s6 + $0x80] ss:$8 sps:$4 sm:$0xff]   ;;  %v1327_v20 = vld [vmem:[%s1681_s6 + $0x164] ss:$8 sps:$4 sm:$0xff]   ;;  %v1300_v21 = vld [vmem:[%s1681_s6 + $0x94] ss:$8 sps:$4 sm:$0xff]  }
  0x6b   : > { %826 = vmatprep.subr.bf16.mxu1 %v1276_v60  ;;  %v1329_v22 = vld [vmem:[%s1681_s6 + $0x160] ss:$8 sps:$4 sm:$0xff]   ;;  %v1302_v24 = vld [vmem:[%s1681_s6 + $0x90] ss:$8 sps:$4 sm:$0xff]   ;;  %v1333_v25 = vld [vmem:[%s1681_s6 + $0x174] ss:$8 sps:$4 sm:$0xff]  }
  0x6c   : > { %v1342_v23 = vld [vmem:[%s1679_s27 + $0x4] ss:$12 sps:$4 sm:$0xff]   ;;  %v1339_v30 = vld [vmem:[%s1679_s27 + $0x8] ss:$12 sps:$4 sm:$0xff]   ;;  %v1340_v40 = vld [vmem:[%s1679_s27] ss:$12 sps:$4 sm:$0xff]  }
  0x6d   : > { %868 = vmatpush1.bf16.msra.mxu0 %v1305_v6  ;;  %v1306_v26 = vld [vmem:[%s1681_s6 + $0xa4] ss:$8 sps:$4 sm:$0xff]   ;;  %852 = vmatprep.mubr.bf16.mxu1 %v1342_v23  ;;  %v1335_v27 = vld [vmem:[%s1681_s6 + $0x170] ss:$8 sps:$4 sm:$0xff]   ;;  %v1308_v28 = vld [vmem:[%s1681_s6 + $0xa0] ss:$8 sps:$4 sm:$0xff]  }
  0x6e   : > { %827 = vmatpush1.bf16.msra.mxu1 %v1278_v61  ;;  %869 = vmatprep.subr.bf16.mxu0 %v1309_v8  ;;  %v1312_v29 = vld [vmem:[%s1681_s6 + $0xb4] ss:$8 sps:$4 sm:$0xff]   ;;  %v1314_v31 = vld [vmem:[%s1681_s6 + $0xb0] ss:$8 sps:$4 sm:$0xff]   ;;  %v1318_v32 = vld [vmem:[%s1681_s6 + $0xc4] ss:$8 sps:$4 sm:$0xff]   ;;  %v924_v61 = vlaneseq (!%p1160_p5) }
  0x6f   : > { %828 = vmatprep.subr.bf16.mxu1 %v1279_v0  ;;  %v1320_v33 = vld [vmem:[%s1681_s6 + $0xc0] ss:$8 sps:$4 sm:$0xff]   ;;  %v1324_v34 = vld [vmem:[%s1681_s6 + $0xd4] ss:$8 sps:$4 sm:$0xff]   ;;  %v1326_v35 = vld [vmem:[%s1681_s6 + $0xd0] ss:$8 sps:$4 sm:$0xff]  }
  0x70   : > { %v1330_v36 = vld [vmem:[%s1681_s6 + $0xe4] ss:$8 sps:$4 sm:$0xff]   ;;  %v1332_v37 = vld [vmem:[%s1681_s6 + $0xe0] ss:$8 sps:$4 sm:$0xff]   ;;  %v1336_v38 = vld [vmem:[%s1681_s6 + $0xf4] ss:$8 sps:$4 sm:$0xff]  }
  0x71   : > { %870 = vmatpush1.bf16.msra.mxu0 %v1311_v10  ;;  %v1338_v39 = vld [vmem:[%s1681_s6 + $0xf0] ss:$8 sps:$4 sm:$0xff]   ;;  %v510_v51 = vld [vmem:[#allocation2 + $0x10] sm:$0xff]  ;;  %v511_v55 = vld [vmem:[#allocation2 + $0x18] sm:$0xff]  ;;  %v925_v62 = vshrl.u32 (!%p1160_p5), %v924_v61, 7 }
  0x72   : > { %829 = vmatpush1.bf16.msra.mxu1 %v1281_v3  ;;  %871 = vmatprep.subr.bf16.mxu0 %v1315_v12  ;;  %v508_v45 = vld [vmem:[#allocation2] sm:$0xff]  ;;  %v509_v48 = vld [vmem:[#allocation2 + $0x8] sm:$0xff] }
  0x73   : > { %830 = vmatprep.subr.bf16.mxu1 %v1282_v4  ;;  %v922_v63 = vld [vmem:[%s495_s4] sm:$0x3] (!%p1160_p5)  ;;  %v926_v1 = vsub.s32 (!%p1160_p5), 0, %v925_v62  ;;  %v930_v2 = vsub.s32 (!%p1160_p5), 1, %v925_v62 }
  0x75   : > { %872 = vmatpush1.bf16.msra.mxu0 %v1317_v14  ;;  %v927_v6 = vrot.slane (!%p1160_p5), %v922_v63, %v926_v1 }
  0x76   : > { %831 = vmatpush1.bf16.msra.mxu1 %v1284_v7  ;;  %873 = vmatprep.subr.bf16.mxu0 %v1321_v16  ;;  %v931_v7 = vrot.slane (!%p1160_p5), %v922_v63, %v930_v2 }
  0x77   : > { %832 = vmatprep.subr.bf16.mxu1 %v1285_v9 }
  0x79   : > { %874 = vmatpush1.bf16.msra.mxu0 %v1323_v18 }
  0x7a   : > { %833 = vmatpush1.bf16.msra.mxu1 %v1287_v11  ;;  %875 = vmatprep.subr.bf16.mxu0 %v1327_v20 }
  0x7b   : > { %834 = vmatprep.subr.bf16.mxu1 %v1288_v13 }
  0x7d   : > { %876 = vmatpush1.bf16.msra.mxu0 %v1329_v22 }
  0x7e   : > { %835 = vmatpush1.bf16.msra.mxu1 %v1290_v15  ;;  %877 = vmatprep.subr.bf16.mxu0 %v1333_v25 }
  0x7f   : > { %836 = vmatprep.subr.bf16.mxu1 %v1294_v17 }
  0x81   : > { %878 = vmatpush1.bf16.msra.mxu0 %v1335_v27 }
  0x82   : > { %837 = vmatpush1.bf16.msra.mxu1 %v1296_v19 }
  0x83   : > { %838 = vmatprep.subr.bf16.mxu1 %v1300_v21 }
  0x84   : > { %896 = vmatmul.mubr.bf16.vlgmr.msra.gmra.mrb[0].mxu0 %v1339_v30 }
  0x86   : > { %839 = vmatpush1.bf16.msra.mxu1 %v1302_v24 }
  0x87   : > { %840 = vmatprep.subr.bf16.mxu1 %v1306_v26 }
  0x8a   : > { %841 = vmatpush1.bf16.msra.mxu1 %v1308_v28 }
  0x8b   : > { %842 = vmatprep.subr.bf16.mxu1 %v1312_v29 }
  0x8e   : > { %843 = vmatpush1.bf16.msra.mxu1 %v1314_v31 }
  0x8f   : > { %844 = vmatprep.subr.bf16.mxu1 %v1318_v32 }
  0x92   : > { %845 = vmatpush1.bf16.msra.mxu1 %v1320_v33 }
  0x93   : > { %846 = vmatprep.subr.bf16.mxu1 %v1324_v34 }
  0x96   : > { %847 = vmatpush1.bf16.msra.mxu1 %v1326_v35 }
  0x97   : > { %848 = vmatprep.subr.bf16.mxu1 %v1330_v36 }
  0x9a   : > { %849 = vmatpush1.bf16.msra.mxu1 %v1332_v37 }
  0x9b   : > { %850 = vmatprep.subr.bf16.mxu1 %v1336_v38 }
  0x9e   : > { %851 = vmatpush1.bf16.msra.mxu1 %v1338_v39 }
  0xa1   : > { %853 = vmatmul.mubr.bf16.vlgmr.msra.gmra.mrb[0].mxu1 %v1340_v40 }
 0x157   : > { %v897_v41 = vpop.f32.mrb[0].mxu0 }
 0x158   : > { %v899_v42 = vpop.f32.mrb[1].mxu0 }
 0x159   : > { %v901_v43 = vpop.f32.mrb[2].mxu0 }
 0x15a   : > { %v903_v44 = vpop.f32.mrb[3].mxu0 }
 0x174   : > { %v854_v46 = vpop.f32.mrb[0].mxu1 }
 0x175   : > { %v898_v47 = vadd.f32 %v897_v41, %v854_v46  ;;  %v856_v49 = vpop.f32.mrb[1].mxu1 }
 0x176   : > { %v900_v50 = vadd.f32 %v899_v42, %v856_v49  ;;  %v858_v52 = vpop.f32.mrb[2].mxu1  ;;  %917 = sbr.rel (%p1160_p5) target bundleno = 393 (0x189), region = 104 }
 0x177   : > { %v906_v53 = vadd.f32 %v898_v47, %v508_v45  ;;  %v902_v54 = vadd.f32 %v901_v43, %v858_v52  ;;  %v860_v56 = vpop.f32.mrb[3].mxu1 }
 0x178   : > { %v907_v57 = vadd.f32 %v900_v50, %v509_v48  ;;  %v904_v58 = vadd.f32 %v903_v44, %v860_v56 }
 0x179   : > { %910 = vst [vmem:[#allocation2] sm:$0xff] %v906_v53  ;;  %v908_v59 = vadd.f32 %v902_v54, %v510_v51 }
 0x17a   : > { %911 = vst [vmem:[#allocation2 + $0x8] sm:$0xff] %v907_v57  ;;  %v909_v60 = vadd.f32 %v904_v58, %v511_v55 }
 0x17b   : > { %912 = vst [vmem:[#allocation2 + $0x10] sm:$0xff] %v908_v59 }
 0x17c   : > { %913 = vst [vmem:[#allocation2 + $0x18] sm:$0xff] %v909_v60 }
 0x180   : > { %v918_v0 = vld [vmem:[#allocation2] sm:$0xff] }
 0x181   : > { %v919_v3 = vld [vmem:[#allocation2 + $0x8] sm:$0xff]  ;;  %v934_v8 = vadd.f32 %v927_v6, %v918_v0 }
 0x182   : > { %v920_v4 = vld [vmem:[#allocation2 + $0x10] sm:$0xff]  ;;  %v935_v9 = vadd.f32 %v931_v7, %v919_v3 }
 0x183   : > { %v921_v5 = vld [vmem:[#allocation2 + $0x18] sm:$0xff]  ;;  %v936_v10 = vadd.f32 %v927_v6, %v920_v4  ;;  %v938_v12 = vmax.f32 %v934_v8, 0.0 }
 0x184   : > { %v937_v11 = vadd.f32 %v931_v7, %v921_v5  ;;  %v939_v13 = vmax.f32 %v935_v9, 0.0 }
 0x185   : > { %v940_v14 = vmax.f32 %v936_v10, 0.0  ;;  %942 = vst [vmem:[%s1683_s1] sm:$0xff] %v938_v12 }
 0x186   : > { %v941_v15 = vmax.f32 %v937_v11, 0.0  ;;  %943 = vst [vmem:[%s1683_s1 + $0x8] sm:$0xff] %v939_v13 }
 0x187   : > { %944 = vst [vmem:[%s1683_s1 + $0x10] sm:$0xff] %v940_v14 }
 0x188   : > { %945 = vst [vmem:[%s1683_s1 + $0x18] sm:$0xff] %v941_v15 }
 0x189 PF: > { %952 = sbr.rel (!%p1547_p12) target bundleno = 401 (0x191), region = 108  ;;  %s1168_s16 = sshll.u32 (%p1547_p12), %s1417_s19, 4 }
 0x18a   : > { %s958_s5 = scalar_lea.vmem (%p1547_p12), %s1793_s3, %s1168_s16 }
 0x18c   : > { %v971_v16 = vld [vmem:[%s1683_s1] sm:$0xff] (%p1547_p12) }
 0x18d   : > { %v973_v17 = vld [vmem:[%s1683_s1 + $0x8] sm:$0xff] (%p1547_p12)  ;;  %972 = vst [vmem:[%s958_s5] sm:$0xff] (%p1547_p12), %v971_v16 }
 0x18e   : > { %v975_v18 = vld [vmem:[%s1683_s1 + $0x10] sm:$0xff] (%p1547_p12)  ;;  %974 = vst [vmem:[%s958_s5 + $0x8] sm:$0xff] (%p1547_p12), %v973_v17 }
 0x18f   : > { %v977_v19 = vld [vmem:[%s1683_s1 + $0x18] sm:$0xff] (%p1547_p12)  ;;  %976 = vst [vmem:[%s958_s5 + $0x20] sm:$0xff] (%p1547_p12), %v975_v18 }
 0x190   : > { %978 = vst [vmem:[%s958_s5 + $0x28] sm:$0xff] %v977_v19 }
 0x191 PF: > { %s13_s22 = sadd.s32 1, %s1429_s22   ;;  %s1803_s10 = sld [smem:[#allocation6_spill]] }
 0x192   : > { %p10_p6 = scmp.ge.s32.totalorder %s13_s22, 14   ;;  %s1804_s12 = smov %s1393_s13 }
 0x193   : > { %s1805_s13 = smov %s1545_s9  ;;  %s1806_s14 = smov %s1401_s15 }
 0x194   : > { %s1807_s15 = smov %s1542_s8  ;;  %s1808_s16 = smov %s1409_s17 }
 0x195   : > { %s1809_s17 = smov %s1528_s30  ;;  %s1810_s18 = smov %s1421_s20 }
 0x196   : > { %s1811_s19 = smov %s1425_s21  ;;  %s1812_s20 = smov %s1815_s24 }
 0x197   : > { %s1813_s21 = smov %s1803_s10  ;;  %12 = sbr.rel (!%p10_p6) target bundleno = 9 (0x9), region = 179 }

// kernel: resnet_forward.24
= control target key start
LH: loop header
LB: loop body
LE: loop exit
PB: predicated region body
PF: predicated region fallthrough
CT: control target
= control target key end

     0   :  { %s1052_s12 = smov 0   ;;  %s1054_s13 = smov 0   ;;  %s1240_s0 = inlined_call_operand.vmem [shape: bf16[16,256], index: 0, kind: input, shape index: {}]   ;;  %s1241_s1 = inlined_call_operand.vmem [shape: bf16[256,512], index: 1, kind: input, shape index: {}]   ;;  %s1242_s2 = inlined_call_operand.vmem [shape: f32[1,512], index: 2, kind: input, shape index: {}]   ;;  %s1243_s3 = inlined_call_operand.vmem [shape: f32[16,512], index: 3, kind: output, shape index: {}]  }
   0x1   :  { %s1056_s14 = smov 0   ;;  %s1058_s15 = smov 0  }
   0x2   :  { %s1060_s16 = smov 0  }
   0x3 LB: > { %s28_s17 = sadd.s32 1, %s1026_s15  ;;  %s848_s18 = sadd.s32 4294967295, %s1030_s16   ;;  %s1030_s16 = sphi %s1060_s16, %s13_s16   ;;  %s1026_s15 = sphi %s1058_s15, %s1248_s15   ;;  %s1022_s14 = sphi %s1056_s14, %s1247_s14   ;;  %s1018_s13 = sphi %s1054_s13, %s1246_s13   ;;  %s1014_s12 = sphi %s1052_s12, %s1245_s12  }
   0x4   : > { %p30_p0 = scmp.ge.s32.totalorder %s28_s17, 2  ;;  %p76_p1 = scmp.ne.s32.totalorder %s1018_s13, %s1014_s12 }
   0x5   : > { %p77_p2 = scmp.eq.s32.totalorder %s1030_s16, 0  ;;  %p134_p4 = scmp.eq.s32.totalorder %s848_s18, 1 }
   0x6   : > { %s1250_s17 = smov (%p30_p0, %s28_s17), 0  ;;  %s69_s20 = sadd.s32 1, %s1018_s13 }
   0x7   : > { %p78_p3 = por %p77_p2, %p76_p1  ;;  %s65_s19 = ssub.s32 %s1026_s15, %s1250_s17 }
   0x8   : > { %p67_p5 = scmp.eq.s32.totalorder %s65_s19, 0  ;;  %p1087_p6 = por %p134_p4, %p76_p1 }
   0x9   : > { %p852_p7 = scmp.ge.s32.totalorder %s1030_s16, 2 }
   0xa   : > { %s1092_s22 = scalar_select %p67_p5, %s1018_s13, %s69_s20  }
   0xb   : > { %171 = sbr.rel (%p852_p7) target bundleno = 38 (0x26), region = 20 }
  0x12   : > { %174 = sbr.rel (!%p78_p3) target bundleno = 38 (0x26), region = 24  ;;  %s176_s23 = sand.u32 (%p78_p3), 1, %s1018_s13  }
  0x13   : > { %s899_s24 = sshll.u32 (%p78_p3), %s1026_s15, 3  ;;  %s853_s25 = sshll.u32 (%p78_p3), %s176_s23, 8 }
  0x14   : > { %s1100_s28 = scalar_lea.vmem (%p78_p3), %s1241_s1, %s899_s24  ;;  %s1105_s29 = scalar_lea.vmem (%p78_p3), [#allocation3], %s853_s25 }
  0x15   : > { %v274_v0 = vld [vmem:[%s1100_s28] sm:$0xff] (%p78_p3)  ;;  %v276_v1 = vld [vmem:[%s1100_s28 + $0x10] sm:$0xff] (%p78_p3) }
  0x16   : > { %v278_v2 = vld [vmem:[%s1100_s28 + $0x20] sm:$0xff] (%p78_p3)  ;;  %275 = vst [vmem:[%s1105_s29] sm:$0xff] (%p78_p3), %v274_v0  ;;  %277 = vst [vmem:[%s1105_s29 + $0x8] sm:$0xff] (%p78_p3), %v276_v1  ;;  %v280_v3 = vld [vmem:[%s1100_s28 + $0x30] sm:$0xff] (%p78_p3) }
  0x17   : > { %279 = vst [vmem:[%s1105_s29 + $0x10] sm:$0xff] (%p78_p3), %v278_v2  ;;  %v282_v4 = vld [vmem:[%s1100_s28 + $0x40] sm:$0xff] (%p78_p3)  ;;  %v284_v5 = vld [vmem:[%s1100_s28 + $0x50] sm:$0xff] (%p78_p3)  ;;  %281 = vst [vmem:[%s1105_s29 + $0x18] sm:$0xff] (%p78_p3), %v280_v3 }
  0x18   : > { %283 = vst [vmem:[%s1105_s29 + $0x20] sm:$0xff] (%p78_p3), %v282_v4  ;;  %285 = vst [vmem:[%s1105_s29 + $0x28] sm:$0xff] (%p78_p3), %v284_v5  ;;  %v286_v6 = vld [vmem:[%s1100_s28 + $0x60] sm:$0xff] (%p78_p3)  ;;  %v288_v7 = vld [vmem:[%s1100_s28 + $0x70] sm:$0xff] (%p78_p3) }
  0x19   : > { %v290_v8 = vld [vmem:[%s1100_s28 + $0x80] sm:$0xff]  ;;  %287 = vst [vmem:[%s1105_s29 + $0x30] sm:$0xff] %v286_v6  ;;  %289 = vst [vmem:[%s1105_s29 + $0x38] sm:$0xff] %v288_v7  ;;  %v292_v9 = vld [vmem:[%s1100_s28 + $0x90] sm:$0xff] }
  0x1a   : > { %291 = vst [vmem:[%s1105_s29 + $0x40] sm:$0xff] %v290_v8  ;;  %v294_v10 = vld [vmem:[%s1100_s28 + $0xa0] sm:$0xff]  ;;  %v296_v11 = vld [vmem:[%s1100_s28 + $0xb0] sm:$0xff]  ;;  %293 = vst [vmem:[%s1105_s29 + $0x48] sm:$0xff] %v292_v9 }
  0x1b   : > { %295 = vst [vmem:[%s1105_s29 + $0x50] sm:$0xff] %v294_v10  ;;  %297 = vst [vmem:[%s1105_s29 + $0x58] sm:$0xff] %v296_v11  ;;  %v298_v12 = vld [vmem:[%s1100_s28 + $0xc0] sm:$0xff]  ;;  %v300_v13 = vld [vmem:[%s1100_s28 + $0xd0] sm:$0xff] }
  0x1c   : > { %v302_v14 = vld [vmem:[%s1100_s28 + $0xe0] sm:$0xff]  ;;  %299 = vst [vmem:[%s1105_s29 + $0x60] sm:$0xff] %v298_v12  ;;  %301 = vst [vmem:[%s1105_s29 + $0x68] sm:$0xff] %v300_v13  ;;  %v304_v15 = vld [vmem:[%s1100_s28 + $0xf0] sm:$0xff] }
  0x1d   : > { %303 = vst [vmem:[%s1105_s29 + $0x70] sm:$0xff] %v302_v14  ;;  %v306_v16 = vld [vmem:[%s1100_s28 + $0x100] sm:$0xff]  ;;  %v308_v17 = vld [vmem:[%s1100_s28 + $0x110] sm:$0xff]  ;;  %305 = vst [vmem:[%s1105_s29 + $0x78] sm:$0xff] %v304_v15 }
  0x1e   : > { %307 = vst [vmem:[%s1105_s29 + $0x80] sm:$0xff] %v306_v16  ;;  %309 = vst [vmem:[%s1105_s29 + $0x88] sm:$0xff] %v308_v17  ;;  %v310_v18 = vld [vmem:[%s1100_s28 + $0x120] sm:$0xff]  ;;  %v312_v19 = vld [vmem:[%s1100_s28 + $0x130] sm:$0xff] }
  0x1f   : > { %v314_v20 = vld [vmem:[%s1100_s28 + $0x140] sm:$0xff]  ;;  %311 = vst [vmem:[%s1105_s29 + $0x90] sm:$0xff] %v310_v18  ;;  %313 = vst [vmem:[%s1105_s29 + $0x98] sm:$0xff] %v312_v19  ;;  %v316_v21 = vld [vmem:[%s1100_s28 + $0x150] sm:$0xff] }
  0x20   : > { %315 = vst [vmem:[%s1105_s29 + $0xa0] sm:$0xff] %v314_v20  ;;  %v318_v22 = vld [vmem:[%s1100_s28 + $0x160] sm:$0xff]  ;;  %v320_v23 = vld [vmem:[%s1100_s28 + $0x170] sm:$0xff]  ;;  %317 = vst [vmem:[%s1105_s29 + $0xa8] sm:$0xff] %v316_v21 }
  0x21   : > { %319 = vst [vmem:[%s1105_s29 + $0xb0] sm:$0xff] %v318_v22  ;;  %321 = vst [vmem:[%s1105_s29 + $0xb8] sm:$0xff] %v320_v23  ;;  %v322_v24 = vld [vmem:[%s1100_s28 + $0x180] sm:$0xff]  ;;  %v324_v25 = vld [vmem:[%s1100_s28 + $0x190] sm:$0xff] }
  0x22   : > { %v326_v26 = vld [vmem:[%s1100_s28 + $0x1a0] sm:$0xff]  ;;  %323 = vst [vmem:[%s1105_s29 + $0xc0] sm:$0xff] %v322_v24  ;;  %325 = vst [vmem:[%s1105_s29 + $0xc8] sm:$0xff] %v324_v25  ;;  %v328_v27 = vld [vmem:[%s1100_s28 + $0x1b0] sm:$0xff] }
  0x23   : > { %327 = vst [vmem:[%s1105_s29 + $0xd0] sm:$0xff] %v326_v26  ;;  %v330_v28 = vld [vmem:[%s1100_s28 + $0x1c0] sm:$0xff]  ;;  %v332_v29 = vld [vmem:[%s1100_s28 + $0x1d0] sm:$0xff]  ;;  %329 = vst [vmem:[%s1105_s29 + $0xd8] sm:$0xff] %v328_v27 }
  0x24   : > { %331 = vst [vmem:[%s1105_s29 + $0xe0] sm:$0xff] %v330_v28  ;;  %333 = vst [vmem:[%s1105_s29 + $0xe8] sm:$0xff] %v332_v29  ;;  %v334_v30 = vld [vmem:[%s1100_s28 + $0x1e0] sm:$0xff]  ;;  %v336_v31 = vld [vmem:[%s1100_s28 + $0x1f0] sm:$0xff] }
  0x25   : > { %335 = vst [vmem:[%s1105_s29 + $0xf0] sm:$0xff] %v334_v30  ;;  %337 = vst [vmem:[%s1105_s29 + $0xf8] sm:$0xff] %v336_v31 }
  0x26 PF: > { %p856_p8 = scmp.ge.s32.totalorder %s1030_s16, 1  ;;  %p350_p9 = scmp.lt.s32.totalorder %s1030_s16, 3 }
  0x28   : > { %p351_p10 = pnand %p856_p8, %p350_p9 }
  0x29   : > { %s357_s30 = sand.u32 (!%p351_p10), 1, %s1014_s12   ;;  %v991_v32 = vld [vmem:[%s1240_s0 + $0x4] ss:$8 sps:$4 sm:$0xff] (!%p351_p10)   ;;  %v989_v1 = vld [vmem:[%s1240_s0] ss:$8 sps:$4 sm:$0xff] (!%p351_p10)   ;;  %s859_s10 = sshll.u32 (!%p351_p10), %s1022_s14, 1  ;;  %v690_v2 = vlaneseq (!%p351_p10) }
  0x2a   : > { %354 = sbr.rel (%p351_p10) target bundleno = 335 (0x14f), region = 66  ;;  %s857_s4 = sshll.u32 (!%p351_p10), %s357_s30, 8  ;;  %662 = vmatprep.mubr.bf16.mxu0 (!%p351_p10), %v991_v32 }
  0x2b   : > { %s1176_s7 = scalar_lea.vmem (!%p351_p10), [#allocation3], %s857_s4  ;;  %p408_p11 = scmp.lt.s32.totalorder (!%p351_p10), %s859_s10, 3  ;;  %v691_v3 = vshrl.u32 (!%p351_p10), %v690_v2, 7 }
  0x2c   : > { %v941_v33 = vld [vmem:[%s1176_s7 + $0x4] ss:$8 sps:$4 sm:$0xff] (!%p351_p10)   ;;  %v943_v34 = vld [vmem:[%s1176_s7] ss:$8 sps:$4 sm:$0xff] (!%p351_p10)   ;;  %v944_v35 = vld [vmem:[%s1176_s7 + $0x14] ss:$8 sps:$4 sm:$0xff] (!%p351_p10)  }
  0x2d   : > { %630 = vmatprep.subr.bf16.mxu0 (!%p351_p10), %v941_v33  ;;  %v946_v36 = vld [vmem:[%s1176_s7 + $0x10] ss:$8 sps:$4 sm:$0xff] (!%p351_p10)   ;;  %v947_v37 = vld [vmem:[%s1176_s7 + $0x24] ss:$8 sps:$4 sm:$0xff] (!%p351_p10)   ;;  %v949_v38 = vld [vmem:[%s1176_s7 + $0x20] ss:$8 sps:$4 sm:$0xff] (!%p351_p10)  }
  0x2e   : > { %631 = vmatpush1.bf16.msra.mxu0 (!%p351_p10), %v943_v34  ;;  %v950_v39 = vld [vmem:[%s1176_s7 + $0x34] ss:$8 sps:$4 sm:$0xff] (!%p351_p10)   ;;  %v952_v40 = vld [vmem:[%s1176_s7 + $0x30] ss:$8 sps:$4 sm:$0xff] (!%p351_p10)   ;;  %v953_v41 = vld [vmem:[%s1176_s7 + $0x44] ss:$8 sps:$4 sm:$0xff] (!%p351_p10)  }
  0x2f   : > { %632 = vmatprep.subr.bf16.mxu0 (!%p351_p10), %v944_v35  ;;  %v955_v42 = vld [vmem:[%s1176_s7 + $0x40] ss:$8 sps:$4 sm:$0xff] (!%p351_p10)   ;;  %v956_v43 = vld [vmem:[%s1176_s7 + $0x54] ss:$8 sps:$4 sm:$0xff] (!%p351_p10)   ;;  %v958_v44 = vld [vmem:[%s1176_s7 + $0x50] ss:$8 sps:$4 sm:$0xff] (!%p351_p10)  }
  0x30   : > { %v959_v45 = vld [vmem:[%s1176_s7 + $0x64] ss:$8 sps:$4 sm:$0xff] (!%p351_p10)   ;;  %v961_v46 = vld [vmem:[%s1176_s7 + $0x60] ss:$8 sps:$4 sm:$0xff] (!%p351_p10)   ;;  %v962_v47 = vld [vmem:[%s1176_s7 + $0x74] ss:$8 sps:$4 sm:$0xff] (!%p351_p10)  }
  0x31   : > { %v964_v48 = vld [vmem:[%s1176_s7 + $0x70] ss:$8 sps:$4 sm:$0xff]   ;;  %v965_v49 = vld [vmem:[%s1176_s7 + $0x84] ss:$8 sps:$4 sm:$0xff]   ;;  %v967_v50 = vld [vmem:[%s1176_s7 + $0x80] ss:$8 sps:$4 sm:$0xff]  }
  0x32   : > { %633 = vmatpush1.bf16.msra.mxu0 %v946_v36  ;;  %v968_v51 = vld [vmem:[%s1176_s7 + $0x94] ss:$8 sps:$4 sm:$0xff]   ;;  %v970_v52 = vld [vmem:[%s1176_s7 + $0x90] ss:$8 sps:$4 sm:$0xff]   ;;  %v971_v53 = vld [vmem:[%s1176_s7 + $0xa4] ss:$8 sps:$4 sm:$0xff]  }
  0x33   : > { %634 = vmatprep.subr.bf16.mxu0 %v947_v37  ;;  %v973_v54 = vld [vmem:[%s1176_s7 + $0xa0] ss:$8 sps:$4 sm:$0xff]   ;;  %v974_v55 = vld [vmem:[%s1176_s7 + $0xb4] ss:$8 sps:$4 sm:$0xff]   ;;  %v976_v56 = vld [vmem:[%s1176_s7 + $0xb0] ss:$8 sps:$4 sm:$0xff]  }
  0x34   : > { %v977_v57 = vld [vmem:[%s1176_s7 + $0xc4] ss:$8 sps:$4 sm:$0xff]   ;;  %v979_v58 = vld [vmem:[%s1176_s7 + $0xc0] ss:$8 sps:$4 sm:$0xff]   ;;  %v980_v59 = vld [vmem:[%s1176_s7 + $0xd4] ss:$8 sps:$4 sm:$0xff]  }
  0x35   : > { %v982_v60 = vld [vmem:[%s1176_s7 + $0xd0] ss:$8 sps:$4 sm:$0xff]   ;;  %v983_v61 = vld [vmem:[%s1176_s7 + $0xe4] ss:$8 sps:$4 sm:$0xff]   ;;  %v985_v62 = vld [vmem:[%s1176_s7 + $0xe0] ss:$8 sps:$4 sm:$0xff]  }
  0x36   : > { %635 = vmatpush1.bf16.msra.mxu0 %v949_v38  ;;  %v986_v63 = vld [vmem:[%s1176_s7 + $0xf4] ss:$8 sps:$4 sm:$0xff]   ;;  %v988_v0 = vld [vmem:[%s1176_s7 + $0xf0] ss:$8 sps:$4 sm:$0xff]   ;;  %s1252_s10 = smov (!%p408_p11, %s859_s10), 3  ;;  %v692_v4 = vsub.s32 0, %v691_v3 }
  0x37   : > { %636 = vmatprep.subr.bf16.mxu0 %v950_v39  ;;  %s410_s19 = scalar_lea.vmem %s1242_s2, %s1252_s10  ;;  %v696_v6 = vsub.s32 1, %v691_v3  ;;  %s858_s20 = sshll.u32 %s357_s30, 5 }
  0x38   : > { %v688_v5 = vld [vmem:[%s410_s19] sm:$0x3]  ;;  %s392_s23 = scalar_lea.vmem [#allocation4], %s858_s20  ;;  %s900_s12 = sshll.u32 (%p1087_p6), %s1022_s14, 4 }
  0x39   : > { %v693_v7 = vrot.slane %v688_v5, %v692_v4  ;;  %v697_v8 = vrot.slane %v688_v5, %v696_v6  ;;  %s720_s26 = scalar_lea.vmem (%p1087_p6), %s1243_s3, %s900_s12 }
  0x3a   : > { %637 = vmatpush1.bf16.msra.mxu0 %v952_v40 }
  0x3b   : > { %638 = vmatprep.subr.bf16.mxu0 %v953_v41 }
  0x3e   : > { %639 = vmatpush1.bf16.msra.mxu0 %v955_v42 }
  0x3f   : > { %640 = vmatprep.subr.bf16.mxu0 %v956_v43 }
  0x42   : > { %641 = vmatpush1.bf16.msra.mxu0 %v958_v44 }
  0x43   : > { %642 = vmatprep.subr.bf16.mxu0 %v959_v45 }
  0x46   : > { %643 = vmatpush1.bf16.msra.mxu0 %v961_v46 }
  0x47   : > { %644 = vmatprep.subr.bf16.mxu0 %v962_v47 }
  0x4a   : > { %645 = vmatpush1.bf16.msra.mxu0 %v964_v48 }
  0x4b   : > { %646 = vmatprep.subr.bf16.mxu0 %v965_v49 }
  0x4e   : > { %647 = vmatpush1.bf16.msra.mxu0 %v967_v50 }
  0x4f   : > { %648 = vmatprep.subr.bf16.mxu0 %v968_v51 }
  0x52   : > { %649 = vmatpush1.bf16.msra.mxu0 %v970_v52 }
  0x53   : > { %650 = vmatprep.subr.bf16.mxu0 %v971_v53 }
  0x56   : > { %651 = vmatpush1.bf16.msra.mxu0 %v973_v54 }
  0x57   : > { %652 = vmatprep.subr.bf16.mxu0 %v974_v55 }
  0x5a   : > { %653 = vmatpush1.bf16.msra.mxu0 %v976_v56 }
  0x5b   : > { %654 = vmatprep.subr.bf16.mxu0 %v977_v57 }
  0x5e   : > { %655 = vmatpush1.bf16.msra.mxu0 %v979_v58 }
  0x5f   : > { %656 = vmatprep.subr.bf16.mxu0 %v980_v59 }
  0x62   : > { %657 = vmatpush1.bf16.msra.mxu0 %v982_v60 }
  0x63   : > { %658 = vmatprep.subr.bf16.mxu0 %v983_v61 }
  0x66   : > { %659 = vmatpush1.bf16.msra.mxu0 %v985_v62 }
  0x67   : > { %660 = vmatprep.subr.bf16.mxu0 %v986_v63 }
  0x6a   : > { %661 = vmatpush1.bf16.msra.mxu0 %v988_v0 }
  0x6d   : > { %663 = vmatmul.mubr.bf16.vlgmr.msra.gmra.mrb[0].mxu0 %v989_v1 }
 0x140   : > { %v664_v9 = vpop.f32.mrb[0].mxu0  ;;  %714 = sbr.rel (!%p1087_p6) target bundleno = 335 (0x14f), region = 82 }
 0x141   : > { %v700_v10 = vadd.f32 %v693_v7, %v664_v9  ;;  %v666_v11 = vpop.f32.mrb[1].mxu0 }
 0x142   : > { %v701_v12 = vadd.f32 %v697_v8, %v666_v11  ;;  %v668_v13 = vpop.f32.mrb[2].mxu0 }
 0x143   : > { %704 = vst [vmem:[%s392_s23] sm:$0xff] %v700_v10  ;;  %v702_v14 = vadd.f32 %v693_v7, %v668_v13  ;;  %v670_v15 = vpop.f32.mrb[3].mxu0 }
 0x144   : > { %705 = vst [vmem:[%s392_s23 + $0x8] sm:$0xff] %v701_v12  ;;  %v703_v16 = vadd.f32 %v697_v8, %v670_v15 }
 0x145   : > { %706 = vst [vmem:[%s392_s23 + $0x10] sm:$0xff] %v702_v14 }
 0x146   : > { %707 = vst [vmem:[%s392_s23 + $0x18] sm:$0xff] %v703_v16 }
 0x14a   : > { %v733_v17 = vld [vmem:[%s392_s23] sm:$0xff] }
 0x14b   : > { %v735_v18 = vld [vmem:[%s392_s23 + $0x8] sm:$0xff]  ;;  %734 = vst [vmem:[%s720_s26] sm:$0xff] %v733_v17 }
 0x14c   : > { %v737_v19 = vld [vmem:[%s392_s23 + $0x10] sm:$0xff]  ;;  %736 = vst [vmem:[%s720_s26 + $0x8] sm:$0xff] %v735_v18 }
 0x14d   : > { %v739_v20 = vld [vmem:[%s392_s23 + $0x18] sm:$0xff]  ;;  %738 = vst [vmem:[%s720_s26 + $0x20] sm:$0xff] %v737_v19 }
 0x14e   : > { %740 = vst [vmem:[%s720_s26 + $0x28] sm:$0xff] %v739_v20 }
 0x14f PF: > { %s13_s16 = sadd.s32 1, %s1030_s16   ;;  %s1245_s12 = smov %s1018_s13 }
 0x150   : > { %p10_p12 = scmp.ge.s32.totalorder %s13_s16, 4   ;;  %s1246_s13 = smov %s1092_s22 }
 0x151   : > { %s1247_s14 = smov %s1026_s15  ;;  %s1248_s15 = smov %s1250_s17 }
 0x152   :  { %12 = sbr.rel (!%p10_p12) target bundleno = 3 (0x3), region = 142 }

// kernel: resnet_forward.26
= control target key start
LH: loop header
LB: loop body
LE: loop exit
PB: predicated region body
PF: predicated region fallthrough
CT: control target
= control target key end

     0   :  { %s2170_s0 = inlined_call_operand.vmem [shape: bf16[16,4608], index: 0, kind: input, shape index: {}]   ;;  %s2171_s1 = inlined_call_operand.vmem [shape: bf16[4608,512], index: 1, kind: input, shape index: {}]   ;;  %s2172_s2 = inlined_call_operand.vmem [shape: f32[1,512], index: 2, kind: input, shape index: {}]   ;;  %s2173_s3 = inlined_call_operand.vmem [shape: f32[16,512], index: 3, kind: input, shape index: {}]   ;;  %s2174_s4 = inlined_call_operand.vmem [shape: f32[16,512], index: 4, kind: output, shape index: {}]  }
   0x1   :  { %2177 = sst [smem:[#allocation10_spill]] %s2170_s0 }
   0x2   :  { %s1761_s15 = smov 0   ;;  %s1763_s16 = smov 0  }
   0x3   :  { %s1765_s17 = smov 0   ;;  %s1767_s18 = smov 0  }
   0x4   :  { %s1769_s19 = smov 0   ;;  %s1771_s20 = smov 0  }
   0x5   :  { %s1773_s21 = smov 0   ;;  %s1775_s22 = smov 0  }
   0x6   :  { %s1777_s23 = smov 0   ;;  %s1779_s24 = smov 0  }
   0x7   :  { %s1781_s25 = smov 0  }
   0x8 LB: > { %s1352_s26 = sadd.s32 4294967295, %s1733_s25   ;;  %s26_s27 = sadd.s32 1, %s1725_s23  ;;  %s1733_s25 = sphi %s1781_s25, %s14_s25   ;;  %s1729_s24 = sphi %s1779_s24, %s2198_s24   ;;  %s1725_s23 = sphi %s1777_s23, %s2197_s23   ;;  %s1721_s22 = sphi %s1775_s22, %s2196_s22   ;;  %s1717_s21 = sphi %s1773_s21, %s2195_s21   ;;  %s1713_s20 = sphi %s1771_s20, %s2194_s20   ;;  %s1709_s19 = sphi %s1769_s19, %s2193_s19   ;;  %s1705_s18 = sphi %s1767_s18, %s2192_s18   ;;  %s1701_s17 = sphi %s1765_s17, %s2191_s17   ;;  %s1697_s16 = sphi %s1763_s16, %s2190_s16   ;;  %s1693_s15 = sphi %s1761_s15, %s2189_s15  }
   0x9   : > { %p27_p0 = scmp.ge.s32.totalorder %s26_s27, 9  ;;  %s29_s28 = sadd.s32 1, %s1729_s24 }
   0xa   : > { %s42_s29 = sadd.s32 1, %s1713_s20  ;;  %p49_p1 = scmp.ne.s32.totalorder %s1713_s20, %s1709_s19 }
   0xb   : > { %s2200_s27 = smov (%p27_p0, %s26_s27), 0  ;;  %s2202_s28 = smov (!%p27_p0, %s29_s28), %s1729_s24 }
   0xc   : > { %2178 = sst [smem:[#allocation7_spill]] %s2200_s27  ;;  %s38_s30 = ssub.s32 %s1725_s23, %s2200_s27 }
   0xd   : > { %p50_p2 = scmp.eq.s32.totalorder %s1733_s25, 0  ;;  %p31_p3 = scmp.ge.s32.totalorder %s2202_s28, 2 }
   0xe   : > { %p40_p4 = scmp.eq.s32.totalorder %s38_s30, 0  ;;  %s70_s6 = sadd.s32 1, %s1705_s18 }
   0xf   : > { %p1830_p5 = por %p50_p2, %p49_p1  ;;  %s2204_s28 = smov (%p31_p3, %s2202_s28), 0 }
  0x10   : > { %2180 = sst [smem:[#allocation8_spill]] %s2204_s28  ;;  %s66_s8 = ssub.s32 %s1729_s24, %s2204_s28 }
  0x11   : > { %s1838_s7 = scalar_select %p40_p4, %s1713_s20, %s42_s29  }
  0x12   : > { %p77_p6 = scmp.ne.s32.totalorder %s1705_s18, %s1701_s17  ;;  %s67_s9 = sor.u32 %s66_s8, %s38_s30 }
  0x13   : > { %2181 = sst [smem:[#allocation9_spill]] %s1838_s7  ;;  %p122_p7 = scmp.eq.s32.totalorder %s66_s8, 0 }
  0x14   : > { %p68_p8 = scmp.eq.s32.totalorder %s67_s9, 0  ;;  %p1846_p9 = por %p77_p6, %p50_p2 }
  0x15   : > { %s124_s11 = sadd.s32 1, %s1697_s16  ;;  %p131_p10 = scmp.ne.s32.totalorder %s1697_s16, %s1693_s15 }
  0x16   : > { %s1854_s12 = scalar_select %p68_p8, %s1705_s18, %s70_s6  }
  0x17   : > { %s1857_s13 = scalar_select %p122_p7, %s1697_s16, %s124_s11  }
  0x18   : > { %p1861_p11 = por %p131_p10, %p50_p2  ;;  %p163_p12 = scmp.eq.s32.totalorder %s1352_s26, 17 }
  0x19   : > { %p1355_p0 = scmp.ge.s32.totalorder %s1733_s25, 18 }
  0x1a   : > { %p1865_p13 = por %p163_p12, %p131_p10 }
  0x1b   : > { %185 = sbr.rel (%p1355_p0) target bundleno = 92 (0x5c), region = 16 }
  0x22   : > { %188 = sbr.rel (!%p1830_p5) target bundleno = 46 (0x2e), region = 20  ;;  %s190_s30 = sand.u32 (%p1830_p5), 1, %s1713_s20  }
  0x23   : > { %s1448_s6 = sshll.u32 (%p1830_p5), %s1725_s23, 4  ;;  %s1356_s8 = sshll.u32 (%p1830_p5), %s190_s30, 5 }
  0x24   : > { %s2185_s0 = sld [smem:[#allocation10_spill]] (%p1830_p5)  ;;  %s192_s26 = scalar_lea.vmem (%p1830_p5), [#allocation3], %s1356_s8 }
  0x2a   : > { %s198_s28 = scalar_lea.vmem %s2185_s0, %s1448_s6 }
  0x2b   : > { %v211_v0 = vld [vmem:[%s198_s28] sm:$0xff]  ;;  %v213_v1 = vld [vmem:[%s198_s28 + $0x8] sm:$0xff]  ;;  %v215_v2 = vld [vmem:[%s198_s28 + $0x90] sm:$0xff] }
  0x2c   : > { %212 = vst [vmem:[%s192_s26] sm:$0xff] %v211_v0  ;;  %214 = vst [vmem:[%s192_s26 + $0x8] sm:$0xff] %v213_v1  ;;  %v217_v3 = vld [vmem:[%s198_s28 + $0x98] sm:$0xff] }
  0x2d   : > { %216 = vst [vmem:[%s192_s26 + $0x10] sm:$0xff] %v215_v2  ;;  %218 = vst [vmem:[%s192_s26 + $0x18] sm:$0xff] %v217_v3 }
  0x2e PF: > { %224 = sbr.rel (!%p1846_p9) target bundleno = 85 (0x55), region = 43  ;;  %s226_s5 = sand.u32 (%p1846_p9), 1, %s1705_s18  }
  0x2f   : > { %s1361_s30 = sshll.u32 (%p1846_p9), %s1729_s24, 1  ;;  %s1359_s9 = sshll.u32 (%p1846_p9), %s226_s5, 9 }
  0x30   : > { %s1449_s6 = sshll.u32 (%p1846_p9), %s1725_s23, 8  ;;  %s1890_s28 = scalar_lea.vmem (%p1846_p9), [#allocation4], %s1359_s9 }
  0x31   : > { %s232_s11 = sadd.s32 (%p1846_p9), %s1449_s6, %s1361_s30 }
  0x32   : > { %s1363_s0 = sshll.u32 (%p1846_p9), %s232_s11, 2 }
  0x33   : > { %s1885_s7 = scalar_lea.vmem (%p1846_p9), %s2171_s1, %s1363_s0 }
  0x34   : > { %v388_v4 = vld [vmem:[%s1885_s7] sm:$0xff] (%p1846_p9)  ;;  %v390_v5 = vld [vmem:[%s1885_s7 + $0x10] sm:$0xff] (%p1846_p9) }
  0x35   : > { %v392_v6 = vld [vmem:[%s1885_s7 + $0x20] sm:$0xff]  ;;  %389 = vst [vmem:[%s1890_s28] sm:$0xff] %v388_v4  ;;  %391 = vst [vmem:[%s1890_s28 + $0x8] sm:$0xff] %v390_v5  ;;  %v394_v7 = vld [vmem:[%s1885_s7 + $0x30] sm:$0xff] }
  0x36   : > { %393 = vst [vmem:[%s1890_s28 + $0x10] sm:$0xff] %v392_v6  ;;  %v396_v8 = vld [vmem:[%s1885_s7 + $0x40] sm:$0xff]  ;;  %v398_v9 = vld [vmem:[%s1885_s7 + $0x50] sm:$0xff]  ;;  %395 = vst [vmem:[%s1890_s28 + $0x18] sm:$0xff] %v394_v7 }
  0x37   : > { %397 = vst [vmem:[%s1890_s28 + $0x20] sm:$0xff] %v396_v8  ;;  %399 = vst [vmem:[%s1890_s28 + $0x28] sm:$0xff] %v398_v9  ;;  %v400_v10 = vld [vmem:[%s1885_s7 + $0x60] sm:$0xff]  ;;  %v402_v11 = vld [vmem:[%s1885_s7 + $0x70] sm:$0xff] }
  0x38   : > { %v404_v12 = vld [vmem:[%s1885_s7 + $0x80] sm:$0xff]  ;;  %401 = vst [vmem:[%s1890_s28 + $0x30] sm:$0xff] %v400_v10  ;;  %403 = vst [vmem:[%s1890_s28 + $0x38] sm:$0xff] %v402_v11  ;;  %v406_v13 = vld [vmem:[%s1885_s7 + $0x90] sm:$0xff] }
  0x39   : > { %405 = vst [vmem:[%s1890_s28 + $0x40] sm:$0xff] %v404_v12  ;;  %v408_v14 = vld [vmem:[%s1885_s7 + $0xa0] sm:$0xff]  ;;  %v410_v15 = vld [vmem:[%s1885_s7 + $0xb0] sm:$0xff]  ;;  %407 = vst [vmem:[%s1890_s28 + $0x48] sm:$0xff] %v406_v13 }
  0x3a   : > { %409 = vst [vmem:[%s1890_s28 + $0x50] sm:$0xff] %v408_v14  ;;  %411 = vst [vmem:[%s1890_s28 + $0x58] sm:$0xff] %v410_v15  ;;  %v412_v16 = vld [vmem:[%s1885_s7 + $0xc0] sm:$0xff]  ;;  %v414_v17 = vld [vmem:[%s1885_s7 + $0xd0] sm:$0xff] }
  0x3b   : > { %v416_v18 = vld [vmem:[%s1885_s7 + $0xe0] sm:$0xff]  ;;  %413 = vst [vmem:[%s1890_s28 + $0x60] sm:$0xff] %v412_v16  ;;  %415 = vst [vmem:[%s1890_s28 + $0x68] sm:$0xff] %v414_v17  ;;  %v418_v19 = vld [vmem:[%s1885_s7 + $0xf0] sm:$0xff] }
  0x3c   : > { %417 = vst [vmem:[%s1890_s28 + $0x70] sm:$0xff] %v416_v18  ;;  %v420_v20 = vld [vmem:[%s1885_s7 + $0x100] sm:$0xff]  ;;  %v422_v21 = vld [vmem:[%s1885_s7 + $0x110] sm:$0xff]  ;;  %419 = vst [vmem:[%s1890_s28 + $0x78] sm:$0xff] %v418_v19 }
  0x3d   : > { %421 = vst [vmem:[%s1890_s28 + $0x80] sm:$0xff] %v420_v20  ;;  %423 = vst [vmem:[%s1890_s28 + $0x88] sm:$0xff] %v422_v21  ;;  %v424_v22 = vld [vmem:[%s1885_s7 + $0x120] sm:$0xff]  ;;  %v426_v23 = vld [vmem:[%s1885_s7 + $0x130] sm:$0xff] }
  0x3e   : > { %v428_v24 = vld [vmem:[%s1885_s7 + $0x140] sm:$0xff]  ;;  %425 = vst [vmem:[%s1890_s28 + $0x90] sm:$0xff] %v424_v22  ;;  %427 = vst [vmem:[%s1890_s28 + $0x98] sm:$0xff] %v426_v23  ;;  %v430_v25 = vld [vmem:[%s1885_s7 + $0x150] sm:$0xff] }
  0x3f   : > { %429 = vst [vmem:[%s1890_s28 + $0xa0] sm:$0xff] %v428_v24  ;;  %v432_v26 = vld [vmem:[%s1885_s7 + $0x160] sm:$0xff]  ;;  %v434_v27 = vld [vmem:[%s1885_s7 + $0x170] sm:$0xff]  ;;  %431 = vst [vmem:[%s1890_s28 + $0xa8] sm:$0xff] %v430_v25 }
  0x40   : > { %433 = vst [vmem:[%s1890_s28 + $0xb0] sm:$0xff] %v432_v26  ;;  %435 = vst [vmem:[%s1890_s28 + $0xb8] sm:$0xff] %v434_v27  ;;  %v436_v28 = vld [vmem:[%s1885_s7 + $0x180] sm:$0xff]  ;;  %v438_v29 = vld [vmem:[%s1885_s7 + $0x190] sm:$0xff] }
  0x41   : > { %v440_v30 = vld [vmem:[%s1885_s7 + $0x1a0] sm:$0xff]  ;;  %437 = vst [vmem:[%s1890_s28 + $0xc0] sm:$0xff] %v436_v28  ;;  %439 = vst [vmem:[%s1890_s28 + $0xc8] sm:$0xff] %v438_v29  ;;  %v442_v31 = vld [vmem:[%s1885_s7 + $0x1b0] sm:$0xff] }
  0x42   : > { %441 = vst [vmem:[%s1890_s28 + $0xd0] sm:$0xff] %v440_v30  ;;  %v444_v32 = vld [vmem:[%s1885_s7 + $0x1c0] sm:$0xff]  ;;  %v446_v33 = vld [vmem:[%s1885_s7 + $0x1d0] sm:$0xff]  ;;  %443 = vst [vmem:[%s1890_s28 + $0xd8] sm:$0xff] %v442_v31 }
  0x43   : > { %445 = vst [vmem:[%s1890_s28 + $0xe0] sm:$0xff] %v444_v32  ;;  %447 = vst [vmem:[%s1890_s28 + $0xe8] sm:$0xff] %v446_v33  ;;  %v448_v34 = vld [vmem:[%s1885_s7 + $0x1e0] sm:$0xff]  ;;  %v450_v35 = vld [vmem:[%s1885_s7 + $0x1f0] sm:$0xff] }
  0x44   : > { %v452_v36 = vld [vmem:[%s1885_s7 + $0x200] sm:$0xff]  ;;  %449 = vst [vmem:[%s1890_s28 + $0xf0] sm:$0xff] %v448_v34  ;;  %451 = vst [vmem:[%s1890_s28 + $0xf8] sm:$0xff] %v450_v35  ;;  %v454_v37 = vld [vmem:[%s1885_s7 + $0x210] sm:$0xff] }
  0x45   : > { %453 = vst [vmem:[%s1890_s28 + $0x100] sm:$0xff] %v452_v36  ;;  %v456_v38 = vld [vmem:[%s1885_s7 + $0x220] sm:$0xff]  ;;  %v458_v39 = vld [vmem:[%s1885_s7 + $0x230] sm:$0xff]  ;;  %455 = vst [vmem:[%s1890_s28 + $0x108] sm:$0xff] %v454_v37 }
  0x46   : > { %457 = vst [vmem:[%s1890_s28 + $0x110] sm:$0xff] %v456_v38  ;;  %459 = vst [vmem:[%s1890_s28 + $0x118] sm:$0xff] %v458_v39  ;;  %v460_v40 = vld [vmem:[%s1885_s7 + $0x240] sm:$0xff]  ;;  %v462_v41 = vld [vmem:[%s1885_s7 + $0x250] sm:$0xff] }
  0x47   : > { %v464_v42 = vld [vmem:[%s1885_s7 + $0x260] sm:$0xff]  ;;  %461 = vst [vmem:[%s1890_s28 + $0x120] sm:$0xff] %v460_v40  ;;  %463 = vst [vmem:[%s1890_s28 + $0x128] sm:$0xff] %v462_v41  ;;  %v466_v43 = vld [vmem:[%s1885_s7 + $0x270] sm:$0xff] }
  0x48   : > { %465 = vst [vmem:[%s1890_s28 + $0x130] sm:$0xff] %v464_v42  ;;  %v468_v44 = vld [vmem:[%s1885_s7 + $0x280] sm:$0xff]  ;;  %v470_v45 = vld [vmem:[%s1885_s7 + $0x290] sm:$0xff]  ;;  %467 = vst [vmem:[%s1890_s28 + $0x138] sm:$0xff] %v466_v43 }
  0x49   : > { %469 = vst [vmem:[%s1890_s28 + $0x140] sm:$0xff] %v468_v44  ;;  %471 = vst [vmem:[%s1890_s28 + $0x148] sm:$0xff] %v470_v45  ;;  %v472_v46 = vld [vmem:[%s1885_s7 + $0x2a0] sm:$0xff]  ;;  %v474_v47 = vld [vmem:[%s1885_s7 + $0x2b0] sm:$0xff] }
  0x4a   : > { %v476_v48 = vld [vmem:[%s1885_s7 + $0x2c0] sm:$0xff]  ;;  %473 = vst [vmem:[%s1890_s28 + $0x150] sm:$0xff] %v472_v46  ;;  %475 = vst [vmem:[%s1890_s28 + $0x158] sm:$0xff] %v474_v47  ;;  %v478_v49 = vld [vmem:[%s1885_s7 + $0x2d0] sm:$0xff] }
  0x4b   : > { %477 = vst [vmem:[%s1890_s28 + $0x160] sm:$0xff] %v476_v48  ;;  %v480_v50 = vld [vmem:[%s1885_s7 + $0x2e0] sm:$0xff]  ;;  %v482_v51 = vld [vmem:[%s1885_s7 + $0x2f0] sm:$0xff]  ;;  %479 = vst [vmem:[%s1890_s28 + $0x168] sm:$0xff] %v478_v49 }
  0x4c   : > { %481 = vst [vmem:[%s1890_s28 + $0x170] sm:$0xff] %v480_v50  ;;  %483 = vst [vmem:[%s1890_s28 + $0x178] sm:$0xff] %v482_v51  ;;  %v484_v52 = vld [vmem:[%s1885_s7 + $0x300] sm:$0xff]  ;;  %v486_v53 = vld [vmem:[%s1885_s7 + $0x310] sm:$0xff] }
  0x4d   : > { %v488_v54 = vld [vmem:[%s1885_s7 + $0x320] sm:$0xff]  ;;  %485 = vst [vmem:[%s1890_s28 + $0x180] sm:$0xff] %v484_v52  ;;  %487 = vst [vmem:[%s1890_s28 + $0x188] sm:$0xff] %v486_v53  ;;  %v490_v55 = vld [vmem:[%s1885_s7 + $0x330] sm:$0xff] }
  0x4e   : > { %489 = vst [vmem:[%s1890_s28 + $0x190] sm:$0xff] %v488_v54  ;;  %v492_v56 = vld [vmem:[%s1885_s7 + $0x340] sm:$0xff]  ;;  %v494_v57 = vld [vmem:[%s1885_s7 + $0x350] sm:$0xff]  ;;  %491 = vst [vmem:[%s1890_s28 + $0x198] sm:$0xff] %v490_v55 }
  0x4f   : > { %493 = vst [vmem:[%s1890_s28 + $0x1a0] sm:$0xff] %v492_v56  ;;  %495 = vst [vmem:[%s1890_s28 + $0x1a8] sm:$0xff] %v494_v57  ;;  %v496_v58 = vld [vmem:[%s1885_s7 + $0x360] sm:$0xff]  ;;  %v498_v59 = vld [vmem:[%s1885_s7 + $0x370] sm:$0xff] }
  0x50   : > { %v500_v60 = vld [vmem:[%s1885_s7 + $0x380] sm:$0xff]  ;;  %497 = vst [vmem:[%s1890_s28 + $0x1b0] sm:$0xff] %v496_v58  ;;  %499 = vst [vmem:[%s1890_s28 + $0x1b8] sm:$0xff] %v498_v59  ;;  %v502_v61 = vld [vmem:[%s1885_s7 + $0x390] sm:$0xff] }
  0x51   : > { %501 = vst [vmem:[%s1890_s28 + $0x1c0] sm:$0xff] %v500_v60  ;;  %v504_v62 = vld [vmem:[%s1885_s7 + $0x3a0] sm:$0xff]  ;;  %v506_v63 = vld [vmem:[%s1885_s7 + $0x3b0] sm:$0xff]  ;;  %503 = vst [vmem:[%s1890_s28 + $0x1c8] sm:$0xff] %v502_v61 }
  0x52   : > { %505 = vst [vmem:[%s1890_s28 + $0x1d0] sm:$0xff] %v504_v62  ;;  %507 = vst [vmem:[%s1890_s28 + $0x1d8] sm:$0xff] %v506_v63  ;;  %v508_v0 = vld [vmem:[%s1885_s7 + $0x3c0] sm:$0xff]  ;;  %v510_v1 = vld [vmem:[%s1885_s7 + $0x3d0] sm:$0xff] }
  0x53   : > { %v512_v2 = vld [vmem:[%s1885_s7 + $0x3e0] sm:$0xff]  ;;  %509 = vst [vmem:[%s1890_s28 + $0x1e0] sm:$0xff] %v508_v0  ;;  %511 = vst [vmem:[%s1890_s28 + $0x1e8] sm:$0xff] %v510_v1  ;;  %v514_v3 = vld [vmem:[%s1885_s7 + $0x3f0] sm:$0xff] }
  0x54   : > { %513 = vst [vmem:[%s1890_s28 + $0x1f0] sm:$0xff] %v512_v2  ;;  %515 = vst [vmem:[%s1890_s28 + $0x1f8] sm:$0xff] %v514_v3 }
  0x55 PF: > { %529 = sbr.rel (!%p1861_p11) target bundleno = 92 (0x5c), region = 85  ;;  %s531_s0 = sand.u32 (%p1861_p11), 1, %s1697_s16  }
  0x56   : > { %s1450_s27 = sshll.u32 (%p1861_p11), %s1729_s24, 4  ;;  %s1364_s10 = sshll.u32 (%p1861_p11), %s531_s0, 5 }
  0x57   : > { %s539_s30 = scalar_lea.vmem (%p1861_p11), %s2173_s3, %s1450_s27  ;;  %s533_s9 = scalar_lea.vmem (%p1861_p11), [#allocation5], %s1364_s10 }
  0x58   : > { %v552_v4 = vld [vmem:[%s539_s30] sm:$0xff] (%p1861_p11)  ;;  %v554_v5 = vld [vmem:[%s539_s30 + $0x8] sm:$0xff] (%p1861_p11) }
  0x59   : > { %v556_v6 = vld [vmem:[%s539_s30 + $0x20] sm:$0xff] (%p1861_p11)  ;;  %553 = vst [vmem:[%s533_s9] sm:$0xff] (%p1861_p11), %v552_v4  ;;  %555 = vst [vmem:[%s533_s9 + $0x8] sm:$0xff] (%p1861_p11), %v554_v5  ;;  %v558_v7 = vld [vmem:[%s539_s30 + $0x28] sm:$0xff] (%p1861_p11) }
  0x5a   : > { %557 = vst [vmem:[%s533_s9 + $0x10] sm:$0xff] (%p1861_p11), %v556_v6  ;;  %559 = vst [vmem:[%s533_s9 + $0x18] sm:$0xff] (%p1861_p11), %v558_v7 }
  0x5c PF: > { %p1367_p1 = scmp.ge.s32.totalorder %s1733_s25, 1  ;;  %p564_p2 = scmp.lt.s32.totalorder %s1733_s25, 19 }
  0x5e   : > { %p565_p3 = pnand %p1367_p1, %p564_p2 }
  0x5f   : > { %s571_s7 = sand.u32 (!%p565_p3), 1, %s1709_s19   ;;  %s578_s14 = sand.u32 (!%p565_p3), 1, %s1701_s17  }
  0x60   : > { %568 = sbr.rel (%p565_p3) target bundleno = 418 (0x1a2), region = 108  ;;  %s1368_s6 = sshll.u32 (!%p565_p3), %s571_s7, 5 }
  0x61   : > { %s1369_s11 = sshll.u32 (!%p565_p3), %s578_s14, 9  ;;  %s585_s8 = sand.u32 (!%p565_p3), 1, %s1693_s15  }
  0x62   : > { %s1372_s28 = sshll.u32 (!%p565_p3), %s1721_s22, 1  ;;  %s1370_s0 = sshll.u32 (!%p565_p3), %s585_s8, 5 }
  0x63   : > { %p626_p4 = scmp.lt.s32.totalorder (!%p565_p3), %s1372_s28, 3  ;;  %s2036_s5 = scalar_lea.vmem (!%p565_p3), [#allocation3], %s1368_s6 }
  0x64   : > { %s2038_s30 = scalar_lea.vmem (!%p565_p3), [#allocation4], %s1369_s11  ;;  %s2040_s9 = scalar_lea.vmem (!%p565_p3), [#allocation5], %s1370_s0 }
  0x65   : > { %s2042_s17 = scalar_lea.vmem (!%p565_p3), [#allocation6], %s1370_s0  ;;  %p1373_p5 = scmp.ne.s32.totalorder (!%p565_p3), %s1717_s21, 0 }
  0x67   : > { %s2206_s28 = smov (!%p626_p4, %s1372_s28), 3  ;;  %637 = sbr.rel (%p1373_p5) target bundleno = 110 (0x6e), region = 124 }
  0x68   : > { %s628_s26 = scalar_lea.vmem %s2172_s2, %s2206_s28  ;;  %v1735_v8 = vmov (!%p1373_p5), 0.0  }
  0x69   : > { %638 = vst [vmem:[#allocation2] sm:$0xff] (!%p1373_p5), %v1735_v8  ;;  %639 = vst [vmem:[#allocation2 + $0x8] sm:$0xff] (!%p1373_p5), %v1735_v8 }
  0x6a   : > { %640 = vst [vmem:[#allocation2 + $0x10] sm:$0xff] (!%p1373_p5), %v1735_v8  ;;  %641 = vst [vmem:[#allocation2 + $0x18] sm:$0xff] (!%p1373_p5), %v1735_v8 }
  0x6e PF: > { %v1545_v9 = vld [vmem:[%s2038_s30 + $0x4] ss:$8 sps:$4 sm:$0xff]   ;;  %v1549_v11 = vld [vmem:[%s2038_s30] ss:$8 sps:$4 sm:$0xff]   ;;  %v1551_v13 = vld [vmem:[%s2038_s30 + $0x14] ss:$8 sps:$4 sm:$0xff]  }
  0x6f   : > { %v1547_v10 = vld [vmem:[%s2038_s30 + $0x104] ss:$8 sps:$4 sm:$0xff]   ;;  %1054 = vmatprep.subr.bf16.mxu1 %v1545_v9  ;;  %v1550_v12 = vld [vmem:[%s2038_s30 + $0x100] ss:$8 sps:$4 sm:$0xff]   ;;  %v1553_v14 = vld [vmem:[%s2038_s30 + $0x114] ss:$8 sps:$4 sm:$0xff]  }
  0x70   : > { %1097 = vmatprep.subr.bf16.mxu0 %v1547_v10  ;;  %1055 = vmatpush1.bf16.msra.mxu1 %v1549_v11  ;;  %v1555_v15 = vld [vmem:[%s2038_s30 + $0x10] ss:$8 sps:$4 sm:$0xff]   ;;  %v1557_v17 = vld [vmem:[%s2038_s30 + $0x24] ss:$8 sps:$4 sm:$0xff]   ;;  %v1561_v19 = vld [vmem:[%s2038_s30 + $0x20] ss:$8 sps:$4 sm:$0xff]  }
  0x71   : > { %1098 = vmatpush1.bf16.msra.mxu0 %v1550_v12  ;;  %1056 = vmatprep.subr.bf16.mxu1 %v1551_v13  ;;  %v1556_v16 = vld [vmem:[%s2038_s30 + $0x110] ss:$8 sps:$4 sm:$0xff]   ;;  %v1559_v18 = vld [vmem:[%s2038_s30 + $0x124] ss:$8 sps:$4 sm:$0xff]   ;;  %v1562_v20 = vld [vmem:[%s2038_s30 + $0x120] ss:$8 sps:$4 sm:$0xff]  }
  0x72   : > { %1099 = vmatprep.subr.bf16.mxu0 %v1553_v14  ;;  %v1563_v21 = vld [vmem:[%s2038_s30 + $0x34] ss:$8 sps:$4 sm:$0xff]   ;;  %v1567_v23 = vld [vmem:[%s2038_s30 + $0x30] ss:$8 sps:$4 sm:$0xff]   ;;  %v1569_v25 = vld [vmem:[%s2038_s30 + $0x44] ss:$8 sps:$4 sm:$0xff]  }
  0x73   : > { %v1565_v22 = vld [vmem:[%s2038_s30 + $0x134] ss:$8 sps:$4 sm:$0xff]   ;;  %v1568_v24 = vld [vmem:[%s2038_s30 + $0x130] ss:$8 sps:$4 sm:$0xff]   ;;  %v1571_v26 = vld [vmem:[%s2038_s30 + $0x144] ss:$8 sps:$4 sm:$0xff]  }
  0x74   : > { %1057 = vmatpush1.bf16.msra.mxu1 %v1555_v15  ;;  %v1573_v27 = vld [vmem:[%s2038_s30 + $0x40] ss:$8 sps:$4 sm:$0xff]   ;;  %v1575_v29 = vld [vmem:[%s2038_s30 + $0x54] ss:$8 sps:$4 sm:$0xff]   ;;  %v1579_v31 = vld [vmem:[%s2038_s30 + $0x50] ss:$8 sps:$4 sm:$0xff]  }
  0x75   : > { %1100 = vmatpush1.bf16.msra.mxu0 %v1556_v16  ;;  %1058 = vmatprep.subr.bf16.mxu1 %v1557_v17  ;;  %v1574_v28 = vld [vmem:[%s2038_s30 + $0x140] ss:$8 sps:$4 sm:$0xff]   ;;  %v1577_v30 = vld [vmem:[%s2038_s30 + $0x154] ss:$8 sps:$4 sm:$0xff]   ;;  %v1580_v32 = vld [vmem:[%s2038_s30 + $0x150] ss:$8 sps:$4 sm:$0xff]  }
  0x76   : > { %1101 = vmatprep.subr.bf16.mxu0 %v1559_v18  ;;  %v1581_v33 = vld [vmem:[%s2038_s30 + $0x64] ss:$8 sps:$4 sm:$0xff]   ;;  %v1585_v35 = vld [vmem:[%s2038_s30 + $0x60] ss:$8 sps:$4 sm:$0xff]   ;;  %v1587_v37 = vld [vmem:[%s2038_s30 + $0x74] ss:$8 sps:$4 sm:$0xff]  }
  0x77   : > { %v1583_v34 = vld [vmem:[%s2038_s30 + $0x164] ss:$8 sps:$4 sm:$0xff]   ;;  %v1586_v36 = vld [vmem:[%s2038_s30 + $0x160] ss:$8 sps:$4 sm:$0xff]   ;;  %v1589_v38 = vld [vmem:[%s2038_s30 + $0x174] ss:$8 sps:$4 sm:$0xff]  }
  0x78   : > { %1059 = vmatpush1.bf16.msra.mxu1 %v1561_v19  ;;  %v1591_v39 = vld [vmem:[%s2038_s30 + $0x70] ss:$8 sps:$4 sm:$0xff]   ;;  %v1593_v41 = vld [vmem:[%s2038_s30 + $0x84] ss:$8 sps:$4 sm:$0xff]   ;;  %v1597_v43 = vld [vmem:[%s2038_s30 + $0x80] ss:$8 sps:$4 sm:$0xff]  }
  0x79   : > { %1102 = vmatpush1.bf16.msra.mxu0 %v1562_v20  ;;  %1060 = vmatprep.subr.bf16.mxu1 %v1563_v21  ;;  %v1592_v40 = vld [vmem:[%s2038_s30 + $0x170] ss:$8 sps:$4 sm:$0xff]   ;;  %v1595_v42 = vld [vmem:[%s2038_s30 + $0x184] ss:$8 sps:$4 sm:$0xff]   ;;  %v1598_v44 = vld [vmem:[%s2038_s30 + $0x180] ss:$8 sps:$4 sm:$0xff]  }
  0x7a   : > { %1103 = vmatprep.subr.bf16.mxu0 %v1565_v22  ;;  %v1599_v45 = vld [vmem:[%s2038_s30 + $0x94] ss:$8 sps:$4 sm:$0xff]   ;;  %v1603_v47 = vld [vmem:[%s2038_s30 + $0x90] ss:$8 sps:$4 sm:$0xff]   ;;  %v1605_v49 = vld [vmem:[%s2038_s30 + $0xa4] ss:$8 sps:$4 sm:$0xff]  }
  0x7b   : > { %v1601_v46 = vld [vmem:[%s2038_s30 + $0x194] ss:$8 sps:$4 sm:$0xff]   ;;  %v1604_v48 = vld [vmem:[%s2038_s30 + $0x190] ss:$8 sps:$4 sm:$0xff]   ;;  %v1607_v50 = vld [vmem:[%s2038_s30 + $0x1a4] ss:$8 sps:$4 sm:$0xff]  }
  0x7c   : > { %1061 = vmatpush1.bf16.msra.mxu1 %v1567_v23  ;;  %v1609_v51 = vld [vmem:[%s2038_s30 + $0xa0] ss:$8 sps:$4 sm:$0xff]   ;;  %v1611_v53 = vld [vmem:[%s2038_s30 + $0xb4] ss:$8 sps:$4 sm:$0xff]   ;;  %v1615_v55 = vld [vmem:[%s2038_s30 + $0xb0] ss:$8 sps:$4 sm:$0xff]  }
  0x7d   : > { %1104 = vmatpush1.bf16.msra.mxu0 %v1568_v24  ;;  %1062 = vmatprep.subr.bf16.mxu1 %v1569_v25  ;;  %v1610_v52 = vld [vmem:[%s2038_s30 + $0x1a0] ss:$8 sps:$4 sm:$0xff]   ;;  %v1613_v54 = vld [vmem:[%s2038_s30 + $0x1b4] ss:$8 sps:$4 sm:$0xff]   ;;  %v1616_v57 = vld [vmem:[%s2038_s30 + $0x1b0] ss:$8 sps:$4 sm:$0xff]  }
  0x7e   : > { %1105 = vmatprep.subr.bf16.mxu0 %v1571_v26  ;;  %v1643_v56 = vld [vmem:[%s2036_s5 + $0x4] ss:$16 sps:$4 sm:$0xff]   ;;  %v1646_v60 = vld [vmem:[%s2036_s5 + $0xc] ss:$16 sps:$4 sm:$0xff]   ;;  %v1621_v61 = vld [vmem:[%s2038_s30 + $0xc0] ss:$8 sps:$4 sm:$0xff]  }
  0x7f   : > { %v1617_v58 = vld [vmem:[%s2038_s30 + $0xc4] ss:$8 sps:$4 sm:$0xff]   ;;  %1086 = vmatprep.mubr.bf16.mxu1 %v1643_v56  ;;  %1129 = vmatprep.mubr.bf16.mxu0 %v1646_v60  ;;  %v1622_v62 = vld [vmem:[%s2038_s30 + $0x1c0] ss:$8 sps:$4 sm:$0xff]   ;;  %v1623_v63 = vld [vmem:[%s2038_s30 + $0xd4] ss:$8 sps:$4 sm:$0xff]  }
  0x80   : > { %1063 = vmatpush1.bf16.msra.mxu1 %v1573_v27  ;;  %v1619_v59 = vld [vmem:[%s2038_s30 + $0x1c4] ss:$8 sps:$4 sm:$0xff]   ;;  %v1625_v0 = vld [vmem:[%s2038_s30 + $0x1d4] ss:$8 sps:$4 sm:$0xff]   ;;  %v1627_v1 = vld [vmem:[%s2038_s30 + $0xd0] ss:$8 sps:$4 sm:$0xff]  }
  0x81   : > { %1106 = vmatpush1.bf16.msra.mxu0 %v1574_v28  ;;  %1064 = vmatprep.subr.bf16.mxu1 %v1575_v29  ;;  %v1628_v2 = vld [vmem:[%s2038_s30 + $0x1d0] ss:$8 sps:$4 sm:$0xff]   ;;  %v1629_v3 = vld [vmem:[%s2038_s30 + $0xe4] ss:$8 sps:$4 sm:$0xff]   ;;  %v1633_v5 = vld [vmem:[%s2038_s30 + $0xe0] ss:$8 sps:$4 sm:$0xff]  }
  0x82   : > { %1107 = vmatprep.subr.bf16.mxu0 %v1577_v30  ;;  %v1631_v4 = vld [vmem:[%s2038_s30 + $0x1e4] ss:$8 sps:$4 sm:$0xff]   ;;  %v1634_v6 = vld [vmem:[%s2038_s30 + $0x1e0] ss:$8 sps:$4 sm:$0xff]   ;;  %v1635_v7 = vld [vmem:[%s2038_s30 + $0xf4] ss:$8 sps:$4 sm:$0xff]  }
  0x83   : > { %v1637_v8 = vld [vmem:[%s2038_s30 + $0x1f4] ss:$8 sps:$4 sm:$0xff]   ;;  %v1639_v9 = vld [vmem:[%s2038_s30 + $0xf0] ss:$8 sps:$4 sm:$0xff]   ;;  %v642_v14 = vld [vmem:[#allocation2] sm:$0xff]  ;;  %p1442_p6 = scmp.ne.s32.totalorder %s1717_s21, 8 }
  0x84   : > { %1065 = vmatpush1.bf16.msra.mxu1 %v1579_v31  ;;  %v1640_v10 = vld [vmem:[%s2038_s30 + $0x1f0] ss:$8 sps:$4 sm:$0xff]   ;;  %v643_v18 = vld [vmem:[#allocation2 + $0x8] sm:$0xff] }
  0x85   : > { %1108 = vmatpush1.bf16.msra.mxu0 %v1580_v32  ;;  %1066 = vmatprep.subr.bf16.mxu1 %v1581_v33  ;;  %v1641_v11 = vld [vmem:[%s2036_s5] ss:$16 sps:$4 sm:$0xff]   ;;  %v1644_v12 = vld [vmem:[%s2036_s5 + $0x8] ss:$16 sps:$4 sm:$0xff]   ;;  %v1158_v33 = vlaneseq (!%p1442_p6) }
  0x86   : > { %1109 = vmatprep.subr.bf16.mxu0 %v1583_v34  ;;  %v644_v22 = vld [vmem:[#allocation2 + $0x10] sm:$0xff]  ;;  %v645_v27 = vld [vmem:[#allocation2 + $0x18] sm:$0xff] }
  0x87   : > { %v1159_v34 = vshrl.u32 (!%p1442_p6), %v1158_v33, 7 }
  0x88   : > { %1067 = vmatpush1.bf16.msra.mxu1 %v1585_v35  ;;  %v1156_v35 = vld [vmem:[%s628_s26] sm:$0x3] (!%p1442_p6) }
  0x89   : > { %1110 = vmatpush1.bf16.msra.mxu0 %v1586_v36  ;;  %1068 = vmatprep.subr.bf16.mxu1 %v1587_v37  ;;  %v1160_v37 = vsub.s32 (!%p1442_p6), 0, %v1159_v34 }
  0x8a   : > { %1111 = vmatprep.subr.bf16.mxu0 %v1589_v38  ;;  %v1164_v38 = vsub.s32 (!%p1442_p6), 1, %v1159_v34 }
  0x8c   : > { %1069 = vmatpush1.bf16.msra.mxu1 %v1591_v39 }
  0x8d   : > { %1112 = vmatpush1.bf16.msra.mxu0 %v1592_v40  ;;  %1070 = vmatprep.subr.bf16.mxu1 %v1593_v41 }
  0x8e   : > { %1113 = vmatprep.subr.bf16.mxu0 %v1595_v42  ;;  %v1161_v42 = vrot.slane (!%p1442_p6), %v1156_v35, %v1160_v37 }
  0x90   : > { %1071 = vmatpush1.bf16.msra.mxu1 %v1597_v43  ;;  %v1172_v43 = vld [vmem:[%s2040_s9] sm:$0xff] (!%p1442_p6) }
  0x91   : > { %1114 = vmatpush1.bf16.msra.mxu0 %v1598_v44  ;;  %1072 = vmatprep.subr.bf16.mxu1 %v1599_v45  ;;  %v1165_v44 = vrot.slane (!%p1442_p6), %v1156_v35, %v1164_v38  ;;  %v1173_v45 = vld [vmem:[%s2040_s9 + $0x8] sm:$0xff] (!%p1442_p6) }
  0x92   : > { %1115 = vmatprep.subr.bf16.mxu0 %v1601_v46  ;;  %v1174_v46 = vld [vmem:[%s2040_s9 + $0x10] sm:$0xff] (!%p1442_p6) }
  0x94   : > { %1073 = vmatpush1.bf16.msra.mxu1 %v1603_v47  ;;  %v1175_v47 = vld [vmem:[%s2040_s9 + $0x18] sm:$0xff] (!%p1442_p6) }
  0x95   : > { %1116 = vmatpush1.bf16.msra.mxu0 %v1604_v48  ;;  %1074 = vmatprep.subr.bf16.mxu1 %v1605_v49 }
  0x96   : > { %1117 = vmatprep.subr.bf16.mxu0 %v1607_v50 }
  0x98   : > { %1075 = vmatpush1.bf16.msra.mxu1 %v1609_v51 }
  0x99   : > { %1118 = vmatpush1.bf16.msra.mxu0 %v1610_v52  ;;  %1076 = vmatprep.subr.bf16.mxu1 %v1611_v53 }
  0x9a   : > { %1119 = vmatprep.subr.bf16.mxu0 %v1613_v54 }
  0x9c   : > { %1077 = vmatpush1.bf16.msra.mxu1 %v1615_v55 }
  0x9d   : > { %1120 = vmatpush1.bf16.msra.mxu0 %v1616_v57  ;;  %1078 = vmatprep.subr.bf16.mxu1 %v1617_v58 }
  0x9e   : > { %1121 = vmatprep.subr.bf16.mxu0 %v1619_v59 }
  0xa0   : > { %1079 = vmatpush1.bf16.msra.mxu1 %v1621_v61 }
  0xa1   : > { %1122 = vmatpush1.bf16.msra.mxu0 %v1622_v62  ;;  %1080 = vmatprep.subr.bf16.mxu1 %v1623_v63 }
  0xa2   : > { %1123 = vmatprep.subr.bf16.mxu0 %v1625_v0 }
  0xa4   : > { %1081 = vmatpush1.bf16.msra.mxu1 %v1627_v1 }
  0xa5   : > { %1124 = vmatpush1.bf16.msra.mxu0 %v1628_v2  ;;  %1082 = vmatprep.subr.bf16.mxu1 %v1629_v3 }
  0xa6   : > { %1125 = vmatprep.subr.bf16.mxu0 %v1631_v4 }
  0xa8   : > { %1083 = vmatpush1.bf16.msra.mxu1 %v1633_v5 }
  0xa9   : > { %1126 = vmatpush1.bf16.msra.mxu0 %v1634_v6  ;;  %1084 = vmatprep.subr.bf16.mxu1 %v1635_v7 }
  0xaa   : > { %1127 = vmatprep.subr.bf16.mxu0 %v1637_v8 }
  0xac   : > { %1085 = vmatpush1.bf16.msra.mxu1 %v1639_v9 }
  0xad   : > { %1128 = vmatpush1.bf16.msra.mxu0 %v1640_v10 }
  0xaf   : > { %1087 = vmatmul.mubr.bf16.vlgmr.msra.gmra.mrb[0].mxu1 %v1641_v11 }
  0xb0   : > { %1130 = vmatmul.mubr.bf16.vlgmr.msra.gmra.mrb[0].mxu0 %v1644_v12 }
 0x182   : > { %v1088_v13 = vpop.f32.mrb[0].mxu1 }
 0x183   : > { %v1131_v15 = vpop.f32.mrb[0].mxu0  ;;  %v1090_v17 = vpop.f32.mrb[1].mxu1 }
 0x184   : > { %v1132_v16 = vadd.f32 %v1131_v15, %v1088_v13  ;;  %v1133_v19 = vpop.f32.mrb[1].mxu0  ;;  %v1092_v21 = vpop.f32.mrb[2].mxu1 }
 0x185   : > { %v1134_v20 = vadd.f32 %v1133_v19, %v1090_v17  ;;  %v1135_v23 = vpop.f32.mrb[2].mxu0  ;;  %v1094_v26 = vpop.f32.mrb[3].mxu1  ;;  %1151 = sbr.rel (%p1442_p6) target bundleno = 410 (0x19a), region = 128 }
 0x186   : > { %v1140_v24 = vadd.f32 %v1132_v16, %v642_v14  ;;  %v1136_v25 = vadd.f32 %v1135_v23, %v1092_v21  ;;  %v1137_v28 = vpop.f32.mrb[3].mxu0 }
 0x187   : > { %v1141_v29 = vadd.f32 %v1134_v20, %v643_v18  ;;  %v1138_v30 = vadd.f32 %v1137_v28, %v1094_v26 }
 0x188   : > { %1144 = vst [vmem:[#allocation2] sm:$0xff] %v1140_v24  ;;  %v1142_v31 = vadd.f32 %v1136_v25, %v644_v22 }
 0x189   : > { %1145 = vst [vmem:[#allocation2 + $0x8] sm:$0xff] %v1141_v29  ;;  %v1143_v32 = vadd.f32 %v1138_v30, %v645_v27 }
 0x18a   : > { %1146 = vst [vmem:[#allocation2 + $0x10] sm:$0xff] %v1142_v31 }
 0x18b   : > { %1147 = vst [vmem:[#allocation2 + $0x18] sm:$0xff] %v1143_v32 }
 0x18f   : > { %v1152_v36 = vld [vmem:[#allocation2] sm:$0xff] }
 0x190   : > { %v1153_v39 = vld [vmem:[#allocation2 + $0x8] sm:$0xff]  ;;  %v1168_v48 = vadd.f32 %v1161_v42, %v1152_v36 }
 0x191   : > { %v1154_v40 = vld [vmem:[#allocation2 + $0x10] sm:$0xff]  ;;  %v1169_v49 = vadd.f32 %v1165_v44, %v1153_v39 }
 0x192   : > { %v1155_v41 = vld [vmem:[#allocation2 + $0x18] sm:$0xff]  ;;  %v1170_v50 = vadd.f32 %v1161_v42, %v1154_v40  ;;  %v1176_v52 = vadd.f32 %v1172_v43, %v1168_v48 }
 0x193   : > { %v1171_v51 = vadd.f32 %v1165_v44, %v1155_v41  ;;  %v1177_v53 = vadd.f32 %v1173_v45, %v1169_v49 }
 0x194   : > { %v1178_v54 = vadd.f32 %v1174_v46, %v1170_v50  ;;  %v1180_v56 = vmax.f32 %v1176_v52, 0.0 }
 0x195   : > { %v1179_v55 = vadd.f32 %v1175_v47, %v1171_v51  ;;  %v1181_v57 = vmax.f32 %v1177_v53, 0.0 }
 0x196   : > { %v1182_v58 = vmax.f32 %v1178_v54, 0.0  ;;  %1184 = vst [vmem:[%s2042_s17] sm:$0xff] %v1180_v56 }
 0x197   : > { %v1183_v59 = vmax.f32 %v1179_v55, 0.0  ;;  %1185 = vst [vmem:[%s2042_s17 + $0x8] sm:$0xff] %v1181_v57 }
 0x198   : > { %1186 = vst [vmem:[%s2042_s17 + $0x10] sm:$0xff] %v1182_v58 }
 0x199   : > { %1187 = vst [vmem:[%s2042_s17 + $0x18] sm:$0xff] %v1183_v59 }
 0x19a PF: > { %1194 = sbr.rel (!%p1865_p13) target bundleno = 418 (0x1a2), region = 132  ;;  %s1451_s21 = sshll.u32 (%p1865_p13), %s1721_s22, 4 }
 0x19b   : > { %s1200_s6 = scalar_lea.vmem (%p1865_p13), %s2174_s4, %s1451_s21 }
 0x19d   : > { %v1213_v60 = vld [vmem:[%s2042_s17] sm:$0xff] (%p1865_p13) }
 0x19e   : > { %v1215_v61 = vld [vmem:[%s2042_s17 + $0x8] sm:$0xff] (%p1865_p13)  ;;  %1214 = vst [vmem:[%s1200_s6] sm:$0xff] (%p1865_p13), %v1213_v60 }
 0x19f   : > { %v1217_v62 = vld [vmem:[%s2042_s17 + $0x10] sm:$0xff] (%p1865_p13)  ;;  %1216 = vst [vmem:[%s1200_s6 + $0x8] sm:$0xff] (%p1865_p13), %v1215_v61 }
 0x1a0   : > { %v1219_v63 = vld [vmem:[%s2042_s17 + $0x18] sm:$0xff] (%p1865_p13)  ;;  %1218 = vst [vmem:[%s1200_s6 + $0x20] sm:$0xff] (%p1865_p13), %v1217_v62 }
 0x1a1   : > { %1220 = vst [vmem:[%s1200_s6 + $0x28] sm:$0xff] %v1219_v63 }
 0x1a2 PF: > { %s14_s25 = sadd.s32 1, %s1733_s25   ;;  %s2186_s22 = sld [smem:[#allocation9_spill]] }
 0x1a3   : > { %p11_p7 = scmp.ge.s32.totalorder %s14_s25, 20   ;;  %s2187_s29 = sld [smem:[#allocation7_spill]] }
 0x1a4   : > { %s2188_s11 = sld [smem:[#allocation8_spill]]  ;;  %s2189_s15 = smov %s1697_s16 }
 0x1a5   : > { %s2190_s16 = smov %s1857_s13  ;;  %s2191_s17 = smov %s1705_s18 }
 0x1a6   : > { %s2192_s18 = smov %s1854_s12  ;;  %s2193_s19 = smov %s1713_s20 }
 0x1a7   : > { %s2195_s21 = smov %s1725_s23  ;;  %13 = sbr.rel (!%p11_p7) target bundleno = 8 (0x8), region = 205 }
 0x1a8   : > { %s2194_s20 = smov %s2186_s22  ;;  %s2196_s22 = smov %s1729_s24 }
 0x1a9   : > { %s2197_s23 = smov %s2187_s29 }
 0x1aa   : > { %s2198_s24 = smov %s2188_s11 }

// kernel: resnet_forward.27
= control target key start
LH: loop header
LB: loop body
LE: loop exit
PB: predicated region body
PF: predicated region fallthrough
CT: control target
= control target key end

     0   :  { %s1181_s0 = inlined_call_operand.vmem [shape: f32[2,1,512], index: 0, kind: input, shape index: {}]   ;;  %s1182_s1 = inlined_call_operand.vmem [shape: f32[1,512], index: 1, kind: input, shape index: {}]   ;;  %s1183_s2 = inlined_call_operand.<no memory space> [shape: f32[1,1], index: 2, kind: input, shape index: {}]   ;;  %s1184_s3 = inlined_call_operand.vmem [shape: f32[512,128], index: 3, kind: input, shape index: {}]   ;;  %s1185_s4 = inlined_call_operand.vmem [shape: f32[1,128], index: 4, kind: input, shape index: {}]   ;;  %s1186_s5 = inlined_call_operand.hbm [shape: f32[2,1,128], index: 5, kind: output, shape index: {}]  }
   0x1   :  { %v10_v0 = vstv %s1183_s2 }
   0x2   :  { %11 = vst [vmem:[#allocation2] sm:$0x1] %v10_v0 }
   0x3   :  { %12 = vsyncpa [#allocation4], 0 }
   0x4   :  { %14 = vsyncpa [#allocation4 + $0x1], 0  ;;  %s856_s20 = smov 0   ;;  %s858_s21 = smov 0  }
   0x5   :  { %s860_s22 = smov 0   ;;  %s862_s23 = smov 0  }
   0x6 LB: > { %s877_s2 = sadd.s32 4294967295, %s819_s23   ;;  %s569_s24 = sadd.s32 4294967294, %s819_s23   ;;  %s819_s23 = sphi %s862_s23, %s1192_s23   ;;  %s815_s22 = sphi %s860_s22, %s1191_s22   ;;  %s811_s21 = sphi %s858_s21, %s1190_s21   ;;  %s807_s20 = sphi %s856_s20, %s1189_s20  }
   0x7   : > { %s881_s25 = sadd.s32 1, %s819_s23   ;;  %s137_s26 = sadd.s32 1, %s815_s22 }
   0x8   : > { %s134_s27 = ssub.s32 %s819_s23, %s881_s25  ;;  %p147_p0 = scmp.ne.s32.totalorder %s815_s22, %s811_s21 }
   0x9   : > { %p135_p1 = scmp.eq.s32.totalorder %s134_s27, 0  ;;  %p148_p2 = scmp.eq.s32.totalorder %s877_s2, 1 }
   0xa   : > { %p153_p3 = scmp.ne.s32.totalorder %s811_s21, %s807_s20  ;;  %p154_p4 = scmp.eq.s32.totalorder %s569_s24, 1 }
   0xb   : > { %s892_s28 = scalar_select %p135_p1, %s815_s22, %s137_s26  }
   0xc   : > { %p894_p5 = por %p148_p2, %p147_p0  ;;  %p898_p6 = por %p154_p4, %p153_p3 }
   0xd   : > { %p572_p7 = scmp.ge.s32.totalorder %s819_s23, 1  ;;  %p191_p8 = scmp.lt.s32.totalorder %s819_s23, 3 }
   0xf   : > { %p192_p9 = pnand %p572_p7, %p191_p8 }
  0x10   : > { %p217_p10 = scmp.lt.s32.totalorder (!%p192_p9), %s877_s2, 1  ;;  %v225_v1 = vlaneseq (!%p192_p9)  ;;  %v222_v3 = vld [vmem:[%s1182_s1] sm:$0xf] (!%p192_p9)  ;;  %vm245_vm0 = vcmask (!%p192_p9), 1040384   ;;  %v821_v21 = vmov (!%p192_p9), 0   ;;  %v291_v23 = vld [vmem:[%s1184_s3 + $0x88] sm:$0xff] (!%p192_p9) }
  0x11   : > { %195 = sbr.rel (%p192_p9) target bundleno = 578 (0x242), region = 40  ;;  %752 = vset.pattern.permute.xlu0 (!%p192_p9), %v821_v21  ;;  %v290_v22 = vld [vmem:[%s1184_s3 + $0x80] sm:$0xff] (!%p192_p9)  ;;  %v323_v26 = vld [vmem:[%s1184_s3 + $0x188] sm:$0xff] (!%p192_p9)  ;;  %v292_v33 = vld [vmem:[%s1184_s3 + $0x90] sm:$0xff] (!%p192_p9)  ;;  %s215_s27 = sand.u32 (!%p192_p9), 1, %s811_s21  }
  0x12   : > { %v906_v2 = vshrl.u32 (!%p192_p9), %v225_v1, 7  ;;  %v322_v24 = vld [vmem:[%s1184_s3 + $0x180] sm:$0xff] (!%p192_p9)  ;;  %v648_v25 = vpack.c.bf16 (!%p192_p9), %v291_v23, %v290_v22  ;;  %v275_v28 = vld [vmem:[%s1184_s3 + $0x8] sm:$0xff] (!%p192_p9)  ;;  %v293_v35 = vld [vmem:[%s1184_s3 + $0x98] sm:$0xff] (!%p192_p9)  ;;  %s575_s8 = sshll.u32 (!%p192_p9), %s877_s2, 4  ;;  %s216_s9 = scalar_lea.vmem (!%p192_p9), [#allocation3], %s215_s27 }
  0x13   : > { %v274_v27 = vld [vmem:[%s1184_s3] sm:$0xff] (!%p192_p9)  ;;  %v680_v29 = vpack.c.bf16 (!%p192_p9), %v323_v26, %v322_v24  ;;  %v307_v32 = vld [vmem:[%s1184_s3 + $0x108] sm:$0xff] (!%p192_p9)  ;;  %v324_v36 = vld [vmem:[%s1184_s3 + $0x190] sm:$0xff] (!%p192_p9)  ;;  %v652_v38 = vpack.c.bf16 (!%p192_p9), %v293_v35, %v292_v33  ;;  %s514_s10 = sshll.u32 (!%p192_p9), %s216_s9, 4  ;;  %s1139_s13 = scalar_lea.hbm (!%p192_p9), %s1186_s5, %s575_s8  ;;  %s1141_s10 = int_to_ptr.vmem [resolvable:$true] %s514_s10 }
  0x14   : > { %v915_v4 = vsub.s32 (!%p192_p9), 0, %v906_v2  ;;  %v231_v5 = vsub.s32 (!%p192_p9), 1, %v906_v2  ;;  %v235_v6 = vsub.s32 (!%p192_p9), 2, %v906_v2  ;;  %v239_v7 = vsub.s32 (!%p192_p9), 3, %v906_v2  ;;  %v306_v31 = vld [vmem:[%s1184_s3 + $0x100] sm:$0xff] (!%p192_p9)  ;;  %649 = vmatprep.subr.bf16.mxu0 (!%p192_p9), %v648_v25  ;;  %v325_v37 = vld [vmem:[%s1184_s3 + $0x198] sm:$0xff] (!%p192_p9) }
  0x15   : > { %v650_v30 = vpack.c.bf16 (!%p192_p9), %v275_v28, %v274_v27  ;;  %v682_v34 = vpack.c.bf16 (!%p192_p9), %v307_v32, %v306_v31  ;;  %681 = vmatprep.subr.bf16.mxu1 (!%p192_p9), %v680_v29  ;;  %v684_v39 = vpack.c.bf16 (!%p192_p9), %v325_v37, %v324_v36  ;;  %v276_v40 = vld [vmem:[%s1184_s3 + $0x10] sm:$0xff] (!%p192_p9)  ;;  %v277_v41 = vld [vmem:[%s1184_s3 + $0x18] sm:$0xff] (!%p192_p9)  ;;  %v294_v45 = vld [vmem:[%s1184_s3 + $0xa0] sm:$0xff] (!%p192_p9)  ;;  %s502_s14 = scalar_lea.sflag (!%p192_p9), [#allocation4], %s215_s27  ;;  %s757_s15 = scalar_lea.vmem (!%p192_p9), %s1141_s10, 16 }
  0x16   : > { %v308_v42 = vld [vmem:[%s1184_s3 + $0x110] sm:$0xff] (!%p192_p9)  ;;  %v654_v43 = vpack.c.bf16 (!%p192_p9), %v277_v41, %v276_v40  ;;  %v309_v44 = vld [vmem:[%s1184_s3 + $0x118] sm:$0xff] (!%p192_p9)  ;;  %v295_v46 = vld [vmem:[%s1184_s3 + $0xa8] sm:$0xff] (!%p192_p9)  ;;  %p758_p11 = scmp.ne.s32.totalorder (!%p192_p9), %s1141_s10, %s757_s15 }
  0x17   : > { %651 = vmatpush3.bf16.msra.mxu0 (!%p192_p9), %v650_v30  ;;  %683 = vmatpush3.bf16.msra.mxu1 (!%p192_p9), %v682_v34  ;;  %v686_v47 = vpack.c.bf16 (!%p192_p9), %v309_v44, %v308_v42  ;;  %v656_v48 = vpack.c.bf16 (!%p192_p9), %v295_v46, %v294_v45  ;;  %v326_v49 = vld [vmem:[%s1184_s3 + $0x1a0] sm:$0xff] (!%p192_p9)  ;;  %v327_v50 = vld [vmem:[%s1184_s3 + $0x1a8] sm:$0xff] (!%p192_p9)  ;;  %v296_v57 = vld [vmem:[%s1184_s3 + $0xb0] sm:$0xff] (!%p192_p9) }
  0x18   : > { %s218_s6 = scalar_select %p217_p10, %s877_s2, 1  ;;  %653 = vmatprep.subr.bf16.mxu0 %v652_v38  ;;  %685 = vmatprep.subr.bf16.mxu1 %v684_v39  ;;  %v278_v51 = vld [vmem:[%s1184_s3 + $0x20] sm:$0xff]  ;;  %v688_v52 = vpack.c.bf16 %v327_v50, %v326_v49  ;;  %v279_v53 = vld [vmem:[%s1184_s3 + $0x28] sm:$0xff]  ;;  %v297_v58 = vld [vmem:[%s1184_s3 + $0xb8] sm:$0xff] }
  0x19   : > { %v310_v54 = vld [vmem:[%s1184_s3 + $0x120] sm:$0xff]  ;;  %v311_v55 = vld [vmem:[%s1184_s3 + $0x128] sm:$0xff]  ;;  %v658_v56 = vpack.c.bf16 %v279_v53, %v278_v51  ;;  %v328_v59 = vld [vmem:[%s1184_s3 + $0x1b0] sm:$0xff]  ;;  %v660_v61 = vpack.c.bf16 %v297_v58, %v296_v57  ;;  %p759_p12 = pnand %p758_p11, %p894_p5  ;;  %s822_s2 = smov [#allocation3]  }
  0x1a   : > { %s573_s7 = sshll.u32 %s218_s6, 2  ;;  %v690_v60 = vpack.c.bf16 %v311_v55, %v310_v54  ;;  %v329_v62 = vld [vmem:[%s1184_s3 + $0x1b8] sm:$0xff]  ;;  %v280_v63 = vld [vmem:[%s1184_s3 + $0x30] sm:$0xff]  ;;  %v315_v21 = vld [vmem:[%s1184_s3 + $0x148] sm:$0xff]  ;;  %s761_s16 = sshll.u32 %s822_s2, 4  ;;  %s762_s16 = int_to_ptr.vmem [resolvable:$false] %s761_s16 }
  0x1b   : > { %s220_s12 = scalar_lea.vmem %s1181_s0, %s573_s7  ;;  %655 = vmatpush3.bf16.msra.mxu0 %v654_v43  ;;  %687 = vmatpush3.bf16.msra.mxu1 %v686_v47  ;;  %v281_v0 = vld [vmem:[%s1184_s3 + $0x38] sm:$0xff]  ;;  %v692_v1 = vpack.c.bf16 %v329_v62, %v328_v59  ;;  %v300_v22 = vld [vmem:[%s1184_s3 + $0xd0] sm:$0xff]  ;;  %v302_v34 = vld [vmem:[%s1184_s3 + $0xe0] sm:$0xff]  ;;  %p760_p13 = pneg %p759_p12 }
  0x1c   : > { %v920_v8 = vld [vmem:[%s220_s12] sm:$0xf]  ;;  %657 = vmatprep.subr.bf16.mxu0 %v656_v48  ;;  %689 = vmatprep.subr.bf16.mxu1 %v688_v52  ;;  %v301_v23 = vld [vmem:[%s1184_s3 + $0xd8] sm:$0xff]  ;;  %v332_v24 = vld [vmem:[%s1184_s3 + $0x1d0] sm:$0xff]  ;;  %s763_s17 = scalar_lea.vmem %s762_s16, 32  ;;  %p764_p0 = scmp.lt.s32.totalorder %s1141_s10, %s762_s16 }
  0x1d   : > { %v223_v9 = vmul.f32 %v222_v3, %v920_v8  ;;  %v312_v3 = vld [vmem:[%s1184_s3 + $0x130] sm:$0xff]  ;;  %v333_v25 = vld [vmem:[%s1184_s3 + $0x1d8] sm:$0xff]  ;;  %v668_v28 = vpack.c.bf16 %v301_v23, %v300_v22  ;;  %v303_v35 = vld [vmem:[%s1184_s3 + $0xe8] sm:$0xff]  ;;  %p765_p1 = scmp.lt.s32.totalorder %s763_s17, %s757_s15 }
  0x1e   : > { %v284_v29 = vld [vmem:[%s1184_s3 + $0x50] sm:$0xff]  ;;  %v285_v30 = vld [vmem:[%s1184_s3 + $0x58] sm:$0xff]  ;;  %v700_v32 = vpack.c.bf16 %v333_v25, %v332_v24  ;;  %v334_v36 = vld [vmem:[%s1184_s3 + $0x1e0] sm:$0xff]  ;;  %v672_v40 = vpack.c.bf16 %v303_v35, %v302_v34 }
  0x1f   : > { %v228_v10 = vrot.slane %v223_v9, %v915_v4  ;;  %v232_v11 = vrot.slane %v223_v9, %v231_v5  ;;  %v236_v12 = vrot.slane %v223_v9, %v235_v6  ;;  %v240_v13 = vrot.slane %v223_v9, %v239_v7  ;;  %v313_v9 = vld [vmem:[%s1184_s3 + $0x138] sm:$0xff]  ;;  %659 = vmatpush3.bf16.msra.mxu0 %v658_v56  ;;  %v316_v31 = vld [vmem:[%s1184_s3 + $0x150] sm:$0xff]  ;;  %v335_v37 = vld [vmem:[%s1184_s3 + $0x1e8] sm:$0xff]  ;;  %p766_p2 = por %p765_p1, %p764_p0 }
  0x20   : > { %691 = vmatpush3.bf16.msra.mxu1 %v690_v60  ;;  %661 = vmatprep.subr.bf16.mxu0 %v660_v61  ;;  %v317_v33 = vld [vmem:[%s1184_s3 + $0x158] sm:$0xff]  ;;  %v670_v38 = vpack.c.bf16 %v285_v30, %v284_v29  ;;  %v704_v41 = vpack.c.bf16 %v335_v37, %v334_v36  ;;  %v255_v42 = vld [vmem:[#allocation2] sm:$0x1]  ;;  %v287_v49 = vld [vmem:[%s1184_s3 + $0x68] sm:$0xff] }
  0x21   : > { %v246_v14 = vsel %vm245_vm0, %v228_v10, 0.0  ;;  %v247_v15 = vsel %vm245_vm0, %v232_v11, 0.0  ;;  %v249_v16 = vsel %vm245_vm0, %v236_v12, 0.0  ;;  %v251_v18 = vsel %vm245_vm0, %v240_v13, 0.0  ;;  %v298_v10 = vld [vmem:[%s1184_s3 + $0xc0] sm:$0xff]  ;;  %v299_v11 = vld [vmem:[%s1184_s3 + $0xc8] sm:$0xff]  ;;  %693 = vmatprep.subr.bf16.mxu1 %v692_v1  ;;  %p767_p3 = pnand %p766_p2, %p760_p13 }
  0x22   : > { %v248_v17 = vadd.f32 %v247_v15, %v246_v14  ;;  %v330_v12 = vld [vmem:[%s1184_s3 + $0x1c0] sm:$0xff]  ;;  %v331_v13 = vld [vmem:[%s1184_s3 + $0x1c8] sm:$0xff]  ;;  %v662_v14 = vpack.c.bf16 %v281_v0, %v280_v63  ;;  %v694_v15 = vpack.c.bf16 %v313_v9, %v312_v3  ;;  %v702_v39 = vpack.c.bf16 %v317_v33, %v316_v31  ;;  %v304_v55 = vld [vmem:[%s1184_s3 + $0xf0] sm:$0xff] }
  0x23   : > { %v286_v48 = vld [vmem:[%s1184_s3 + $0x60] sm:$0xff]  ;;  %v319_v52 = vld [vmem:[%s1184_s3 + $0x168] sm:$0xff]  ;;  %v305_v56 = vld [vmem:[%s1184_s3 + $0xf8] sm:$0xff] }
  0x24   : > { %v250_v19 = vadd.f32 %v249_v16, %v248_v17  ;;  %v664_v16 = vpack.c.bf16 %v299_v11, %v298_v10  ;;  %v282_v17 = vld [vmem:[%s1184_s3 + $0x40] sm:$0xff]  ;;  %663 = vmatpush3.bf16.msra.mxu0 %v662_v14  ;;  %695 = vmatpush3.bf16.msra.mxu1 %v694_v15  ;;  %v674_v51 = vpack.c.bf16 %v287_v49, %v286_v48  ;;  %v336_v57 = vld [vmem:[%s1184_s3 + $0x1f0] sm:$0xff]  ;;  %v337_v59 = vld [vmem:[%s1184_s3 + $0x1f8] sm:$0xff] }
  0x25   : > { %v318_v50 = vld [vmem:[%s1184_s3 + $0x160] sm:$0xff]  ;;  %v676_v58 = vpack.c.bf16 %v305_v56, %v304_v55  ;;  %v288_v60 = vld [vmem:[%s1184_s3 + $0x70] sm:$0xff]  ;;  %v289_v61 = vld [vmem:[%s1184_s3 + $0x78] sm:$0xff]  ;;  %v708_v62 = vpack.c.bf16 %v337_v59, %v336_v57 }
  0x26   : > { %v252_v20 = vadd.f32 %v251_v18, %v250_v19  ;;  %v283_v18 = vld [vmem:[%s1184_s3 + $0x48] sm:$0xff]  ;;  %v314_v19 = vld [vmem:[%s1184_s3 + $0x140] sm:$0xff]  ;;  %665 = vmatprep.subr.bf16.mxu0 %v664_v16  ;;  %v706_v54 = vpack.c.bf16 %v319_v52, %v318_v50  ;;  %v678_v63 = vpack.c.bf16 %v289_v61, %v288_v60  ;;  %v320_v0 = vld [vmem:[%s1184_s3 + $0x170] sm:$0xff] }
  0x27   : > { %v666_v26 = vpack.c.bf16 %v283_v18, %v282_v17  ;;  %v698_v27 = vpack.c.bf16 %v315_v21, %v314_v19  ;;  %v321_v1 = vld [vmem:[%s1184_s3 + $0x178] sm:$0xff] }
  0x28   : > { %253 = vadd.xlane.f32.xlu0 %v252_v20  ;;  %v696_v20 = vpack.c.bf16 %v331_v13, %v330_v12  ;;  %v710_v3 = vpack.c.bf16 %v321_v1, %v320_v0 }
  0x29   : > { %667 = vmatpush3.bf16.msra.mxu0 %v666_v26 }
  0x2a   : > { %697 = vmatprep.subr.bf16.mxu1 %v696_v20  ;;  %669 = vmatprep.subr.bf16.mxu0 %v668_v28 }
  0x2b   : > { %699 = vmatpush3.bf16.msra.mxu1 %v698_v27 }
  0x2c   : > { %701 = vmatprep.subr.bf16.mxu1 %v700_v32 }
  0x2d   : > { %671 = vmatpush3.bf16.msra.mxu0 %v670_v38 }
  0x2e   : > { %673 = vmatprep.subr.bf16.mxu0 %v672_v40 }
  0x2f   : > { %703 = vmatpush3.bf16.msra.mxu1 %v702_v39 }
  0x30   : > { %705 = vmatprep.subr.bf16.mxu1 %v704_v41 }
  0x31   : > { %675 = vmatpush3.bf16.msra.mxu0 %v674_v51 }
  0x32   : > { %677 = vmatprep.subr.bf16.mxu0 %v676_v58 }
  0x33   : > { %707 = vmatpush3.bf16.msra.mxu1 %v706_v54 }
  0x34   : > { %709 = vmatprep.subr.bf16.mxu1 %v708_v62 }
  0x35   : > { %679 = vmatpush3.bf16.msra.mxu0 %v678_v63 }
  0x37   : > { %711 = vmatpush3.bf16.msra.mxu1 %v710_v3 }
  0xb5   : > { %v254_v43 = vpop.xlane.xlu0 %253 }
  0xb6   : > { %v256_v44 = vadd.f32 %v255_v42, %v254_v43 }
  0xb8   : > { %v574_v45 = vmul.f32 -1.442695, %v256_v44 }
  0xba   : > { %753 = vpow2.f32 %v574_v45 }
  0xc4   : > { %v754_v46 = vpop.eup %753 }
  0xc5   : > { %v260_v47 = vadd.f32 1.0, %v754_v46 }
  0xc7   : > { %755 = vrcp.f32 %v260_v47 }
  0xd1   : > { %v756_v53 = vpop.eup %755 }
  0xd2   : > { %265 = vperm.xlu0 %752, %v756_v53  }
 0x151   : > { %v266_v9 = vpop.permute.xlu0 %265 }
 0x152   : > { %v270_v10 = vrot.slane %v266_v9, %v915_v4 }
 0x154   : > { %v272_v11 = vmul.f32 %v270_v10, %v920_v8 }
 0x156   : > { %v347_v12 = vrot.slane %v272_v11, %v231_v5  ;;  %v355_v13 = vrot.slane %v272_v11, %v239_v7  ;;  %v343_v14 = vrot.slane %v272_v11, %v915_v4  ;;  %v351_v15 = vrot.slane %v272_v11, %v235_v6  ;;  %v338_v5 = vld [vmem:[%s1185_s4] sm:$0x1] }
 0x158   : > { %424 = vmatprep.mubr.f32.mxu0 %v347_v12  ;;  %494 = vmatprep.mubr.f32.mxu1 %v355_v13 }
 0x159   : > { %425 = vmatmul.mubr.f32.vlgmr.msra.gmra.mrb[0].mxu0 %v343_v14  ;;  %495 = vmatmul.mubr.f32.vlgmr.msra.gmra.mrb[0].mxu1 %v351_v15 }
 0x22c   : > { %v610_v16 = vpop.f32.mrb[0].mxu0  ;;  %v645_v17 = vpop.f32.mrb[0].mxu1 }
 0x22d   : > { %v611_v8 = vpop.f32.mrb[1].mxu0  ;;  %v646_v18 = vpop.f32.mrb[1].mxu1 }
 0x22e   : > { %v612_v7 = vadd.f32 %v611_v8, %v610_v16  ;;  %v647_v19 = vadd.f32 %v646_v18, %v645_v17 }
 0x230   : > { %v427_v2 = vadd.f32 %v612_v7, %v338_v5 }
 0x232   : > { %v497_v4 = vadd.f32 %v647_v19, %v427_v2 }
 0x234   : > { %500 = vst [vmem:[%s216_s9] sm:$0x1] %v497_v4 }
 0x235   : > { %770 = shalt.err (!%p767_p3)
}
 0x236   : > { %s771_s18 = scalar_lea.hbm %s1139_s13, 16  ;;  %s775_s26 = scalar_lea.hbm %s1186_s5, 32 }
 0x237   : > { %p772_p4 = scmp.ne.s32.totalorder %s1139_s13, %s771_s18  ;;  %p776_p9 = scmp.lt.u32.totalorder %s1139_s13, %s1186_s5 }
 0x238   : > { %p777_p10 = scmp.lt.u32.totalorder %s775_s26, %s771_s18  ;;  %p779_p12 = scmp.lt.u32.totalorder %s771_s18, %s1139_s13 }
 0x239   : > { %p773_p7 = pnand %p772_p4, %p894_p5 }
 0x23a   : > { %p778_p11 = por %p777_p10, %p776_p9 }
 0x23b   : > { %p774_p8 = pneg %p773_p7 }
 0x23c   : > { %p780_p13 = por %p779_p12, %p778_p11 }
 0x23e   : > { %p781_p0 = pnand %p780_p13, %p774_p8 }
 0x240   : > { %784 = shalt.err (!%p781_p0)
}
 0x241   : > { %712 = dma.vmem_to_hbm [thread:$0]  (%p894_p5), %s1141_s10, 16, %s1139_s13, %s502_s14  }
 0x242 PF: > { %p718_p1 = scmp.ge.s32.totalorder %s819_s23, 2  ;;  %s526_s7 = sand.u32 1, %s807_s20  }
 0x243   : > { %s527_s8 = scalar_lea.sflag [#allocation4], %s526_s7 }
 0x244   : > { %p715_p2 = pnand %p718_p1, %p898_p6 }
 0x246   : > { %802 = dma.done.wait (!%p715_p2), %s527_s8, 16  }
 0x247   : > { %804 = vsyncadd (!%p715_p2), %s527_s8, 4294967280  ;;  %p17_p3 = scmp.ge.s32.totalorder %s881_s25, 4   ;;  %s1189_s20 = smov %s811_s21 }
 0x248   : > { %s1190_s21 = smov %s815_s22  ;;  %s1191_s22 = smov %s892_s28 }
 0x249   : > { %s1192_s23 = smov %s881_s25  ;;  %19 = sbr.rel (!%p17_p3) target bundleno = 6 (0x6), region = 75 }
 0x250   :  { %531 = vsyncpa [#allocation4], 1 }
 0x251   :  { %533 = vsyncpa [#allocation4 + $0x1], 1 }

</bundles_post_ra>
